<compile_context>
chip_gen: v7x
topology: tpu7x:2x2x1
jax: 0.10.0
libtpu: 0.0.40
codegen_flags: <defaults>
</compile_context>

<pallas_src>
import functools

import jax
import jax.numpy as jnp
import numpy as np
from jax.experimental import pallas as pl
from jax.experimental.pallas import tpu as pltpu


_INV_SQRT2 = 0.7071067811865476


# ----------------------------- shared helpers --------------------------------
def _layernorm(x, gamma, beta, eps=1e-5):
    # torch nn.LayerNorm: biased variance over the last dim, eps inside sqrt.
    mean = jnp.mean(x, axis=-1, keepdims=True)
    var = jnp.mean((x - mean) ** 2, axis=-1, keepdims=True)
    return (x - mean) * jax.lax.rsqrt(var + eps) * gamma + beta


def _gelu_exact(x):
    # torch nn.GELU default (approximate='none'): 0.5*x*(1+erf(x/sqrt(2)))
    # TODO(synk): on v5e, if VALU becomes the binding slot, switch to tanh GELU.
    return 0.5 * x * (1.0 + jax.lax.erf(x * _INV_SQRT2))


# --------------------------------- kernel ------------------------------------
def block_kernel(x_ref, kT_ref, v_ref,                       # query tile, K^T, V
                 g1_ref, b1_ref,                             # norm1 (for Q only)
                 wq_ref, wproj_ref, bproj_ref,               # attention
                 gA_ref, bA_ref, wdn_ref, bdn_ref, wup_ref, bup_ref,  # adapter
                 g2_ref, b2_ref,                             # norm2
                 wfc1_ref, bfc1_ref, wfc2_ref, bfc2_ref,     # mlp
                 o_ref,
                 *, num_heads, adapter_scale, matmul_dtype):
    f32 = jnp.float32
    mm = matmul_dtype
    tile_n, D = x_ref.shape[1], x_ref.shape[2]

    # ---------------- attention branch: x = x + attn(norm1(x)) ----------------
    x = x_ref[0].astype(f32)                                  # (tile_n, D)
    xn = _layernorm(x, g1_ref[...], b1_ref[...]).astype(mm)

    # Per-head loop (static unroll).  All head operands are head-major and
    # indexed on the LEADING axis (free), every dot is a plain lane-dense 2-D
    # matmul, and each head's context folds straight into the projection
    # accumulator (single (tile_n, D) f32 live accumulator).
    proj = jnp.zeros((tile_n, D), f32)
    for h in range(num_heads):
        # attention scale was folded into wq in the wrapper (f32, pre-cast).
        q = jnp.dot(xn, wq_ref[h], preferred_element_type=f32)          # (tile_n, Hd)
        s = jnp.dot(q.astype(mm), kT_ref[0, h],
                    preferred_element_type=f32)                         # (tile_n, N)
        s = s - jnp.max(s, axis=-1, keepdims=True)
        p = jnp.exp(s)
        p = p * pl.reciprocal(jnp.sum(p, axis=-1, keepdims=True), approx=True)
        ctx = jnp.dot(p.astype(mm), v_ref[0, h],
                      preferred_element_type=f32)                       # (tile_n, Hd)
        proj = proj + jnp.dot(ctx.astype(mm), wproj_ref[h],
                              preferred_element_type=f32)               # (tile_n, D)
    x = x + proj + bproj_ref[...]          # drop_path == Identity (eval)

    # ---- adapter branch (layernorm_option='in'; eval => dropout identity) ----
    # TODO(synk): Adapter dropout(p=0.1) is a no-op in eval mode; not modeled.
    xa = _layernorm(x, gA_ref[...], bA_ref[...]).astype(mm)
    down = jnp.dot(xa, wdn_ref[...], preferred_element_type=f32) + bdn_ref[...]
    down = jnp.maximum(down, 0.0).astype(mm)                  # ReLU
    adapt_x = jnp.dot(down, wup_ref[...], preferred_element_type=f32) + bup_ref[...]

    # ---------------- MLP branch: mlp(norm2(x)) ----------------
    xm = _layernorm(x, g2_ref[...], b2_ref[...]).astype(mm)
    h1 = jnp.dot(xm, wfc1_ref[...], preferred_element_type=f32) + bfc1_ref[...]
    h1 = _gelu_exact(h1).astype(mm)
    mlp_out = jnp.dot(h1, wfc2_ref[...], preferred_element_type=f32) + bfc2_ref[...]

    # ---------------- fuse: x = x + adapt_x*scale + mlp_out ----------------
    o_ref[0] = (x + adapt_x * adapter_scale + mlp_out).astype(o_ref.dtype)


# --------------------------------- wrapper -----------------------------------
PARAM_ORDER = ("g1", "b1", "wq", "wproj", "bproj",
               "gA", "bA", "wdn", "bdn", "wup", "bup",
               "g2", "b2", "wfc1", "bfc1", "wfc2", "bfc2")

_MATMUL_WEIGHTS = frozenset({"wq", "wproj", "wdn", "wup", "wfc1", "wfc2"})


def _pick_tile_n(N):
    for t in (256, 128, 64, 32, 16, 8):
        if N % t == 0:
            return t
    # TODO(synk): for N not divisible by 8 (e.g. ViT N=197) pad tokens to a
    # multiple of 128/256 and mask the pad keys in the softmax.
    return N


def _vmem_cap_bytes():
    # Per-generation VMEM capacity (v5e/v6e: 128 MiB, v7x: 64 MiB per TC).
    try:
        return int(getattr(pltpu.get_tpu_info(), "vmem_capacity_bytes", 128 << 20))
    except Exception:
        return 128 << 20


def vit_block_forward(x, params, *, num_heads, adapter_scale=0.5,
                      tile_n=None, matmul_dtype=jnp.bfloat16,
                      single_buffer_weights=True):
    B, N, D = x.shape
    H = num_heads
    Hd = D // H
    assert H * Hd == D
    if tile_n is None:
        tile_n = _pick_tile_n(N)
    assert N % tile_n == 0
    n_tiles = N // tile_n
    mm = matmul_dtype
    f32 = jnp.float32

    p = {k: jnp.asarray(v, f32) for k, v in params.items()}
    wqkv = p.pop("wqkv")                                       # (D, 3D), qkv_bias=False
    wq, wk, wv = wqkv[:, :D], wqkv[:, D:2 * D], wqkv[:, 2 * D:]

    # ---- K/V hoisted out of the kernel (plain XLA; could fuse into the
    #      previous layer).  Head-major, lane-dense layouts. ----
    xf = x.astype(f32)
    xn = _layernorm(xf, p["g1"], p["b1"])
    kT = (xn @ wk).reshape(B, N, H, Hd).transpose(0, 2, 3, 1).astype(mm)   # (B,H,Hd,N)
    v_hm = (xn @ wv).reshape(B, N, H, Hd).transpose(0, 2, 1, 3).astype(mm) # (B,H,N,Hd)

    # ---- head-major weights; attention scale folded into wq (in f32, pre-cast) ----
    wq_hm = (wq * (Hd ** -0.5)).reshape(D, H, Hd).transpose(1, 0, 2)       # (H,D,Hd)
    wproj_hm = p["wproj"].reshape(H, Hd, D)                                # (H,Hd,D)

    # ---- lane-dense adapter bottleneck: zero-pad down_size to a multiple of
    #      128 (exact: padded cols/rows are zero, ReLU(0)=0 -> contributes 0) ----
    wdn, bdn, wup = p["wdn"], p["bdn"], p["wup"]
    pad = (-wdn.shape[1]) % 128
    if pad:
        wdn = jnp.pad(wdn, ((0, 0), (0, pad)))
        bdn = jnp.pad(bdn, ((0, 0), (0, pad)))
        wup = jnp.pad(wup, ((0, pad), (0, 0)))

    weights = dict(p)
    weights.update(wq=wq_hm, wproj=wproj_hm, wdn=wdn, bdn=bdn, wup=wup)
    weight_list = [weights[n].astype(mm if n in _MATMUL_WEIGHTS else f32)
                   for n in PARAM_ORDER]

    def weight_spec(a):
        kwargs = {}
        if single_buffer_weights:
            # Grid-invariant operands: one resident VMEM buffer is enough.
            kwargs["pipeline_mode"] = pl.Buffered(1)
        return pl.BlockSpec(a.shape,
                            lambda b, nt, _nd=a.ndim: (0,) * _nd,
                            **kwargs)

    in_specs = [
        pl.BlockSpec((1, tile_n, D), lambda b, nt: (b, nt, 0)),     # query tile
        pl.BlockSpec((1, H, Hd, N), lambda b, nt: (b, 0, 0, 0)),    # K^T (per b)
        pl.BlockSpec((1, H, N, Hd), lambda b, nt: (b, 0, 0, 0)),    # V   (per b)
    ] + [weight_spec(w) for w in weight_list]
    out_spec = pl.BlockSpec((1, tile_n, D), lambda b, nt: (b, nt, 0))

    # ---- VMEM budget: weights + double-buffered K/V + I/O tiles + in-kernel
    #      temporaries, clamped to the actual chip's capacity. ----
    itm = jnp.dtype(mm).itemsize
    weight_bytes = sum(int(np.prod(w.shape)) * w.dtype.itemsize for w in weight_list)
    if not single_buffer_weights:
        weight_bytes *= 2
    kv_bytes = 2 * (2 * N * D) * itm                  # K^T + V, double-buffered
    io_bytes = 2 * (2 * tile_n * D) * 4               # x tile + out tile, double-buffered
    hid = int(weights["wfc1"].shape[1])
    dpad = int(wdn.shape[1])
    tmp_bytes = (tile_n * N + tile_n * hid + tile_n * dpad + 8 * tile_n * D) * 4
    hard_cap = _vmem_cap_bytes() - (8 << 20)          # headroom for the compiler
    vmem_limit = weight_bytes + kv_bytes + io_bytes + tmp_bytes + (8 << 20)
    vmem_limit = int(max(min(32 << 20, hard_cap), min(vmem_limit, hard_cap)))

    kernel = functools.partial(block_kernel, num_heads=H,
                               adapter_scale=adapter_scale, matmul_dtype=mm)

    return pl.pallas_call(
        kernel,
        out_shape=jax.ShapeDtypeStruct((B, N, D), jnp.float32),
        grid=(B, n_tiles),
        in_specs=in_specs,
        out_specs=out_spec,
        compiler_params=pltpu.CompilerParams(
            # No scratch carry any more -> both axes fully parallel
            # (v7x: token tiles can be split across the two TensorCores).
            dimension_semantics=("parallel", "parallel"),
            vmem_limit_bytes=vmem_limit),
    )(xf, kT, v_hm, *weight_list)


# ----------------------------- pure-JAX reference ----------------------------
def ref_forward(x, p, *, num_heads, adapter_scale=0.5):
    def ln(t, g, b, eps=1e-5):
        m = t.mean(-1, keepdims=True)
        v = ((t - m) ** 2).mean(-1, keepdims=True)
        return (t - m) / jnp.sqrt(v + eps) * g + b

    B, N, D = x.shape
    Hd = D // num_heads
    xn = ln(x, p["g1"], p["b1"])
    qkv = xn @ p["wqkv"]
    qkv = qkv.reshape(B, N, 3, num_heads, Hd).transpose(2, 0, 3, 1, 4)
    q, k, v = qkv[0], qkv[1], qkv[2]
    att = jnp.einsum("bhnd,bhmd->bhnm", q, k) * Hd ** -0.5
    att = jax.nn.softmax(att, axis=-1)
    o = jnp.einsum("bhnm,bhmd->bhnd", att, v).transpose(0, 2, 1, 3).reshape(B, N, D)
    x = x + (o @ p["wproj"] + p["bproj"])
    xa = ln(x, p["gA"], p["bA"])
    adapt = jnp.maximum(xa @ p["wdn"] + p["bdn"], 0.0) @ p["wup"] + p["bup"]
    xm = ln(x, p["g2"], p["b2"])
    h = jax.nn.gelu(xm @ p["wfc1"] + p["bfc1"], approximate=False)
    mlp = h @ p["wfc2"] + p["bfc2"]
    return x + adapt * adapter_scale + mlp


# ----------------------------------- main ------------------------------------
if __name__ == "__main__":
    B, N, D = 2, 16, 32           # batch, tokens, embed dim (toy sizes)
    num_heads = 4
    mlp_hidden = int(D * 4.0)     # 128
    down_size = 16                # adapter bottleneck (small synthetic size)
    adapter_scale = 0.5           # adapter_scalar='0.5'

    key = jax.random.PRNGKey(0)
    ks = jax.random.split(key, 18)
    rnd = lambda k, shape, s=0.02: (jax.random.normal(k, shape, jnp.float32) * s)

    # Weights stored pre-transposed relative to torch nn.Linear (so y = x @ W + b).
    params = {
        "g1":    1.0 + rnd(ks[0], (1, D), 0.1),
        "b1":    rnd(ks[1], (1, D), 0.1),
        "wqkv":  rnd(ks[2], (D, 3 * D)),           # qkv_bias=False
        "wproj": rnd(ks[3], (D, D)),
        "bproj": rnd(ks[4], (1, D)),
        "gA":    1.0 + rnd(ks[5], (1, D), 0.1),
        "bA":    rnd(ks[6], (1, D), 0.1),
        "wdn":   rnd(ks[7], (D, down_size)),
        "bdn":   rnd(ks[8], (1, down_size)),
        "wup":   rnd(ks[9], (down_size, D)),
        "bup":   rnd(ks[10], (1, D)),
        "g2":    1.0 + rnd(ks[11], (1, D), 0.1),
        "b2":    rnd(ks[12], (1, D), 0.1),
        "wfc1":  rnd(ks[13], (D, mlp_hidden)),
        "bfc1":  rnd(ks[14], (1, mlp_hidden)),
        "wfc2":  rnd(ks[15], (mlp_hidden, D)),
        "bfc2":  rnd(ks[16], (1, D)),
    }
    x = jax.random.normal(ks[17], (B, N, D), jnp.float32)

    def run(**kw):
        return jax.block_until_ready(
            vit_block_forward(x, params, num_heads=num_heads,
                              adapter_scale=adapter_scale, tile_n=8, **kw))

    ref = jax.block_until_ready(
        ref_forward(x, params, num_heads=num_heads, adapter_scale=adapter_scale))

    # Default bf16 matmul path (MXU-friendly storage + inputs, f32 accumulation).
    try:
        out_bf16 = run()
    except Exception:
        # Fallback if this JAX build rejects single-buffered (Buffered(1)) specs.
        out_bf16 = run(single_buffer_weights=False)
    np.testing.assert_allclose(np.asarray(out_bf16), np.asarray(ref),
                               rtol=5e-2, atol=5e-2)

    # f32 matmul path (strict correctness check vs. the f32 reference).
    try:
        out_f32 = run(matmul_dtype=jnp.float32)
    except Exception:
        out_f32 = run(matmul_dtype=jnp.float32, single_buffer_weights=False)
    np.testing.assert_allclose(np.asarray(out_f32), np.asarray(ref),
                               rtol=2e-3, atol=2e-3)

    print("KERNEL_OK")
</pallas_src>

<mosaic_0001>
module attributes {stable_mosaic.version = 11 : i64} {
  func.func @block_kernel(%arg0: i32, %arg1: i32, %arg2: memref<1x8x32xf32, #tpu.memory_space<vmem>>, %arg3: memref<1x4x8x16xbf16, #tpu.memory_space<vmem>>, %arg4: memref<1x4x16x8xbf16, #tpu.memory_space<vmem>>, %arg5: memref<1x32xf32, #tpu.memory_space<vmem>>, %arg6: memref<1x32xf32, #tpu.memory_space<vmem>>, %arg7: memref<4x32x8xbf16, #tpu.memory_space<vmem>>, %arg8: memref<4x8x32xbf16, #tpu.memory_space<vmem>>, %arg9: memref<1x32xf32, #tpu.memory_space<vmem>>, %arg10: memref<1x32xf32, #tpu.memory_space<vmem>>, %arg11: memref<1x32xf32, #tpu.memory_space<vmem>>, %arg12: memref<32x128xbf16, #tpu.memory_space<vmem>>, %arg13: memref<1x128xf32, #tpu.memory_space<vmem>>, %arg14: memref<128x32xbf16, #tpu.memory_space<vmem>>, %arg15: memref<1x32xf32, #tpu.memory_space<vmem>>, %arg16: memref<1x32xf32, #tpu.memory_space<vmem>>, %arg17: memref<1x32xf32, #tpu.memory_space<vmem>>, %arg18: memref<32x128xbf16, #tpu.memory_space<vmem>>, %arg19: memref<1x128xf32, #tpu.memory_space<vmem>>, %arg20: memref<128x32xbf16, #tpu.memory_space<vmem>>, %arg21: memref<1x32xf32, #tpu.memory_space<vmem>>, %arg22: memref<1x8x32xf32, #tpu.memory_space<vmem>>) attributes {dimension_semantics = [#tpu.dimension_semantics<parallel>, #tpu.dimension_semantics<parallel>], iteration_bounds = array<i64: 2, 2>, scalar_prefetch = 0 : i64, scratch_operands = 0 : i64, tpu.core_type = #tpu.core_type<tc>, window_params = [{transform_indices = @transform_0, window_bounds = array<i64: 1, 8, 32>}, {transform_indices = @transform_1, window_bounds = array<i64: 1, 4, 8, 16>}, {transform_indices = @transform_2, window_bounds = array<i64: 1, 4, 16, 8>}, {pipeline_mode = #tpu.pipeline_mode<synchronous>, transform_indices = @transform_3, window_bounds = array<i64: 1, 32>}, {pipeline_mode = #tpu.pipeline_mode<synchronous>, transform_indices = @transform_4, window_bounds = array<i64: 1, 32>}, {pipeline_mode = #tpu.pipeline_mode<synchronous>, transform_indices = @transform_5, window_bounds = array<i64: 4, 32, 8>}, {pipeline_mode = #tpu.pipeline_mode<synchronous>, transform_indices = @transform_6, window_bounds = array<i64: 4, 8, 32>}, {pipeline_mode = #tpu.pipeline_mode<synchronous>, transform_indices = @transform_7, window_bounds = array<i64: 1, 32>}, {pipeline_mode = #tpu.pipeline_mode<synchronous>, transform_indices = @transform_8, window_bounds = array<i64: 1, 32>}, {pipeline_mode = #tpu.pipeline_mode<synchronous>, transform_indices = @transform_9, window_bounds = array<i64: 1, 32>}, {pipeline_mode = #tpu.pipeline_mode<synchronous>, transform_indices = @transform_10, window_bounds = array<i64: 32, 128>}, {pipeline_mode = #tpu.pipeline_mode<synchronous>, transform_indices = @transform_11, window_bounds = array<i64: 1, 128>}, {pipeline_mode = #tpu.pipeline_mode<synchronous>, transform_indices = @transform_12, window_bounds = array<i64: 128, 32>}, {pipeline_mode = #tpu.pipeline_mode<synchronous>, transform_indices = @transform_13, window_bounds = array<i64: 1, 32>}, {pipeline_mode = #tpu.pipeline_mode<synchronous>, transform_indices = @transform_14, window_bounds = array<i64: 1, 32>}, {pipeline_mode = #tpu.pipeline_mode<synchronous>, transform_indices = @transform_15, window_bounds = array<i64: 1, 32>}, {pipeline_mode = #tpu.pipeline_mode<synchronous>, transform_indices = @transform_16, window_bounds = array<i64: 32, 128>}, {pipeline_mode = #tpu.pipeline_mode<synchronous>, transform_indices = @transform_17, window_bounds = array<i64: 1, 128>}, {pipeline_mode = #tpu.pipeline_mode<synchronous>, transform_indices = @transform_18, window_bounds = array<i64: 128, 32>}, {pipeline_mode = #tpu.pipeline_mode<synchronous>, transform_indices = @transform_19, window_bounds = array<i64: 1, 32>}, {transform_indices = @transform_20, window_bounds = array<i64: 1, 8, 32>}]} {
    %c0 = arith.constant 0 : index
    %c0_0 = arith.constant 0 : index
    %c0_1 = arith.constant 0 : index
    %0 = vector.load %arg2[%c0, %c0_0, %c0_1] : memref<1x8x32xf32, #tpu.memory_space<vmem>>, vector<1x8x32xf32>
    %1 = vector.shape_cast %0 : vector<1x8x32xf32> to vector<8x32xf32>
    %c0_2 = arith.constant 0 : index
    %c0_3 = arith.constant 0 : index
    %2 = vector.load %arg5[%c0_2, %c0_3] : memref<1x32xf32, #tpu.memory_space<vmem>>, vector<1x32xf32>
    %c0_4 = arith.constant 0 : index
    %c0_5 = arith.constant 0 : index
    %3 = vector.load %arg6[%c0_4, %c0_5] : memref<1x32xf32, #tpu.memory_space<vmem>>, vector<1x32xf32>
    %cst = arith.constant dense<0.000000e+00> : vector<8xf32>
    %4 = vector.multi_reduction <add>, %1, %cst [1] : vector<8x32xf32> to vector<8xf32>
    %5 = vector.shape_cast %4 : vector<8xf32> to vector<8x1xf32>
    %cst_6 = arith.constant 3.200000e+01 : f32
    %6 = vector.broadcast %cst_6 : f32 to vector<8x1xf32>
    %7 = arith.divf %5, %6 : vector<8x1xf32>
    %8 = vector.broadcast %7 : vector<8x1xf32> to vector<8x32xf32>
    %9 = arith.subf %1, %8 : vector<8x32xf32>
    %10 = arith.mulf %9, %9 : vector<8x32xf32>
    %cst_7 = arith.constant dense<0.000000e+00> : vector<8xf32>
    %11 = vector.multi_reduction <add>, %10, %cst_7 [1] : vector<8x32xf32> to vector<8xf32>
    %12 = vector.shape_cast %11 : vector<8xf32> to vector<8x1xf32>
    %cst_8 = arith.constant 3.200000e+01 : f32
    %13 = vector.broadcast %cst_8 : f32 to vector<8x1xf32>
    %14 = arith.divf %12, %13 : vector<8x1xf32>
    %15 = vector.broadcast %7 : vector<8x1xf32> to vector<8x32xf32>
    %16 = arith.subf %1, %15 : vector<8x32xf32>
    %cst_9 = arith.constant 9.99999974E-6 : f32
    %17 = vector.broadcast %cst_9 : f32 to vector<8x1xf32>
    %18 = arith.addf %14, %17 : vector<8x1xf32>
    %19 = math.rsqrt %18 : vector<8x1xf32>
    %20 = vector.broadcast %19 : vector<8x1xf32> to vector<8x32xf32>
    %21 = arith.mulf %16, %20 : vector<8x32xf32>
    %22 = vector.broadcast %2 : vector<1x32xf32> to vector<8x32xf32>
    %23 = arith.mulf %21, %22 : vector<8x32xf32>
    %24 = vector.broadcast %3 : vector<1x32xf32> to vector<8x32xf32>
    %25 = arith.addf %23, %24 : vector<8x32xf32>
    %26 = arith.truncf %25 : vector<8x32xf32> to vector<8x32xbf16>
    %cst_10 = arith.constant 0.000000e+00 : f32
    %27 = vector.broadcast %cst_10 : f32 to vector<8x32xf32>
    %c0_11 = arith.constant 0 : index
    %c0_12 = arith.constant 0 : index
    %c0_13 = arith.constant 0 : index
    %28 = vector.load %arg7[%c0_11, %c0_12, %c0_13] : memref<4x32x8xbf16, #tpu.memory_space<vmem>>, vector<1x32x8xbf16>
    %29 = vector.shape_cast %28 : vector<1x32x8xbf16> to vector<32x8xbf16>
    %cst_14 = arith.constant dense<0.000000e+00> : vector<8x8xf32>
    %30 = tpu.matmul %26, %29, %cst_14 {dimension_numbers = #tpu.dot_dimension_numbers<[1], [0], [0], [1], [0, 0, 1, 1], [], []>} : vector<8x32xbf16>, vector<32x8xbf16>, vector<8x8xf32> -> vector<8x8xf32>
    %31 = arith.truncf %30 : vector<8x8xf32> to vector<8x8xbf16>
    %c0_15 = arith.constant 0 : index
    %c0_16 = arith.constant 0 : index
    %c0_17 = arith.constant 0 : index
    %c0_18 = arith.constant 0 : index
    %32 = vector.load %arg3[%c0_15, %c0_16, %c0_17, %c0_18] : memref<1x4x8x16xbf16, #tpu.memory_space<vmem>>, vector<1x1x8x16xbf16>
    %33 = vector.shape_cast %32 : vector<1x1x8x16xbf16> to vector<8x16xbf16>
    %cst_19 = arith.constant dense<0.000000e+00> : vector<8x16xf32>
    %34 = tpu.matmul %31, %33, %cst_19 {dimension_numbers = #tpu.dot_dimension_numbers<[1], [0], [0], [1], [0, 0, 1, 1], [], []>} : vector<8x8xbf16>, vector<8x16xbf16>, vector<8x16xf32> -> vector<8x16xf32>
    %cst_20 = arith.constant dense<0xFF800000> : vector<8xf32>
    %35 = vector.multi_reduction <maximumf>, %34, %cst_20 [1] : vector<8x16xf32> to vector<8xf32>
    %36 = vector.shape_cast %35 : vector<8xf32> to vector<8x1xf32>
    %37 = vector.broadcast %36 : vector<8x1xf32> to vector<8x16xf32>
    %38 = arith.subf %34, %37 : vector<8x16xf32>
    %39 = math.exp %38 : vector<8x16xf32>
    %cst_21 = arith.constant dense<0.000000e+00> : vector<8xf32>
    %40 = vector.multi_reduction <add>, %39, %cst_21 [1] : vector<8x16xf32> to vector<8xf32>
    %41 = vector.shape_cast %40 : vector<8xf32> to vector<8x1xf32>
    %42 = tpu.reciprocal %41 {approx = true} : vector<8x1xf32> -> vector<8x1xf32>
    %43 = vector.broadcast %42 : vector<8x1xf32> to vector<8x16xf32>
    %44 = arith.mulf %39, %43 : vector<8x16xf32>
    %45 = arith.truncf %44 : vector<8x16xf32> to vector<8x16xbf16>
    %c0_22 = arith.constant 0 : index
    %c0_23 = arith.constant 0 : index
    %c0_24 = arith.constant 0 : index
    %c0_25 = arith.constant 0 : index
    %46 = vector.load %arg4[%c0_22, %c0_23, %c0_24, %c0_25] : memref<1x4x16x8xbf16, #tpu.memory_space<vmem>>, vector<1x1x16x8xbf16>
    %47 = vector.shape_cast %46 : vector<1x1x16x8xbf16> to vector<16x8xbf16>
    %cst_26 = arith.constant dense<0.000000e+00> : vector<8x8xf32>
    %48 = tpu.matmul %45, %47, %cst_26 {dimension_numbers = #tpu.dot_dimension_numbers<[1], [0], [0], [1], [0, 0, 1, 1], [], []>} : vector<8x16xbf16>, vector<16x8xbf16>, vector<8x8xf32> -> vector<8x8xf32>
    %49 = arith.truncf %48 : vector<8x8xf32> to vector<8x8xbf16>
    %c0_27 = arith.constant 0 : index
    %c0_28 = arith.constant 0 : index
    %c0_29 = arith.constant 0 : index
    %50 = vector.load %arg8[%c0_27, %c0_28, %c0_29] : memref<4x8x32xbf16, #tpu.memory_space<vmem>>, vector<1x8x32xbf16>
    %51 = vector.shape_cast %50 : vector<1x8x32xbf16> to vector<8x32xbf16>
    %cst_30 = arith.constant dense<0.000000e+00> : vector<8x32xf32>
    %52 = tpu.matmul %49, %51, %cst_30 {dimension_numbers = #tpu.dot_dimension_numbers<[1], [0], [0], [1], [0, 0, 1, 1], [], []>} : vector<8x8xbf16>, vector<8x32xbf16>, vector<8x32xf32> -> vector<8x32xf32>
    %53 = arith.addf %27, %52 : vector<8x32xf32>
    %c1 = arith.constant 1 : index
    %c0_31 = arith.constant 0 : index
    %c0_32 = arith.constant 0 : index
    %54 = vector.load %arg7[%c1, %c0_31, %c0_32] : memref<4x32x8xbf16, #tpu.memory_space<vmem>>, vector<1x32x8xbf16>
    %55 = vector.shape_cast %54 : vector<1x32x8xbf16> to vector<32x8xbf16>
    %cst_33 = arith.constant dense<0.000000e+00> : vector<8x8xf32>
    %56 = tpu.matmul %26, %55, %cst_33 {dimension_numbers = #tpu.dot_dimension_numbers<[1], [0], [0], [1], [0, 0, 1, 1], [], []>} : vector<8x32xbf16>, vector<32x8xbf16>, vector<8x8xf32> -> vector<8x8xf32>
    %57 = arith.truncf %56 : vector<8x8xf32> to vector<8x8xbf16>
    %c0_34 = arith.constant 0 : index
    %c1_35 = arith.constant 1 : index
    %c0_36 = arith.constant 0 : index
    %c0_37 = arith.constant 0 : index
    %58 = vector.load %arg3[%c0_34, %c1_35, %c0_36, %c0_37] : memref<1x4x8x16xbf16, #tpu.memory_space<vmem>>, vector<1x1x8x16xbf16>
    %59 = vector.shape_cast %58 : vector<1x1x8x16xbf16> to vector<8x16xbf16>
    %cst_38 = arith.constant dense<0.000000e+00> : vector<8x16xf32>
    %60 = tpu.matmul %57, %59, %cst_38 {dimension_numbers = #tpu.dot_dimension_numbers<[1], [0], [0], [1], [0, 0, 1, 1], [], []>} : vector<8x8xbf16>, vector<8x16xbf16>, vector<8x16xf32> -> vector<8x16xf32>
    %cst_39 = arith.constant dense<0xFF800000> : vector<8xf32>
    %61 = vector.multi_reduction <maximumf>, %60, %cst_39 [1] : vector<8x16xf32> to vector<8xf32>
    %62 = vector.shape_cast %61 : vector<8xf32> to vector<8x1xf32>
    %63 = vector.broadcast %62 : vector<8x1xf32> to vector<8x16xf32>
    %64 = arith.subf %60, %63 : vector<8x16xf32>
    %65 = math.exp %64 : vector<8x16xf32>
    %cst_40 = arith.constant dense<0.000000e+00> : vector<8xf32>
    %66 = vector.multi_reduction <add>, %65, %cst_40 [1] : vector<8x16xf32> to vector<8xf32>
    %67 = vector.shape_cast %66 : vector<8xf32> to vector<8x1xf32>
    %68 = tpu.reciprocal %67 {approx = true} : vector<8x1xf32> -> vector<8x1xf32>
    %69 = vector.broadcast %68 : vector<8x1xf32> to vector<8x16xf32>
    %70 = arith.mulf %65, %69 : vector<8x16xf32>
    %71 = arith.truncf %70 : vector<8x16xf32> to vector<8x16xbf16>
    %c0_41 = arith.constant 0 : index
    %c1_42 = arith.constant 1 : index
    %c0_43 = arith.constant 0 : index
    %c0_44 = arith.constant 0 : index
    %72 = vector.load %arg4[%c0_41, %c1_42, %c0_43, %c0_44] : memref<1x4x16x8xbf16, #tpu.memory_space<vmem>>, vector<1x1x16x8xbf16>
    %73 = vector.shape_cast %72 : vector<1x1x16x8xbf16> to vector<16x8xbf16>
    %cst_45 = arith.constant dense<0.000000e+00> : vector<8x8xf32>
    %74 = tpu.matmul %71, %73, %cst_45 {dimension_numbers = #tpu.dot_dimension_numbers<[1], [0], [0], [1], [0, 0, 1, 1], [], []>} : vector<8x16xbf16>, vector<16x8xbf16>, vector<8x8xf32> -> vector<8x8xf32>
    %75 = arith.truncf %74 : vector<8x8xf32> to vector<8x8xbf16>
    %c1_46 = arith.constant 1 : index
    %c0_47 = arith.constant 0 : index
    %c0_48 = arith.constant 0 : index
    %76 = vector.load %arg8[%c1_46, %c0_47, %c0_48] : memref<4x8x32xbf16, #tpu.memory_space<vmem>>, vector<1x8x32xbf16>
    %77 = vector.shape_cast %76 : vector<1x8x32xbf16> to vector<8x32xbf16>
    %cst_49 = arith.constant dense<0.000000e+00> : vector<8x32xf32>
    %78 = tpu.matmul %75, %77, %cst_49 {dimension_numbers = #tpu.dot_dimension_numbers<[1], [0], [0], [1], [0, 0, 1, 1], [], []>} : vector<8x8xbf16>, vector<8x32xbf16>, vector<8x32xf32> -> vector<8x32xf32>
    %79 = arith.addf %53, %78 : vector<8x32xf32>
    %c2 = arith.constant 2 : index
    %c0_50 = arith.constant 0 : index
    %c0_51 = arith.constant 0 : index
    %80 = vector.load %arg7[%c2, %c0_50, %c0_51] : memref<4x32x8xbf16, #tpu.memory_space<vmem>>, vector<1x32x8xbf16>
    %81 = vector.shape_cast %80 : vector<1x32x8xbf16> to vector<32x8xbf16>
    %cst_52 = arith.constant dense<0.000000e+00> : vector<8x8xf32>
    %82 = tpu.matmul %26, %81, %cst_52 {dimension_numbers = #tpu.dot_dimension_numbers<[1], [0], [0], [1], [0, 0, 1, 1], [], []>} : vector<8x32xbf16>, vector<32x8xbf16>, vector<8x8xf32> -> vector<8x8xf32>
    %83 = arith.truncf %82 : vector<8x8xf32> to vector<8x8xbf16>
    %c0_53 = arith.constant 0 : index
    %c2_54 = arith.constant 2 : index
    %c0_55 = arith.constant 0 : index
    %c0_56 = arith.constant 0 : index
    %84 = vector.load %arg3[%c0_53, %c2_54, %c0_55, %c0_56] : memref<1x4x8x16xbf16, #tpu.memory_space<vmem>>, vector<1x1x8x16xbf16>
    %85 = vector.shape_cast %84 : vector<1x1x8x16xbf16> to vector<8x16xbf16>
    %cst_57 = arith.constant dense<0.000000e+00> : vector<8x16xf32>
    %86 = tpu.matmul %83, %85, %cst_57 {dimension_numbers = #tpu.dot_dimension_numbers<[1], [0], [0], [1], [0, 0, 1, 1], [], []>} : vector<8x8xbf16>, vector<8x16xbf16>, vector<8x16xf32> -> vector<8x16xf32>
    %cst_58 = arith.constant dense<0xFF800000> : vector<8xf32>
    %87 = vector.multi_reduction <maximumf>, %86, %cst_58 [1] : vector<8x16xf32> to vector<8xf32>
    %88 = vector.shape_cast %87 : vector<8xf32> to vector<8x1xf32>
    %89 = vector.broadcast %88 : vector<8x1xf32> to vector<8x16xf32>
    %90 = arith.subf %86, %89 : vector<8x16xf32>
    %91 = math.exp %90 : vector<8x16xf32>
    %cst_59 = arith.constant dense<0.000000e+00> : vector<8xf32>
    %92 = vector.multi_reduction <add>, %91, %cst_59 [1] : vector<8x16xf32> to vector<8xf32>
    %93 = vector.shape_cast %92 : vector<8xf32> to vector<8x1xf32>
    %94 = tpu.reciprocal %93 {approx = true} : vector<8x1xf32> -> vector<8x1xf32>
    %95 = vector.broadcast %94 : vector<8x1xf32> to vector<8x16xf32>
    %96 = arith.mulf %91, %95 : vector<8x16xf32>
    %97 = arith.truncf %96 : vector<8x16xf32> to vector<8x16xbf16>
    %c0_60 = arith.constant 0 : index
    %c2_61 = arith.constant 2 : index
    %c0_62 = arith.constant 0 : index
    %c0_63 = arith.constant 0 : index
    %98 = vector.load %arg4[%c0_60, %c2_61, %c0_62, %c0_63] : memref<1x4x16x8xbf16, #tpu.memory_space<vmem>>, vector<1x1x16x8xbf16>
    %99 = vector.shape_cast %98 : vector<1x1x16x8xbf16> to vector<16x8xbf16>
    %cst_64 = arith.constant dense<0.000000e+00> : vector<8x8xf32>
    %100 = tpu.matmul %97, %99, %cst_64 {dimension_numbers = #tpu.dot_dimension_numbers<[1], [0], [0], [1], [0, 0, 1, 1], [], []>} : vector<8x16xbf16>, vector<16x8xbf16>, vector<8x8xf32> -> vector<8x8xf32>
    %101 = arith.truncf %100 : vector<8x8xf32> to vector<8x8xbf16>
    %c2_65 = arith.constant 2 : index
    %c0_66 = arith.constant 0 : index
    %c0_67 = arith.constant 0 : index
    %102 = vector.load %arg8[%c2_65, %c0_66, %c0_67] : memref<4x8x32xbf16, #tpu.memory_space<vmem>>, vector<1x8x32xbf16>
    %103 = vector.shape_cast %102 : vector<1x8x32xbf16> to vector<8x32xbf16>
    %cst_68 = arith.constant dense<0.000000e+00> : vector<8x32xf32>
    %104 = tpu.matmul %101, %103, %cst_68 {dimension_numbers = #tpu.dot_dimension_numbers<[1], [0], [0], [1], [0, 0, 1, 1], [], []>} : vector<8x8xbf16>, vector<8x32xbf16>, vector<8x32xf32> -> vector<8x32xf32>
    %105 = arith.addf %79, %104 : vector<8x32xf32>
    %c3 = arith.constant 3 : index
    %c0_69 = arith.constant 0 : index
    %c0_70 = arith.constant 0 : index
    %106 = vector.load %arg7[%c3, %c0_69, %c0_70] : memref<4x32x8xbf16, #tpu.memory_space<vmem>>, vector<1x32x8xbf16>
    %107 = vector.shape_cast %106 : vector<1x32x8xbf16> to vector<32x8xbf16>
    %cst_71 = arith.constant dense<0.000000e+00> : vector<8x8xf32>
    %108 = tpu.matmul %26, %107, %cst_71 {dimension_numbers = #tpu.dot_dimension_numbers<[1], [0], [0], [1], [0, 0, 1, 1], [], []>} : vector<8x32xbf16>, vector<32x8xbf16>, vector<8x8xf32> -> vector<8x8xf32>
    %109 = arith.truncf %108 : vector<8x8xf32> to vector<8x8xbf16>
    %c0_72 = arith.constant 0 : index
    %c3_73 = arith.constant 3 : index
    %c0_74 = arith.constant 0 : index
    %c0_75 = arith.constant 0 : index
    %110 = vector.load %arg3[%c0_72, %c3_73, %c0_74, %c0_75] : memref<1x4x8x16xbf16, #tpu.memory_space<vmem>>, vector<1x1x8x16xbf16>
    %111 = vector.shape_cast %110 : vector<1x1x8x16xbf16> to vector<8x16xbf16>
    %cst_76 = arith.constant dense<0.000000e+00> : vector<8x16xf32>
    %112 = tpu.matmul %109, %111, %cst_76 {dimension_numbers = #tpu.dot_dimension_numbers<[1], [0], [0], [1], [0, 0, 1, 1], [], []>} : vector<8x8xbf16>, vector<8x16xbf16>, vector<8x16xf32> -> vector<8x16xf32>
    %cst_77 = arith.constant dense<0xFF800000> : vector<8xf32>
    %113 = vector.multi_reduction <maximumf>, %112, %cst_77 [1] : vector<8x16xf32> to vector<8xf32>
    %114 = vector.shape_cast %113 : vector<8xf32> to vector<8x1xf32>
    %115 = vector.broadcast %114 : vector<8x1xf32> to vector<8x16xf32>
    %116 = arith.subf %112, %115 : vector<8x16xf32>
    %117 = math.exp %116 : vector<8x16xf32>
    %cst_78 = arith.constant dense<0.000000e+00> : vector<8xf32>
    %118 = vector.multi_reduction <add>, %117, %cst_78 [1] : vector<8x16xf32> to vector<8xf32>
    %119 = vector.shape_cast %118 : vector<8xf32> to vector<8x1xf32>
    %120 = tpu.reciprocal %119 {approx = true} : vector<8x1xf32> -> vector<8x1xf32>
    %121 = vector.broadcast %120 : vector<8x1xf32> to vector<8x16xf32>
    %122 = arith.mulf %117, %121 : vector<8x16xf32>
    %123 = arith.truncf %122 : vector<8x16xf32> to vector<8x16xbf16>
    %c0_79 = arith.constant 0 : index
    %c3_80 = arith.constant 3 : index
    %c0_81 = arith.constant 0 : index
    %c0_82 = arith.constant 0 : index
    %124 = vector.load %arg4[%c0_79, %c3_80, %c0_81, %c0_82] : memref<1x4x16x8xbf16, #tpu.memory_space<vmem>>, vector<1x1x16x8xbf16>
    %125 = vector.shape_cast %124 : vector<1x1x16x8xbf16> to vector<16x8xbf16>
    %cst_83 = arith.constant dense<0.000000e+00> : vector<8x8xf32>
    %126 = tpu.matmul %123, %125, %cst_83 {dimension_numbers = #tpu.dot_dimension_numbers<[1], [0], [0], [1], [0, 0, 1, 1], [], []>} : vector<8x16xbf16>, vector<16x8xbf16>, vector<8x8xf32> -> vector<8x8xf32>
    %127 = arith.truncf %126 : vector<8x8xf32> to vector<8x8xbf16>
    %c3_84 = arith.constant 3 : index
    %c0_85 = arith.constant 0 : index
    %c0_86 = arith.constant 0 : index
    %128 = vector.load %arg8[%c3_84, %c0_85, %c0_86] : memref<4x8x32xbf16, #tpu.memory_space<vmem>>, vector<1x8x32xbf16>
    %129 = vector.shape_cast %128 : vector<1x8x32xbf16> to vector<8x32xbf16>
    %cst_87 = arith.constant dense<0.000000e+00> : vector<8x32xf32>
    %130 = tpu.matmul %127, %129, %cst_87 {dimension_numbers = #tpu.dot_dimension_numbers<[1], [0], [0], [1], [0, 0, 1, 1], [], []>} : vector<8x8xbf16>, vector<8x32xbf16>, vector<8x32xf32> -> vector<8x32xf32>
    %131 = arith.addf %105, %130 : vector<8x32xf32>
    %132 = arith.addf %1, %131 : vector<8x32xf32>
    %c0_88 = arith.constant 0 : index
    %c0_89 = arith.constant 0 : index
    %133 = vector.load %arg9[%c0_88, %c0_89] : memref<1x32xf32, #tpu.memory_space<vmem>>, vector<1x32xf32>
    %134 = vector.broadcast %133 : vector<1x32xf32> to vector<8x32xf32>
    %135 = arith.addf %132, %134 : vector<8x32xf32>
    %c0_90 = arith.constant 0 : index
    %c0_91 = arith.constant 0 : index
    %136 = vector.load %arg10[%c0_90, %c0_91] : memref<1x32xf32, #tpu.memory_space<vmem>>, vector<1x32xf32>
    %c0_92 = arith.constant 0 : index
    %c0_93 = arith.constant 0 : index
    %137 = vector.load %arg11[%c0_92, %c0_93] : memref<1x32xf32, #tpu.memory_space<vmem>>, vector<1x32xf32>
    %cst_94 = arith.constant dense<0.000000e+00> : vector<8xf32>
    %138 = vector.multi_reduction <add>, %135, %cst_94 [1] : vector<8x32xf32> to vector<8xf32>
    %139 = vector.shape_cast %138 : vector<8xf32> to vector<8x1xf32>
    %cst_95 = arith.constant 3.200000e+01 : f32
    %140 = vector.broadcast %cst_95 : f32 to vector<8x1xf32>
    %141 = arith.divf %139, %140 : vector<8x1xf32>
    %142 = vector.broadcast %141 : vector<8x1xf32> to vector<8x32xf32>
    %143 = arith.subf %135, %142 : vector<8x32xf32>
    %144 = arith.mulf %143, %143 : vector<8x32xf32>
    %cst_96 = arith.constant dense<0.000000e+00> : vector<8xf32>
    %145 = vector.multi_reduction <add>, %144, %cst_96 [1] : vector<8x32xf32> to vector<8xf32>
    %146 = vector.shape_cast %145 : vector<8xf32> to vector<8x1xf32>
    %cst_97 = arith.constant 3.200000e+01 : f32
    %147 = vector.broadcast %cst_97 : f32 to vector<8x1xf32>
    %148 = arith.divf %146, %147 : vector<8x1xf32>
    %149 = vector.broadcast %141 : vector<8x1xf32> to vector<8x32xf32>
    %150 = arith.subf %135, %149 : vector<8x32xf32>
    %cst_98 = arith.constant 9.99999974E-6 : f32
    %151 = vector.broadcast %cst_98 : f32 to vector<8x1xf32>
    %152 = arith.addf %148, %151 : vector<8x1xf32>
    %153 = math.rsqrt %152 : vector<8x1xf32>
    %154 = vector.broadcast %153 : vector<8x1xf32> to vector<8x32xf32>
    %155 = arith.mulf %150, %154 : vector<8x32xf32>
    %156 = vector.broadcast %136 : vector<1x32xf32> to vector<8x32xf32>
    %157 = arith.mulf %155, %156 : vector<8x32xf32>
    %158 = vector.broadcast %137 : vector<1x32xf32> to vector<8x32xf32>
    %159 = arith.addf %157, %158 : vector<8x32xf32>
    %160 = arith.truncf %159 : vector<8x32xf32> to vector<8x32xbf16>
    %c0_99 = arith.constant 0 : index
    %c0_100 = arith.constant 0 : index
    %161 = vector.load %arg12[%c0_99, %c0_100] : memref<32x128xbf16, #tpu.memory_space<vmem>>, vector<32x128xbf16>
    %cst_101 = arith.constant dense<0.000000e+00> : vector<8x128xf32>
    %162 = tpu.matmul %160, %161, %cst_101 {dimension_numbers = #tpu.dot_dimension_numbers<[1], [0], [0], [1], [0, 0, 1, 1], [], []>} : vector<8x32xbf16>, vector<32x128xbf16>, vector<8x128xf32> -> vector<8x128xf32>
    %c0_102 = arith.constant 0 : index
    %c0_103 = arith.constant 0 : index
    %163 = vector.load %arg13[%c0_102, %c0_103] : memref<1x128xf32, #tpu.memory_space<vmem>>, vector<1x128xf32>
    %164 = vector.broadcast %163 : vector<1x128xf32> to vector<8x128xf32>
    %165 = arith.addf %162, %164 : vector<8x128xf32>
    %cst_104 = arith.constant 0.000000e+00 : f32
    %166 = vector.broadcast %cst_104 : f32 to vector<8x128xf32>
    %167 = arith.maximumf %165, %166 : vector<8x128xf32>
    %168 = arith.truncf %167 : vector<8x128xf32> to vector<8x128xbf16>
    %c0_105 = arith.constant 0 : index
    %c0_106 = arith.constant 0 : index
    %169 = vector.load %arg14[%c0_105, %c0_106] : memref<128x32xbf16, #tpu.memory_space<vmem>>, vector<128x32xbf16>
    %cst_107 = arith.constant dense<0.000000e+00> : vector<8x32xf32>
    %170 = tpu.matmul %168, %169, %cst_107 {dimension_numbers = #tpu.dot_dimension_numbers<[1], [0], [0], [1], [0, 0, 1, 1], [], []>} : vector<8x128xbf16>, vector<128x32xbf16>, vector<8x32xf32> -> vector<8x32xf32>
    %c0_108 = arith.constant 0 : index
    %c0_109 = arith.constant 0 : index
    %171 = vector.load %arg15[%c0_108, %c0_109] : memref<1x32xf32, #tpu.memory_space<vmem>>, vector<1x32xf32>
    %172 = vector.broadcast %171 : vector<1x32xf32> to vector<8x32xf32>
    %173 = arith.addf %170, %172 : vector<8x32xf32>
    %c0_110 = arith.constant 0 : index
    %c0_111 = arith.constant 0 : index
    %174 = vector.load %arg16[%c0_110, %c0_111] : memref<1x32xf32, #tpu.memory_space<vmem>>, vector<1x32xf32>
    %c0_112 = arith.constant 0 : index
    %c0_113 = arith.constant 0 : index
    %175 = vector.load %arg17[%c0_112, %c0_113] : memref<1x32xf32, #tpu.memory_space<vmem>>, vector<1x32xf32>
    %cst_114 = arith.constant dense<0.000000e+00> : vector<8xf32>
    %176 = vector.multi_reduction <add>, %135, %cst_114 [1] : vector<8x32xf32> to vector<8xf32>
    %177 = vector.shape_cast %176 : vector<8xf32> to vector<8x1xf32>
    %cst_115 = arith.constant 3.200000e+01 : f32
    %178 = vector.broadcast %cst_115 : f32 to vector<8x1xf32>
    %179 = arith.divf %177, %178 : vector<8x1xf32>
    %180 = vector.broadcast %179 : vector<8x1xf32> to vector<8x32xf32>
    %181 = arith.subf %135, %180 : vector<8x32xf32>
    %182 = arith.mulf %181, %181 : vector<8x32xf32>
    %cst_116 = arith.constant dense<0.000000e+00> : vector<8xf32>
    %183 = vector.multi_reduction <add>, %182, %cst_116 [1] : vector<8x32xf32> to vector<8xf32>
    %184 = vector.shape_cast %183 : vector<8xf32> to vector<8x1xf32>
    %cst_117 = arith.constant 3.200000e+01 : f32
    %185 = vector.broadcast %cst_117 : f32 to vector<8x1xf32>
    %186 = arith.divf %184, %185 : vector<8x1xf32>
    %187 = vector.broadcast %179 : vector<8x1xf32> to vector<8x32xf32>
    %188 = arith.subf %135, %187 : vector<8x32xf32>
    %cst_118 = arith.constant 9.99999974E-6 : f32
    %189 = vector.broadcast %cst_118 : f32 to vector<8x1xf32>
    %190 = arith.addf %186, %189 : vector<8x1xf32>
    %191 = math.rsqrt %190 : vector<8x1xf32>
    %192 = vector.broadcast %191 : vector<8x1xf32> to vector<8x32xf32>
    %193 = arith.mulf %188, %192 : vector<8x32xf32>
    %194 = vector.broadcast %174 : vector<1x32xf32> to vector<8x32xf32>
    %195 = arith.mulf %193, %194 : vector<8x32xf32>
    %196 = vector.broadcast %175 : vector<1x32xf32> to vector<8x32xf32>
    %197 = arith.addf %195, %196 : vector<8x32xf32>
    %198 = arith.truncf %197 : vector<8x32xf32> to vector<8x32xbf16>
    %c0_119 = arith.constant 0 : index
    %c0_120 = arith.constant 0 : index
    %199 = vector.load %arg18[%c0_119, %c0_120] : memref<32x128xbf16, #tpu.memory_space<vmem>>, vector<32x128xbf16>
    %cst_121 = arith.constant dense<0.000000e+00> : vector<8x128xf32>
    %200 = tpu.matmul %198, %199, %cst_121 {dimension_numbers = #tpu.dot_dimension_numbers<[1], [0], [0], [1], [0, 0, 1, 1], [], []>} : vector<8x32xbf16>, vector<32x128xbf16>, vector<8x128xf32> -> vector<8x128xf32>
    %c0_122 = arith.constant 0 : index
    %c0_123 = arith.constant 0 : index
    %201 = vector.load %arg19[%c0_122, %c0_123] : memref<1x128xf32, #tpu.memory_space<vmem>>, vector<1x128xf32>
    %202 = vector.broadcast %201 : vector<1x128xf32> to vector<8x128xf32>
    %203 = arith.addf %200, %202 : vector<8x128xf32>
    %cst_124 = arith.constant 5.000000e-01 : f32
    %204 = vector.broadcast %cst_124 : f32 to vector<8x128xf32>
    %205 = arith.mulf %204, %203 : vector<8x128xf32>
    %cst_125 = arith.constant 0.707106769 : f32
    %206 = vector.broadcast %cst_125 : f32 to vector<8x128xf32>
    %207 = arith.mulf %203, %206 : vector<8x128xf32>
    %208 = math.erf %207 : vector<8x128xf32>
    %cst_126 = arith.constant 1.000000e+00 : f32
    %209 = vector.broadcast %cst_126 : f32 to vector<8x128xf32>
    %210 = arith.addf %209, %208 : vector<8x128xf32>
    %211 = arith.mulf %205, %210 : vector<8x128xf32>
    %212 = arith.truncf %211 : vector<8x128xf32> to vector<8x128xbf16>
    %c0_127 = arith.constant 0 : index
    %c0_128 = arith.constant 0 : index
    %213 = vector.load %arg20[%c0_127, %c0_128] : memref<128x32xbf16, #tpu.memory_space<vmem>>, vector<128x32xbf16>
    %cst_129 = arith.constant dense<0.000000e+00> : vector<8x32xf32>
    %214 = tpu.matmul %212, %213, %cst_129 {dimension_numbers = #tpu.dot_dimension_numbers<[1], [0], [0], [1], [0, 0, 1, 1], [], []>} : vector<8x128xbf16>, vector<128x32xbf16>, vector<8x32xf32> -> vector<8x32xf32>
    %c0_130 = arith.constant 0 : index
    %c0_131 = arith.constant 0 : index
    %215 = vector.load %arg21[%c0_130, %c0_131] : memref<1x32xf32, #tpu.memory_space<vmem>>, vector<1x32xf32>
    %216 = vector.broadcast %215 : vector<1x32xf32> to vector<8x32xf32>
    %217 = arith.addf %214, %216 : vector<8x32xf32>
    %cst_132 = arith.constant 5.000000e-01 : f32
    %218 = vector.broadcast %cst_132 : f32 to vector<8x32xf32>
    %219 = arith.mulf %173, %218 : vector<8x32xf32>
    %220 = arith.addf %135, %219 : vector<8x32xf32>
    %221 = arith.addf %220, %217 : vector<8x32xf32>
    %c0_133 = arith.constant 0 : index
    %c0_134 = arith.constant 0 : index
    %c0_135 = arith.constant 0 : index
    %222 = vector.load %arg22[%c0_133, %c0_134, %c0_135] : memref<1x8x32xf32, #tpu.memory_space<vmem>>, vector<1x8x32xf32>
    %223 = vector.shape_cast %222 : vector<1x8x32xf32> to vector<8x32xf32>
    %224 = vector.shape_cast %221 : vector<8x32xf32> to vector<1x8x32xf32>
    tpu.vector_store %arg22[%c0_133, %c0_134, %c0_135], %224 {strides = array<i32>} : memref<1x8x32xf32, #tpu.memory_space<vmem>>, vector<1x8x32xf32>,
    return
  }
  func.func @transform_0(%arg0: i32, %arg1: i32) -> (i32, i32, i32) {
    %c0_i32 = arith.constant 0 : i32
    %c0_i32_0 = arith.constant 0 : i32
    return %arg0, %arg1, %c0_i32 : i32, i32, i32
  }
  func.func @transform_1(%arg0: i32, %arg1: i32) -> (i32, i32, i32, i32) {
    %c0_i32 = arith.constant 0 : i32
    %c0_i32_0 = arith.constant 0 : i32
    %c0_i32_1 = arith.constant 0 : i32
    %c0_i32_2 = arith.constant 0 : i32
    return %arg0, %c0_i32, %c0_i32_0, %c0_i32_1 : i32, i32, i32, i32
  }
  func.func @transform_2(%arg0: i32, %arg1: i32) -> (i32, i32, i32, i32) {
    %c0_i32 = arith.constant 0 : i32
    %c0_i32_0 = arith.constant 0 : i32
    %c0_i32_1 = arith.constant 0 : i32
    %c0_i32_2 = arith.constant 0 : i32
    return %arg0, %c0_i32, %c0_i32_0, %c0_i32_1 : i32, i32, i32, i32
  }
  func.func @transform_3(%arg0: i32, %arg1: i32) -> (i32, i32) {
    %c0_i32 = arith.constant 0 : i32
    %c0_i32_0 = arith.constant 0 : i32
    %c0_i32_1 = arith.constant 0 : i32
    return %c0_i32, %c0_i32_0 : i32, i32
  }
  func.func @transform_4(%arg0: i32, %arg1: i32) -> (i32, i32) {
    %c0_i32 = arith.constant 0 : i32
    %c0_i32_0 = arith.constant 0 : i32
    %c0_i32_1 = arith.constant 0 : i32
    return %c0_i32, %c0_i32_0 : i32, i32
  }
  func.func @transform_5(%arg0: i32, %arg1: i32) -> (i32, i32, i32) {
    %c0_i32 = arith.constant 0 : i32
    %c0_i32_0 = arith.constant 0 : i32
    %c0_i32_1 = arith.constant 0 : i32
    %c0_i32_2 = arith.constant 0 : i32
    return %c0_i32, %c0_i32_0, %c0_i32_1 : i32, i32, i32
  }
  func.func @transform_6(%arg0: i32, %arg1: i32) -> (i32, i32, i32) {
    %c0_i32 = arith.constant 0 : i32
    %c0_i32_0 = arith.constant 0 : i32
    %c0_i32_1 = arith.constant 0 : i32
    %c0_i32_2 = arith.constant 0 : i32
    return %c0_i32, %c0_i32_0, %c0_i32_1 : i32, i32, i32
  }
  func.func @transform_7(%arg0: i32, %arg1: i32) -> (i32, i32) {
    %c0_i32 = arith.constant 0 : i32
    %c0_i32_0 = arith.constant 0 : i32
    %c0_i32_1 = arith.constant 0 : i32
    return %c0_i32, %c0_i32_0 : i32, i32
  }
  func.func @transform_8(%arg0: i32, %arg1: i32) -> (i32, i32) {
    %c0_i32 = arith.constant 0 : i32
    %c0_i32_0 = arith.constant 0 : i32
    %c0_i32_1 = arith.constant 0 : i32
    return %c0_i32, %c0_i32_0 : i32, i32
  }
  func.func @transform_9(%arg0: i32, %arg1: i32) -> (i32, i32) {
    %c0_i32 = arith.constant 0 : i32
    %c0_i32_0 = arith.constant 0 : i32
    %c0_i32_1 = arith.constant 0 : i32
    return %c0_i32, %c0_i32_0 : i32, i32
  }
  func.func @transform_10(%arg0: i32, %arg1: i32) -> (i32, i32) {
    %c0_i32 = arith.constant 0 : i32
    %c0_i32_0 = arith.constant 0 : i32
    %c0_i32_1 = arith.constant 0 : i32
    return %c0_i32, %c0_i32_0 : i32, i32
  }
  func.func @transform_11(%arg0: i32, %arg1: i32) -> (i32, i32) {
    %c0_i32 = arith.constant 0 : i32
    %c0_i32_0 = arith.constant 0 : i32
    %c0_i32_1 = arith.constant 0 : i32
    return %c0_i32, %c0_i32_0 : i32, i32
  }
  func.func @transform_12(%arg0: i32, %arg1: i32) -> (i32, i32) {
    %c0_i32 = arith.constant 0 : i32
    %c0_i32_0 = arith.constant 0 : i32
    %c0_i32_1 = arith.constant 0 : i32
    return %c0_i32, %c0_i32_0 : i32, i32
  }
  func.func @transform_13(%arg0: i32, %arg1: i32) -> (i32, i32) {
    %c0_i32 = arith.constant 0 : i32
    %c0_i32_0 = arith.constant 0 : i32
    %c0_i32_1 = arith.constant 0 : i32
    return %c0_i32, %c0_i32_0 : i32, i32
  }
  func.func @transform_14(%arg0: i32, %arg1: i32) -> (i32, i32) {
    %c0_i32 = arith.constant 0 : i32
    %c0_i32_0 = arith.constant 0 : i32
    %c0_i32_1 = arith.constant 0 : i32
    return %c0_i32, %c0_i32_0 : i32, i32
  }
  func.func @transform_15(%arg0: i32, %arg1: i32) -> (i32, i32) {
    %c0_i32 = arith.constant 0 : i32
    %c0_i32_0 = arith.constant 0 : i32
    %c0_i32_1 = arith.constant 0 : i32
    return %c0_i32, %c0_i32_0 : i32, i32
  }
  func.func @transform_16(%arg0: i32, %arg1: i32) -> (i32, i32) {
    %c0_i32 = arith.constant 0 : i32
    %c0_i32_0 = arith.constant 0 : i32
    %c0_i32_1 = arith.constant 0 : i32
    return %c0_i32, %c0_i32_0 : i32, i32
  }
  func.func @transform_17(%arg0: i32, %arg1: i32) -> (i32, i32) {
    %c0_i32 = arith.constant 0 : i32
    %c0_i32_0 = arith.constant 0 : i32
    %c0_i32_1 = arith.constant 0 : i32
    return %c0_i32, %c0_i32_0 : i32, i32
  }
  func.func @transform_18(%arg0: i32, %arg1: i32) -> (i32, i32) {
    %c0_i32 = arith.constant 0 : i32
    %c0_i32_0 = arith.constant 0 : i32
    %c0_i32_1 = arith.constant 0 : i32
    return %c0_i32, %c0_i32_0 : i32, i32
  }
  func.func @transform_19(%arg0: i32, %arg1: i32) -> (i32, i32) {
    %c0_i32 = arith.constant 0 : i32
    %c0_i32_0 = arith.constant 0 : i32
    %c0_i32_1 = arith.constant 0 : i32
    return %c0_i32, %c0_i32_0 : i32, i32
  }
  func.func @transform_20(%arg0: i32, %arg1: i32) -> (i32, i32, i32) {
    %c0_i32 = arith.constant 0 : i32
    %c0_i32_0 = arith.constant 0 : i32
    return %arg0, %arg1, %c0_i32 : i32, i32, i32
  }
}

module attributes {stable_mosaic.version = 11 : i64} {
  func.func @block_kernel(%arg0: i32, %arg1: i32, %arg2: memref<1x8x32xf32, #tpu.memory_space<vmem>>, %arg3: memref<1x4x8x16xbf16, #tpu.memory_space<vmem>>, %arg4: memref<1x4x16x8xbf16, #tpu.memory_space<vmem>>, %arg5: memref<1x32xf32, #tpu.memory_space<vmem>>, %arg6: memref<1x32xf32, #tpu.memory_space<vmem>>, %arg7: memref<4x32x8xbf16, #tpu.memory_space<vmem>>, %arg8: memref<4x8x32xbf16, #tpu.memory_space<vmem>>, %arg9: memref<1x32xf32, #tpu.memory_space<vmem>>, %arg10: memref<1x32xf32, #tpu.memory_space<vmem>>, %arg11: memref<1x32xf32, #tpu.memory_space<vmem>>, %arg12: memref<32x128xbf16, #tpu.memory_space<vmem>>, %arg13: memref<1x128xf32, #tpu.memory_space<vmem>>, %arg14: memref<128x32xbf16, #tpu.memory_space<vmem>>, %arg15: memref<1x32xf32, #tpu.memory_space<vmem>>, %arg16: memref<1x32xf32, #tpu.memory_space<vmem>>, %arg17: memref<1x32xf32, #tpu.memory_space<vmem>>, %arg18: memref<32x128xbf16, #tpu.memory_space<vmem>>, %arg19: memref<1x128xf32, #tpu.memory_space<vmem>>, %arg20: memref<128x32xbf16, #tpu.memory_space<vmem>>, %arg21: memref<1x32xf32, #tpu.memory_space<vmem>>, %arg22: memref<1x8x32xf32, #tpu.memory_space<vmem>>) attributes {dimension_semantics = [#tpu.dimension_semantics<parallel>, #tpu.dimension_semantics<parallel>], iteration_bounds = array<i64: 2, 2>, scalar_prefetch = 0 : i64, scratch_operands = 0 : i64, tpu.core_type = #tpu.core_type<tc>, window_params = [{transform_indices = @transform_0, window_bounds = array<i64: 1, 8, 32>}, {transform_indices = @transform_1, window_bounds = array<i64: 1, 4, 8, 16>}, {transform_indices = @transform_2, window_bounds = array<i64: 1, 4, 16, 8>}, {pipeline_mode = #tpu.pipeline_mode<synchronous>, transform_indices = @transform_3, window_bounds = array<i64: 1, 32>}, {pipeline_mode = #tpu.pipeline_mode<synchronous>, transform_indices = @transform_4, window_bounds = array<i64: 1, 32>}, {pipeline_mode = #tpu.pipeline_mode<synchronous>, transform_indices = @transform_5, window_bounds = array<i64: 4, 32, 8>}, {pipeline_mode = #tpu.pipeline_mode<synchronous>, transform_indices = @transform_6, window_bounds = array<i64: 4, 8, 32>}, {pipeline_mode = #tpu.pipeline_mode<synchronous>, transform_indices = @transform_7, window_bounds = array<i64: 1, 32>}, {pipeline_mode = #tpu.pipeline_mode<synchronous>, transform_indices = @transform_8, window_bounds = array<i64: 1, 32>}, {pipeline_mode = #tpu.pipeline_mode<synchronous>, transform_indices = @transform_9, window_bounds = array<i64: 1, 32>}, {pipeline_mode = #tpu.pipeline_mode<synchronous>, transform_indices = @transform_10, window_bounds = array<i64: 32, 128>}, {pipeline_mode = #tpu.pipeline_mode<synchronous>, transform_indices = @transform_11, window_bounds = array<i64: 1, 128>}, {pipeline_mode = #tpu.pipeline_mode<synchronous>, transform_indices = @transform_12, window_bounds = array<i64: 128, 32>}, {pipeline_mode = #tpu.pipeline_mode<synchronous>, transform_indices = @transform_13, window_bounds = array<i64: 1, 32>}, {pipeline_mode = #tpu.pipeline_mode<synchronous>, transform_indices = @transform_14, window_bounds = array<i64: 1, 32>}, {pipeline_mode = #tpu.pipeline_mode<synchronous>, transform_indices = @transform_15, window_bounds = array<i64: 1, 32>}, {pipeline_mode = #tpu.pipeline_mode<synchronous>, transform_indices = @transform_16, window_bounds = array<i64: 32, 128>}, {pipeline_mode = #tpu.pipeline_mode<synchronous>, transform_indices = @transform_17, window_bounds = array<i64: 1, 128>}, {pipeline_mode = #tpu.pipeline_mode<synchronous>, transform_indices = @transform_18, window_bounds = array<i64: 128, 32>}, {pipeline_mode = #tpu.pipeline_mode<synchronous>, transform_indices = @transform_19, window_bounds = array<i64: 1, 32>}, {transform_indices = @transform_20, window_bounds = array<i64: 1, 8, 32>}]} {
    %c0 = arith.constant 0 : index
    %c0_0 = arith.constant 0 : index
    %c0_1 = arith.constant 0 : index
    %0 = vector.load %arg2[%c0, %c0_0, %c0_1] : memref<1x8x32xf32, #tpu.memory_space<vmem>>, vector<1x8x32xf32>
    %1 = vector.shape_cast %0 : vector<1x8x32xf32> to vector<8x32xf32>
    %c0_2 = arith.constant 0 : index
    %c0_3 = arith.constant 0 : index
    %2 = vector.load %arg5[%c0_2, %c0_3] : memref<1x32xf32, #tpu.memory_space<vmem>>, vector<1x32xf32>
    %c0_4 = arith.constant 0 : index
    %c0_5 = arith.constant 0 : index
    %3 = vector.load %arg6[%c0_4, %c0_5] : memref<1x32xf32, #tpu.memory_space<vmem>>, vector<1x32xf32>
    %cst = arith.constant dense<0.000000e+00> : vector<8xf32>
    %4 = vector.multi_reduction <add>, %1, %cst [1] : vector<8x32xf32> to vector<8xf32>
    %5 = vector.shape_cast %4 : vector<8xf32> to vector<8x1xf32>
    %cst_6 = arith.constant 3.200000e+01 : f32
    %6 = vector.broadcast %cst_6 : f32 to vector<8x1xf32>
    %7 = arith.divf %5, %6 : vector<8x1xf32>
    %8 = vector.broadcast %7 : vector<8x1xf32> to vector<8x32xf32>
    %9 = arith.subf %1, %8 : vector<8x32xf32>
    %10 = arith.mulf %9, %9 : vector<8x32xf32>
    %cst_7 = arith.constant dense<0.000000e+00> : vector<8xf32>
    %11 = vector.multi_reduction <add>, %10, %cst_7 [1] : vector<8x32xf32> to vector<8xf32>
    %12 = vector.shape_cast %11 : vector<8xf32> to vector<8x1xf32>
    %cst_8 = arith.constant 3.200000e+01 : f32
    %13 = vector.broadcast %cst_8 : f32 to vector<8x1xf32>
    %14 = arith.divf %12, %13 : vector<8x1xf32>
    %15 = vector.broadcast %7 : vector<8x1xf32> to vector<8x32xf32>
    %16 = arith.subf %1, %15 : vector<8x32xf32>
    %cst_9 = arith.constant 9.99999974E-6 : f32
    %17 = vector.broadcast %cst_9 : f32 to vector<8x1xf32>
    %18 = arith.addf %14, %17 : vector<8x1xf32>
    %19 = math.rsqrt %18 : vector<8x1xf32>
    %20 = vector.broadcast %19 : vector<8x1xf32> to vector<8x32xf32>
    %21 = arith.mulf %16, %20 : vector<8x32xf32>
    %22 = vector.broadcast %2 : vector<1x32xf32> to vector<8x32xf32>
    %23 = arith.mulf %21, %22 : vector<8x32xf32>
    %24 = vector.broadcast %3 : vector<1x32xf32> to vector<8x32xf32>
    %25 = arith.addf %23, %24 : vector<8x32xf32>
    %26 = arith.truncf %25 : vector<8x32xf32> to vector<8x32xbf16>
    %cst_10 = arith.constant 0.000000e+00 : f32
    %27 = vector.broadcast %cst_10 : f32 to vector<8x32xf32>
    %c0_11 = arith.constant 0 : index
    %c0_12 = arith.constant 0 : index
    %c0_13 = arith.constant 0 : index
    %28 = vector.load %arg7[%c0_11, %c0_12, %c0_13] : memref<4x32x8xbf16, #tpu.memory_space<vmem>>, vector<1x32x8xbf16>
    %29 = vector.shape_cast %28 : vector<1x32x8xbf16> to vector<32x8xbf16>
    %cst_14 = arith.constant dense<0.000000e+00> : vector<8x8xf32>
    %30 = tpu.matmul %26, %29, %cst_14 {dimension_numbers = #tpu.dot_dimension_numbers<[1], [0], [0], [1], [0, 0, 1, 1], [], []>} : vector<8x32xbf16>, vector<32x8xbf16>, vector<8x8xf32> -> vector<8x8xf32>
    %31 = arith.truncf %30 : vector<8x8xf32> to vector<8x8xbf16>
    %c0_15 = arith.constant 0 : index
    %c0_16 = arith.constant 0 : index
    %c0_17 = arith.constant 0 : index
    %c0_18 = arith.constant 0 : index
    %32 = vector.load %arg3[%c0_15, %c0_16, %c0_17, %c0_18] : memref<1x4x8x16xbf16, #tpu.memory_space<vmem>>, vector<1x1x8x16xbf16>
    %33 = vector.shape_cast %32 : vector<1x1x8x16xbf16> to vector<8x16xbf16>
    %cst_19 = arith.constant dense<0.000000e+00> : vector<8x16xf32>
    %34 = tpu.matmul %31, %33, %cst_19 {dimension_numbers = #tpu.dot_dimension_numbers<[1], [0], [0], [1], [0, 0, 1, 1], [], []>} : vector<8x8xbf16>, vector<8x16xbf16>, vector<8x16xf32> -> vector<8x16xf32>
    %cst_20 = arith.constant dense<0xFF800000> : vector<8xf32>
    %35 = vector.multi_reduction <maximumf>, %34, %cst_20 [1] : vector<8x16xf32> to vector<8xf32>
    %36 = vector.shape_cast %35 : vector<8xf32> to vector<8x1xf32>
    %37 = vector.broadcast %36 : vector<8x1xf32> to vector<8x16xf32>
    %38 = arith.subf %34, %37 : vector<8x16xf32>
    %39 = math.exp %38 : vector<8x16xf32>
    %cst_21 = arith.constant dense<0.000000e+00> : vector<8xf32>
    %40 = vector.multi_reduction <add>, %39, %cst_21 [1] : vector<8x16xf32> to vector<8xf32>
    %41 = vector.shape_cast %40 : vector<8xf32> to vector<8x1xf32>
    %42 = tpu.reciprocal %41 {approx = true} : vector<8x1xf32> -> vector<8x1xf32>
    %43 = vector.broadcast %42 : vector<8x1xf32> to vector<8x16xf32>
    %44 = arith.mulf %39, %43 : vector<8x16xf32>
    %45 = arith.truncf %44 : vector<8x16xf32> to vector<8x16xbf16>
    %c0_22 = arith.constant 0 : index
    %c0_23 = arith.constant 0 : index
    %c0_24 = arith.constant 0 : index
    %c0_25 = arith.constant 0 : index
    %46 = vector.load %arg4[%c0_22, %c0_23, %c0_24, %c0_25] : memref<1x4x16x8xbf16, #tpu.memory_space<vmem>>, vector<1x1x16x8xbf16>
    %47 = vector.shape_cast %46 : vector<1x1x16x8xbf16> to vector<16x8xbf16>
    %cst_26 = arith.constant dense<0.000000e+00> : vector<8x8xf32>
    %48 = tpu.matmul %45, %47, %cst_26 {dimension_numbers = #tpu.dot_dimension_numbers<[1], [0], [0], [1], [0, 0, 1, 1], [], []>} : vector<8x16xbf16>, vector<16x8xbf16>, vector<8x8xf32> -> vector<8x8xf32>
    %49 = arith.truncf %48 : vector<8x8xf32> to vector<8x8xbf16>
    %c0_27 = arith.constant 0 : index
    %c0_28 = arith.constant 0 : index
    %c0_29 = arith.constant 0 : index
    %50 = vector.load %arg8[%c0_27, %c0_28, %c0_29] : memref<4x8x32xbf16, #tpu.memory_space<vmem>>, vector<1x8x32xbf16>
    %51 = vector.shape_cast %50 : vector<1x8x32xbf16> to vector<8x32xbf16>
    %cst_30 = arith.constant dense<0.000000e+00> : vector<8x32xf32>
    %52 = tpu.matmul %49, %51, %cst_30 {dimension_numbers = #tpu.dot_dimension_numbers<[1], [0], [0], [1], [0, 0, 1, 1], [], []>} : vector<8x8xbf16>, vector<8x32xbf16>, vector<8x32xf32> -> vector<8x32xf32>
    %53 = arith.addf %27, %52 : vector<8x32xf32>
    %c1 = arith.constant 1 : index
    %c0_31 = arith.constant 0 : index
    %c0_32 = arith.constant 0 : index
    %54 = vector.load %arg7[%c1, %c0_31, %c0_32] : memref<4x32x8xbf16, #tpu.memory_space<vmem>>, vector<1x32x8xbf16>
    %55 = vector.shape_cast %54 : vector<1x32x8xbf16> to vector<32x8xbf16>
    %cst_33 = arith.constant dense<0.000000e+00> : vector<8x8xf32>
    %56 = tpu.matmul %26, %55, %cst_33 {dimension_numbers = #tpu.dot_dimension_numbers<[1], [0], [0], [1], [0, 0, 1, 1], [], []>} : vector<8x32xbf16>, vector<32x8xbf16>, vector<8x8xf32> -> vector<8x8xf32>
    %57 = arith.truncf %56 : vector<8x8xf32> to vector<8x8xbf16>
    %c0_34 = arith.constant 0 : index
    %c1_35 = arith.constant 1 : index
    %c0_36 = arith.constant 0 : index
    %c0_37 = arith.constant 0 : index
    %58 = vector.load %arg3[%c0_34, %c1_35, %c0_36, %c0_37] : memref<1x4x8x16xbf16, #tpu.memory_space<vmem>>, vector<1x1x8x16xbf16>
    %59 = vector.shape_cast %58 : vector<1x1x8x16xbf16> to vector<8x16xbf16>
    %cst_38 = arith.constant dense<0.000000e+00> : vector<8x16xf32>
    %60 = tpu.matmul %57, %59, %cst_38 {dimension_numbers = #tpu.dot_dimension_numbers<[1], [0], [0], [1], [0, 0, 1, 1], [], []>} : vector<8x8xbf16>, vector<8x16xbf16>, vector<8x16xf32> -> vector<8x16xf32>
    %cst_39 = arith.constant dense<0xFF800000> : vector<8xf32>
    %61 = vector.multi_reduction <maximumf>, %60, %cst_39 [1] : vector<8x16xf32> to vector<8xf32>
    %62 = vector.shape_cast %61 : vector<8xf32> to vector<8x1xf32>
    %63 = vector.broadcast %62 : vector<8x1xf32> to vector<8x16xf32>
    %64 = arith.subf %60, %63 : vector<8x16xf32>
    %65 = math.exp %64 : vector<8x16xf32>
    %cst_40 = arith.constant dense<0.000000e+00> : vector<8xf32>
    %66 = vector.multi_reduction <add>, %65, %cst_40 [1] : vector<8x16xf32> to vector<8xf32>
    %67 = vector.shape_cast %66 : vector<8xf32> to vector<8x1xf32>
    %68 = tpu.reciprocal %67 {approx = true} : vector<8x1xf32> -> vector<8x1xf32>
    %69 = vector.broadcast %68 : vector<8x1xf32> to vector<8x16xf32>
    %70 = arith.mulf %65, %69 : vector<8x16xf32>
    %71 = arith.truncf %70 : vector<8x16xf32> to vector<8x16xbf16>
    %c0_41 = arith.constant 0 : index
    %c1_42 = arith.constant 1 : index
    %c0_43 = arith.constant 0 : index
    %c0_44 = arith.constant 0 : index
    %72 = vector.load %arg4[%c0_41, %c1_42, %c0_43, %c0_44] : memref<1x4x16x8xbf16, #tpu.memory_space<vmem>>, vector<1x1x16x8xbf16>
    %73 = vector.shape_cast %72 : vector<1x1x16x8xbf16> to vector<16x8xbf16>
    %cst_45 = arith.constant dense<0.000000e+00> : vector<8x8xf32>
    %74 = tpu.matmul %71, %73, %cst_45 {dimension_numbers = #tpu.dot_dimension_numbers<[1], [0], [0], [1], [0, 0, 1, 1], [], []>} : vector<8x16xbf16>, vector<16x8xbf16>, vector<8x8xf32> -> vector<8x8xf32>
    %75 = arith.truncf %74 : vector<8x8xf32> to vector<8x8xbf16>
    %c1_46 = arith.constant 1 : index
    %c0_47 = arith.constant 0 : index
    %c0_48 = arith.constant 0 : index
    %76 = vector.load %arg8[%c1_46, %c0_47, %c0_48] : memref<4x8x32xbf16, #tpu.memory_space<vmem>>, vector<1x8x32xbf16>
    %77 = vector.shape_cast %76 : vector<1x8x32xbf16> to vector<8x32xbf16>
    %cst_49 = arith.constant dense<0.000000e+00> : vector<8x32xf32>
    %78 = tpu.matmul %75, %77, %cst_49 {dimension_numbers = #tpu.dot_dimension_numbers<[1], [0], [0], [1], [0, 0, 1, 1], [], []>} : vector<8x8xbf16>, vector<8x32xbf16>, vector<8x32xf32> -> vector<8x32xf32>
    %79 = arith.addf %53, %78 : vector<8x32xf32>
    %c2 = arith.constant 2 : index
    %c0_50 = arith.constant 0 : index
    %c0_51 = arith.constant 0 : index
    %80 = vector.load %arg7[%c2, %c0_50, %c0_51] : memref<4x32x8xbf16, #tpu.memory_space<vmem>>, vector<1x32x8xbf16>
    %81 = vector.shape_cast %80 : vector<1x32x8xbf16> to vector<32x8xbf16>
    %cst_52 = arith.constant dense<0.000000e+00> : vector<8x8xf32>
    %82 = tpu.matmul %26, %81, %cst_52 {dimension_numbers = #tpu.dot_dimension_numbers<[1], [0], [0], [1], [0, 0, 1, 1], [], []>} : vector<8x32xbf16>, vector<32x8xbf16>, vector<8x8xf32> -> vector<8x8xf32>
    %83 = arith.truncf %82 : vector<8x8xf32> to vector<8x8xbf16>
    %c0_53 = arith.constant 0 : index
    %c2_54 = arith.constant 2 : index
    %c0_55 = arith.constant 0 : index
    %c0_56 = arith.constant 0 : index
    %84 = vector.load %arg3[%c0_53, %c2_54, %c0_55, %c0_56] : memref<1x4x8x16xbf16, #tpu.memory_space<vmem>>, vector<1x1x8x16xbf16>
    %85 = vector.shape_cast %84 : vector<1x1x8x16xbf16> to vector<8x16xbf16>
    %cst_57 = arith.constant dense<0.000000e+00> : vector<8x16xf32>
    %86 = tpu.matmul %83, %85, %cst_57 {dimension_numbers = #tpu.dot_dimension_numbers<[1], [0], [0], [1], [0, 0, 1, 1], [], []>} : vector<8x8xbf16>, vector<8x16xbf16>, vector<8x16xf32> -> vector<8x16xf32>
    %cst_58 = arith.constant dense<0xFF800000> : vector<8xf32>
    %87 = vector.multi_reduction <maximumf>, %86, %cst_58 [1] : vector<8x16xf32> to vector<8xf32>
    %88 = vector.shape_cast %87 : vector<8xf32> to vector<8x1xf32>
    %89 = vector.broadcast %88 : vector<8x1xf32> to vector<8x16xf32>
    %90 = arith.subf %86, %89 : vector<8x16xf32>
    %91 = math.exp %90 : vector<8x16xf32>
    %cst_59 = arith.constant dense<0.000000e+00> : vector<8xf32>
    %92 = vector.multi_reduction <add>, %91, %cst_59 [1] : vector<8x16xf32> to vector<8xf32>
    %93 = vector.shape_cast %92 : vector<8xf32> to vector<8x1xf32>
    %94 = tpu.reciprocal %93 {approx = true} : vector<8x1xf32> -> vector<8x1xf32>
    %95 = vector.broadcast %94 : vector<8x1xf32> to vector<8x16xf32>
    %96 = arith.mulf %91, %95 : vector<8x16xf32>
    %97 = arith.truncf %96 : vector<8x16xf32> to vector<8x16xbf16>
    %c0_60 = arith.constant 0 : index
    %c2_61 = arith.constant 2 : index
    %c0_62 = arith.constant 0 : index
    %c0_63 = arith.constant 0 : index
    %98 = vector.load %arg4[%c0_60, %c2_61, %c0_62, %c0_63] : memref<1x4x16x8xbf16, #tpu.memory_space<vmem>>, vector<1x1x16x8xbf16>
    %99 = vector.shape_cast %98 : vector<1x1x16x8xbf16> to vector<16x8xbf16>
    %cst_64 = arith.constant dense<0.000000e+00> : vector<8x8xf32>
    %100 = tpu.matmul %97, %99, %cst_64 {dimension_numbers = #tpu.dot_dimension_numbers<[1], [0], [0], [1], [0, 0, 1, 1], [], []>} : vector<8x16xbf16>, vector<16x8xbf16>, vector<8x8xf32> -> vector<8x8xf32>
    %101 = arith.truncf %100 : vector<8x8xf32> to vector<8x8xbf16>
    %c2_65 = arith.constant 2 : index
    %c0_66 = arith.constant 0 : index
    %c0_67 = arith.constant 0 : index
    %102 = vector.load %arg8[%c2_65, %c0_66, %c0_67] : memref<4x8x32xbf16, #tpu.memory_space<vmem>>, vector<1x8x32xbf16>
    %103 = vector.shape_cast %102 : vector<1x8x32xbf16> to vector<8x32xbf16>
    %cst_68 = arith.constant dense<0.000000e+00> : vector<8x32xf32>
    %104 = tpu.matmul %101, %103, %cst_68 {dimension_numbers = #tpu.dot_dimension_numbers<[1], [0], [0], [1], [0, 0, 1, 1], [], []>} : vector<8x8xbf16>, vector<8x32xbf16>, vector<8x32xf32> -> vector<8x32xf32>
    %105 = arith.addf %79, %104 : vector<8x32xf32>
    %c3 = arith.constant 3 : index
    %c0_69 = arith.constant 0 : index
    %c0_70 = arith.constant 0 : index
    %106 = vector.load %arg7[%c3, %c0_69, %c0_70] : memref<4x32x8xbf16, #tpu.memory_space<vmem>>, vector<1x32x8xbf16>
    %107 = vector.shape_cast %106 : vector<1x32x8xbf16> to vector<32x8xbf16>
    %cst_71 = arith.constant dense<0.000000e+00> : vector<8x8xf32>
    %108 = tpu.matmul %26, %107, %cst_71 {dimension_numbers = #tpu.dot_dimension_numbers<[1], [0], [0], [1], [0, 0, 1, 1], [], []>} : vector<8x32xbf16>, vector<32x8xbf16>, vector<8x8xf32> -> vector<8x8xf32>
    %109 = arith.truncf %108 : vector<8x8xf32> to vector<8x8xbf16>
    %c0_72 = arith.constant 0 : index
    %c3_73 = arith.constant 3 : index
    %c0_74 = arith.constant 0 : index
    %c0_75 = arith.constant 0 : index
    %110 = vector.load %arg3[%c0_72, %c3_73, %c0_74, %c0_75] : memref<1x4x8x16xbf16, #tpu.memory_space<vmem>>, vector<1x1x8x16xbf16>
    %111 = vector.shape_cast %110 : vector<1x1x8x16xbf16> to vector<8x16xbf16>
    %cst_76 = arith.constant dense<0.000000e+00> : vector<8x16xf32>
    %112 = tpu.matmul %109, %111, %cst_76 {dimension_numbers = #tpu.dot_dimension_numbers<[1], [0], [0], [1], [0, 0, 1, 1], [], []>} : vector<8x8xbf16>, vector<8x16xbf16>, vector<8x16xf32> -> vector<8x16xf32>
    %cst_77 = arith.constant dense<0xFF800000> : vector<8xf32>
    %113 = vector.multi_reduction <maximumf>, %112, %cst_77 [1] : vector<8x16xf32> to vector<8xf32>
    %114 = vector.shape_cast %113 : vector<8xf32> to vector<8x1xf32>
    %115 = vector.broadcast %114 : vector<8x1xf32> to vector<8x16xf32>
    %116 = arith.subf %112, %115 : vector<8x16xf32>
    %117 = math.exp %116 : vector<8x16xf32>
    %cst_78 = arith.constant dense<0.000000e+00> : vector<8xf32>
    %118 = vector.multi_reduction <add>, %117, %cst_78 [1] : vector<8x16xf32> to vector<8xf32>
    %119 = vector.shape_cast %118 : vector<8xf32> to vector<8x1xf32>
    %120 = tpu.reciprocal %119 {approx = true} : vector<8x1xf32> -> vector<8x1xf32>
    %121 = vector.broadcast %120 : vector<8x1xf32> to vector<8x16xf32>
    %122 = arith.mulf %117, %121 : vector<8x16xf32>
    %123 = arith.truncf %122 : vector<8x16xf32> to vector<8x16xbf16>
    %c0_79 = arith.constant 0 : index
    %c3_80 = arith.constant 3 : index
    %c0_81 = arith.constant 0 : index
    %c0_82 = arith.constant 0 : index
    %124 = vector.load %arg4[%c0_79, %c3_80, %c0_81, %c0_82] : memref<1x4x16x8xbf16, #tpu.memory_space<vmem>>, vector<1x1x16x8xbf16>
    %125 = vector.shape_cast %124 : vector<1x1x16x8xbf16> to vector<16x8xbf16>
    %cst_83 = arith.constant dense<0.000000e+00> : vector<8x8xf32>
    %126 = tpu.matmul %123, %125, %cst_83 {dimension_numbers = #tpu.dot_dimension_numbers<[1], [0], [0], [1], [0, 0, 1, 1], [], []>} : vector<8x16xbf16>, vector<16x8xbf16>, vector<8x8xf32> -> vector<8x8xf32>
    %127 = arith.truncf %126 : vector<8x8xf32> to vector<8x8xbf16>
    %c3_84 = arith.constant 3 : index
    %c0_85 = arith.constant 0 : index
    %c0_86 = arith.constant 0 : index
    %128 = vector.load %arg8[%c3_84, %c0_85, %c0_86] : memref<4x8x32xbf16, #tpu.memory_space<vmem>>, vector<1x8x32xbf16>
    %129 = vector.shape_cast %128 : vector<1x8x32xbf16> to vector<8x32xbf16>
    %cst_87 = arith.constant dense<0.000000e+00> : vector<8x32xf32>
    %130 = tpu.matmul %127, %129, %cst_87 {dimension_numbers = #tpu.dot_dimension_numbers<[1], [0], [0], [1], [0, 0, 1, 1], [], []>} : vector<8x8xbf16>, vector<8x32xbf16>, vector<8x32xf32> -> vector<8x32xf32>
    %131 = arith.addf %105, %130 : vector<8x32xf32>
    %132 = arith.addf %1, %131 : vector<8x32xf32>
    %c0_88 = arith.constant 0 : index
    %c0_89 = arith.constant 0 : index
    %133 = vector.load %arg9[%c0_88, %c0_89] : memref<1x32xf32, #tpu.memory_space<vmem>>, vector<1x32xf32>
    %134 = vector.broadcast %133 : vector<1x32xf32> to vector<8x32xf32>
    %135 = arith.addf %132, %134 : vector<8x32xf32>
    %c0_90 = arith.constant 0 : index
    %c0_91 = arith.constant 0 : index
    %136 = vector.load %arg10[%c0_90, %c0_91] : memref<1x32xf32, #tpu.memory_space<vmem>>, vector<1x32xf32>
    %c0_92 = arith.constant 0 : index
    %c0_93 = arith.constant 0 : index
    %137 = vector.load %arg11[%c0_92, %c0_93] : memref<1x32xf32, #tpu.memory_space<vmem>>, vector<1x32xf32>
    %cst_94 = arith.constant dense<0.000000e+00> : vector<8xf32>
    %138 = vector.multi_reduction <add>, %135, %cst_94 [1] : vector<8x32xf32> to vector<8xf32>
    %139 = vector.shape_cast %138 : vector<8xf32> to vector<8x1xf32>
    %cst_95 = arith.constant 3.200000e+01 : f32
    %140 = vector.broadcast %cst_95 : f32 to vector<8x1xf32>
    %141 = arith.divf %139, %140 : vector<8x1xf32>
    %142 = vector.broadcast %141 : vector<8x1xf32> to vector<8x32xf32>
    %143 = arith.subf %135, %142 : vector<8x32xf32>
    %144 = arith.mulf %143, %143 : vector<8x32xf32>
    %cst_96 = arith.constant dense<0.000000e+00> : vector<8xf32>
    %145 = vector.multi_reduction <add>, %144, %cst_96 [1] : vector<8x32xf32> to vector<8xf32>
    %146 = vector.shape_cast %145 : vector<8xf32> to vector<8x1xf32>
    %cst_97 = arith.constant 3.200000e+01 : f32
    %147 = vector.broadcast %cst_97 : f32 to vector<8x1xf32>
    %148 = arith.divf %146, %147 : vector<8x1xf32>
    %149 = vector.broadcast %141 : vector<8x1xf32> to vector<8x32xf32>
    %150 = arith.subf %135, %149 : vector<8x32xf32>
    %cst_98 = arith.constant 9.99999974E-6 : f32
    %151 = vector.broadcast %cst_98 : f32 to vector<8x1xf32>
    %152 = arith.addf %148, %151 : vector<8x1xf32>
    %153 = math.rsqrt %152 : vector<8x1xf32>
    %154 = vector.broadcast %153 : vector<8x1xf32> to vector<8x32xf32>
    %155 = arith.mulf %150, %154 : vector<8x32xf32>
    %156 = vector.broadcast %136 : vector<1x32xf32> to vector<8x32xf32>
    %157 = arith.mulf %155, %156 : vector<8x32xf32>
    %158 = vector.broadcast %137 : vector<1x32xf32> to vector<8x32xf32>
    %159 = arith.addf %157, %158 : vector<8x32xf32>
    %160 = arith.truncf %159 : vector<8x32xf32> to vector<8x32xbf16>
    %c0_99 = arith.constant 0 : index
    %c0_100 = arith.constant 0 : index
    %161 = vector.load %arg12[%c0_99, %c0_100] : memref<32x128xbf16, #tpu.memory_space<vmem>>, vector<32x128xbf16>
    %cst_101 = arith.constant dense<0.000000e+00> : vector<8x128xf32>
    %162 = tpu.matmul %160, %161, %cst_101 {dimension_numbers = #tpu.dot_dimension_numbers<[1], [0], [0], [1], [0, 0, 1, 1], [], []>} : vector<8x32xbf16>, vector<32x128xbf16>, vector<8x128xf32> -> vector<8x128xf32>
    %c0_102 = arith.constant 0 : index
    %c0_103 = arith.constant 0 : index
    %163 = vector.load %arg13[%c0_102, %c0_103] : memref<1x128xf32, #tpu.memory_space<vmem>>, vector<1x128xf32>
    %164 = vector.broadcast %163 : vector<1x128xf32> to vector<8x128xf32>
    %165 = arith.addf %162, %164 : vector<8x128xf32>
    %cst_104 = arith.constant 0.000000e+00 : f32
    %166 = vector.broadcast %cst_104 : f32 to vector<8x128xf32>
    %167 = arith.maximumf %165, %166 : vector<8x128xf32>
    %168 = arith.truncf %167 : vector<8x128xf32> to vector<8x128xbf16>
    %c0_105 = arith.constant 0 : index
    %c0_106 = arith.constant 0 : index
    %169 = vector.load %arg14[%c0_105, %c0_106] : memref<128x32xbf16, #tpu.memory_space<vmem>>, vector<128x32xbf16>
    %cst_107 = arith.constant dense<0.000000e+00> : vector<8x32xf32>
    %170 = tpu.matmul %168, %169, %cst_107 {dimension_numbers = #tpu.dot_dimension_numbers<[1], [0], [0], [1], [0, 0, 1, 1], [], []>} : vector<8x128xbf16>, vector<128x32xbf16>, vector<8x32xf32> -> vector<8x32xf32>
    %c0_108 = arith.constant 0 : index
    %c0_109 = arith.constant 0 : index
    %171 = vector.load %arg15[%c0_108, %c0_109] : memref<1x32xf32, #tpu.memory_space<vmem>>, vector<1x32xf32>
    %172 = vector.broadcast %171 : vector<1x32xf32> to vector<8x32xf32>
    %173 = arith.addf %170, %172 : vector<8x32xf32>
    %c0_110 = arith.constant 0 : index
    %c0_111 = arith.constant 0 : index
    %174 = vector.load %arg16[%c0_110, %c0_111] : memref<1x32xf32, #tpu.memory_space<vmem>>, vector<1x32xf32>
    %c0_112 = arith.constant 0 : index
    %c0_113 = arith.constant 0 : index
    %175 = vector.load %arg17[%c0_112, %c0_113] : memref<1x32xf32, #tpu.memory_space<vmem>>, vector<1x32xf32>
    %cst_114 = arith.constant dense<0.000000e+00> : vector<8xf32>
    %176 = vector.multi_reduction <add>, %135, %cst_114 [1] : vector<8x32xf32> to vector<8xf32>
    %177 = vector.shape_cast %176 : vector<8xf32> to vector<8x1xf32>
    %cst_115 = arith.constant 3.200000e+01 : f32
    %178 = vector.broadcast %cst_115 : f32 to vector<8x1xf32>
    %179 = arith.divf %177, %178 : vector<8x1xf32>
    %180 = vector.broadcast %179 : vector<8x1xf32> to vector<8x32xf32>
    %181 = arith.subf %135, %180 : vector<8x32xf32>
    %182 = arith.mulf %181, %181 : vector<8x32xf32>
    %cst_116 = arith.constant dense<0.000000e+00> : vector<8xf32>
    %183 = vector.multi_reduction <add>, %182, %cst_116 [1] : vector<8x32xf32> to vector<8xf32>
    %184 = vector.shape_cast %183 : vector<8xf32> to vector<8x1xf32>
    %cst_117 = arith.constant 3.200000e+01 : f32
    %185 = vector.broadcast %cst_117 : f32 to vector<8x1xf32>
    %186 = arith.divf %184, %185 : vector<8x1xf32>
    %187 = vector.broadcast %179 : vector<8x1xf32> to vector<8x32xf32>
    %188 = arith.subf %135, %187 : vector<8x32xf32>
    %cst_118 = arith.constant 9.99999974E-6 : f32
    %189 = vector.broadcast %cst_118 : f32 to vector<8x1xf32>
    %190 = arith.addf %186, %189 : vector<8x1xf32>
    %191 = math.rsqrt %190 : vector<8x1xf32>
    %192 = vector.broadcast %191 : vector<8x1xf32> to vector<8x32xf32>
    %193 = arith.mulf %188, %192 : vector<8x32xf32>
    %194 = vector.broadcast %174 : vector<1x32xf32> to vector<8x32xf32>
    %195 = arith.mulf %193, %194 : vector<8x32xf32>
    %196 = vector.broadcast %175 : vector<1x32xf32> to vector<8x32xf32>
    %197 = arith.addf %195, %196 : vector<8x32xf32>
    %198 = arith.truncf %197 : vector<8x32xf32> to vector<8x32xbf16>
    %c0_119 = arith.constant 0 : index
    %c0_120 = arith.constant 0 : index
    %199 = vector.load %arg18[%c0_119, %c0_120] : memref<32x128xbf16, #tpu.memory_space<vmem>>, vector<32x128xbf16>
    %cst_121 = arith.constant dense<0.000000e+00> : vector<8x128xf32>
    %200 = tpu.matmul %198, %199, %cst_121 {dimension_numbers = #tpu.dot_dimension_numbers<[1], [0], [0], [1], [0, 0, 1, 1], [], []>} : vector<8x32xbf16>, vector<32x128xbf16>, vector<8x128xf32> -> vector<8x128xf32>
    %c0_122 = arith.constant 0 : index
    %c0_123 = arith.constant 0 : index
    %201 = vector.load %arg19[%c0_122, %c0_123] : memref<1x128xf32, #tpu.memory_space<vmem>>, vector<1x128xf32>
    %202 = vector.broadcast %201 : vector<1x128xf32> to vector<8x128xf32>
    %203 = arith.addf %200, %202 : vector<8x128xf32>
    %cst_124 = arith.constant 5.000000e-01 : f32
    %204 = vector.broadcast %cst_124 : f32 to vector<8x128xf32>
    %205 = arith.mulf %204, %203 : vector<8x128xf32>
    %cst_125 = arith.constant 0.707106769 : f32
    %206 = vector.broadcast %cst_125 : f32 to vector<8x128xf32>
    %207 = arith.mulf %203, %206 : vector<8x128xf32>
    %208 = math.erf %207 : vector<8x128xf32>
    %cst_126 = arith.constant 1.000000e+00 : f32
    %209 = vector.broadcast %cst_126 : f32 to vector<8x128xf32>
    %210 = arith.addf %209, %208 : vector<8x128xf32>
    %211 = arith.mulf %205, %210 : vector<8x128xf32>
    %212 = arith.truncf %211 : vector<8x128xf32> to vector<8x128xbf16>
    %c0_127 = arith.constant 0 : index
    %c0_128 = arith.constant 0 : index
    %213 = vector.load %arg20[%c0_127, %c0_128] : memref<128x32xbf16, #tpu.memory_space<vmem>>, vector<128x32xbf16>
    %cst_129 = arith.constant dense<0.000000e+00> : vector<8x32xf32>
    %214 = tpu.matmul %212, %213, %cst_129 {dimension_numbers = #tpu.dot_dimension_numbers<[1], [0], [0], [1], [0, 0, 1, 1], [], []>} : vector<8x128xbf16>, vector<128x32xbf16>, vector<8x32xf32> -> vector<8x32xf32>
    %c0_130 = arith.constant 0 : index
    %c0_131 = arith.constant 0 : index
    %215 = vector.load %arg21[%c0_130, %c0_131] : memref<1x32xf32, #tpu.memory_space<vmem>>, vector<1x32xf32>
    %216 = vector.broadcast %215 : vector<1x32xf32> to vector<8x32xf32>
    %217 = arith.addf %214, %216 : vector<8x32xf32>
    %cst_132 = arith.constant 5.000000e-01 : f32
    %218 = vector.broadcast %cst_132 : f32 to vector<8x32xf32>
    %219 = arith.mulf %173, %218 : vector<8x32xf32>
    %220 = arith.addf %135, %219 : vector<8x32xf32>
    %221 = arith.addf %220, %217 : vector<8x32xf32>
    %c0_133 = arith.constant 0 : index
    %c0_134 = arith.constant 0 : index
    %c0_135 = arith.constant 0 : index
    %222 = vector.load %arg22[%c0_133, %c0_134, %c0_135] : memref<1x8x32xf32, #tpu.memory_space<vmem>>, vector<1x8x32xf32>
    %223 = vector.shape_cast %222 : vector<1x8x32xf32> to vector<8x32xf32>
    %224 = vector.shape_cast %221 : vector<8x32xf32> to vector<1x8x32xf32>
    tpu.vector_store %arg22[%c0_133, %c0_134, %c0_135], %224 {strides = array<i32>} : memref<1x8x32xf32, #tpu.memory_space<vmem>>, vector<1x8x32xf32>,
    return
  }
  func.func @transform_0(%arg0: i32, %arg1: i32) -> (i32, i32, i32) {
    %c0_i32 = arith.constant 0 : i32
    %c0_i32_0 = arith.constant 0 : i32
    return %arg0, %arg1, %c0_i32 : i32, i32, i32
  }
  func.func @transform_1(%arg0: i32, %arg1: i32) -> (i32, i32, i32, i32) {
    %c0_i32 = arith.constant 0 : i32
    %c0_i32_0 = arith.constant 0 : i32
    %c0_i32_1 = arith.constant 0 : i32
    %c0_i32_2 = arith.constant 0 : i32
    return %arg0, %c0_i32, %c0_i32_0, %c0_i32_1 : i32, i32, i32, i32
  }
  func.func @transform_2(%arg0: i32, %arg1: i32) -> (i32, i32, i32, i32) {
    %c0_i32 = arith.constant 0 : i32
    %c0_i32_0 = arith.constant 0 : i32
    %c0_i32_1 = arith.constant 0 : i32
    %c0_i32_2 = arith.constant 0 : i32
    return %arg0, %c0_i32, %c0_i32_0, %c0_i32_1 : i32, i32, i32, i32
  }
  func.func @transform_3(%arg0: i32, %arg1: i32) -> (i32, i32) {
    %c0_i32 = arith.constant 0 : i32
    %c0_i32_0 = arith.constant 0 : i32
    %c0_i32_1 = arith.constant 0 : i32
    return %c0_i32, %c0_i32_0 : i32, i32
  }
  func.func @transform_4(%arg0: i32, %arg1: i32) -> (i32, i32) {
    %c0_i32 = arith.constant 0 : i32
    %c0_i32_0 = arith.constant 0 : i32
    %c0_i32_1 = arith.constant 0 : i32
    return %c0_i32, %c0_i32_0 : i32, i32
  }
  func.func @transform_5(%arg0: i32, %arg1: i32) -> (i32, i32, i32) {
    %c0_i32 = arith.constant 0 : i32
    %c0_i32_0 = arith.constant 0 : i32
    %c0_i32_1 = arith.constant 0 : i32
    %c0_i32_2 = arith.constant 0 : i32
    return %c0_i32, %c0_i32_0, %c0_i32_1 : i32, i32, i32
  }
  func.func @transform_6(%arg0: i32, %arg1: i32) -> (i32, i32, i32) {
    %c0_i32 = arith.constant 0 : i32
    %c0_i32_0 = arith.constant 0 : i32
    %c0_i32_1 = arith.constant 0 : i32
    %c0_i32_2 = arith.constant 0 : i32
    return %c0_i32, %c0_i32_0, %c0_i32_1 : i32, i32, i32
  }
  func.func @transform_7(%arg0: i32, %arg1: i32) -> (i32, i32) {
    %c0_i32 = arith.constant 0 : i32
    %c0_i32_0 = arith.constant 0 : i32
    %c0_i32_1 = arith.constant 0 : i32
    return %c0_i32, %c0_i32_0 : i32, i32
  }
  func.func @transform_8(%arg0: i32, %arg1: i32) -> (i32, i32) {
    %c0_i32 = arith.constant 0 : i32
    %c0_i32_0 = arith.constant 0 : i32
    %c0_i32_1 = arith.constant 0 : i32
    return %c0_i32, %c0_i32_0 : i32, i32
  }
  func.func @transform_9(%arg0: i32, %arg1: i32) -> (i32, i32) {
    %c0_i32 = arith.constant 0 : i32
    %c0_i32_0 = arith.constant 0 : i32
    %c0_i32_1 = arith.constant 0 : i32
    return %c0_i32, %c0_i32_0 : i32, i32
  }
  func.func @transform_10(%arg0: i32, %arg1: i32) -> (i32, i32) {
    %c0_i32 = arith.constant 0 : i32
    %c0_i32_0 = arith.constant 0 : i32
    %c0_i32_1 = arith.constant 0 : i32
    return %c0_i32, %c0_i32_0 : i32, i32
  }
  func.func @transform_11(%arg0: i32, %arg1: i32) -> (i32, i32) {
    %c0_i32 = arith.constant 0 : i32
    %c0_i32_0 = arith.constant 0 : i32
    %c0_i32_1 = arith.constant 0 : i32
    return %c0_i32, %c0_i32_0 : i32, i32
  }
  func.func @transform_12(%arg0: i32, %arg1: i32) -> (i32, i32) {
    %c0_i32 = arith.constant 0 : i32
    %c0_i32_0 = arith.constant 0 : i32
    %c0_i32_1 = arith.constant 0 : i32
    return %c0_i32, %c0_i32_0 : i32, i32
  }
  func.func @transform_13(%arg0: i32, %arg1: i32) -> (i32, i32) {
    %c0_i32 = arith.constant 0 : i32
    %c0_i32_0 = arith.constant 0 : i32
    %c0_i32_1 = arith.constant 0 : i32
    return %c0_i32, %c0_i32_0 : i32, i32
  }
  func.func @transform_14(%arg0: i32, %arg1: i32) -> (i32, i32) {
    %c0_i32 = arith.constant 0 : i32
    %c0_i32_0 = arith.constant 0 : i32
    %c0_i32_1 = arith.constant 0 : i32
    return %c0_i32, %c0_i32_0 : i32, i32
  }
  func.func @transform_15(%arg0: i32, %arg1: i32) -> (i32, i32) {
    %c0_i32 = arith.constant 0 : i32
    %c0_i32_0 = arith.constant 0 : i32
    %c0_i32_1 = arith.constant 0 : i32
    return %c0_i32, %c0_i32_0 : i32, i32
  }
  func.func @transform_16(%arg0: i32, %arg1: i32) -> (i32, i32) {
    %c0_i32 = arith.constant 0 : i32
    %c0_i32_0 = arith.constant 0 : i32
    %c0_i32_1 = arith.constant 0 : i32
    return %c0_i32, %c0_i32_0 : i32, i32
  }
  func.func @transform_17(%arg0: i32, %arg1: i32) -> (i32, i32) {
    %c0_i32 = arith.constant 0 : i32
    %c0_i32_0 = arith.constant 0 : i32
    %c0_i32_1 = arith.constant 0 : i32
    return %c0_i32, %c0_i32_0 : i32, i32
  }
  func.func @transform_18(%arg0: i32, %arg1: i32) -> (i32, i32) {
    %c0_i32 = arith.constant 0 : i32
    %c0_i32_0 = arith.constant 0 : i32
    %c0_i32_1 = arith.constant 0 : i32
    return %c0_i32, %c0_i32_0 : i32, i32
  }
  func.func @transform_19(%arg0: i32, %arg1: i32) -> (i32, i32) {
    %c0_i32 = arith.constant 0 : i32
    %c0_i32_0 = arith.constant 0 : i32
    %c0_i32_1 = arith.constant 0 : i32
    return %c0_i32, %c0_i32_0 : i32, i32
  }
  func.func @transform_20(%arg0: i32, %arg1: i32) -> (i32, i32, i32) {
    %c0_i32 = arith.constant 0 : i32
    %c0_i32_0 = arith.constant 0 : i32
    return %arg0, %arg1, %c0_i32 : i32, i32, i32
  }
}

</mosaic_0001>

<bundles_post_ra>
// kernel: tpu_custom_call.1
= control target key start
LH: loop header
LB: loop body
LE: loop exit
PB: predicated region body
PF: predicated region fallthrough
CT: control target
= control target key end

     0   :  { %s3229_s0 = inlined_call_operand.vmem [shape: f32[2,16,32], index: 0, kind: input, shape index: {}]   ;;  %s3230_s1 = inlined_call_operand.vmem [shape: bf16[2,4,8,16], index: 1, kind: input, shape index: {}]   ;;  %s3231_s2 = inlined_call_operand.vmem [shape: bf16[2,4,16,8], index: 2, kind: input, shape index: {}]   ;;  %s3232_s3 = inlined_call_operand.vmem [shape: f32[1,32], index: 3, kind: input, shape index: {}]   ;;  %s3233_s4 = inlined_call_operand.vmem [shape: f32[1,32], index: 4, kind: input, shape index: {}]   ;;  %s3234_s5 = inlined_call_operand.vmem [shape: bf16[4,32,8], index: 5, kind: input, shape index: {}]   ;;  %s3235_s6 = inlined_call_operand.vmem [shape: bf16[4,8,32], index: 6, kind: input, shape index: {}]   ;;  %s3236_s7 = inlined_call_operand.vmem [shape: f32[1,32], index: 7, kind: input, shape index: {}]   ;;  %s3237_s8 = inlined_call_operand.vmem [shape: f32[1,32], index: 8, kind: input, shape index: {}]   ;;  %s3238_s9 = inlined_call_operand.vmem [shape: f32[1,32], index: 9, kind: input, shape index: {}]   ;;  %s3239_s10 = inlined_call_operand.vmem [shape: bf16[32,128], index: 10, kind: input, shape index: {}]   ;;  %s3240_s11 = inlined_call_operand.vmem [shape: f32[1,128], index: 11, kind: input, shape index: {}]   ;;  %s3241_s12 = inlined_call_operand.vmem [shape: bf16[128,32], index: 12, kind: input, shape index: {}]   ;;  %s3242_s13 = inlined_call_operand.vmem [shape: f32[1,32], index: 13, kind: input, shape index: {}]   ;;  %s3243_s14 = inlined_call_operand.vmem [shape: f32[1,32], index: 14, kind: input, shape index: {}]   ;;  %s3244_s15 = inlined_call_operand.vmem [shape: f32[1,32], index: 15, kind: input, shape index: {}]   ;;  %s3245_s16 = inlined_call_operand.vmem [shape: bf16[32,128], index: 16, kind: input, shape index: {}]   ;;  %s3246_s17 = inlined_call_operand.vmem [shape: f32[1,128], index: 17, kind: input, shape index: {}]   ;;  %s3247_s18 = inlined_call_operand.vmem [shape: bf16[128,32], index: 18, kind: input, shape index: {}]   ;;  %s3248_s19 = inlined_call_operand.vmem [shape: f32[1,32], index: 19, kind: input, shape index: {}]   ;;  %s3249_s20 = inlined_call_operand.hbm [shape: f32[2,16,32], index: 20, kind: output, shape index: {}]  }
   0x1   :  { %3262 = sst [smem:[#allocation15_spill]] %s3229_s0 }
   0x2   :  { %3263 = sst [smem:[#allocation16_spill]] %s3230_s1 }
   0x3   :  { %3264 = sst [smem:[#allocation17_spill]] %s3231_s2 }
   0x4   :  { %3265 = sst [smem:[#allocation18_spill]] %s3232_s3 }
   0x5   :  { %3266 = sst [smem:[#allocation19_spill]] %s3233_s4 }
   0x6   :  { %3267 = sst [smem:[#allocation20_spill]] %s3248_s19 }
   0x7   :  { %3268 = sst [smem:[#allocation21_spill]] %s3249_s20 }
   0x8   :  { %25 = vsyncpa [#allocation3], 0 }
   0x9   :  { %27 = vsyncpa [#allocation3 + $0x1], 0  ;;  %s2802_s1 = smov 0   ;;  %s2804_s22 = smov 0  }
   0xa   :  { %s2806_s23 = smov 0   ;;  %s2808_s24 = smov 0  }
   0xb   :  { %s2810_s2 = smov 0   ;;  %s2812_s25 = smov 0  }
   0xc   :  { %s2814_s3 = smov 0   ;;  %s2816_s26 = smov 0  }
   0xd LB: > { %3269 = sst [smem:[#allocation5_spill]] %s2664_s1  ;;  %s2147_s27 = sadd.s32 4294967295, %s2692_s26   ;;  %s2692_s26 = sphi %s2816_s26, %s33_s26   ;;  %s2688_s3 = sphi %s2814_s3, %s3297_s3   ;;  %s2684_s25 = sphi %s2812_s25, %s3296_s25   ;;  %s2680_s2 = sphi %s2810_s2, %s3295_s2   ;;  %s2676_s24 = sphi %s2808_s24, %s3294_s24   ;;  %s2672_s23 = sphi %s2806_s23, %s3293_s23   ;;  %s2668_s22 = sphi %s2804_s22, %s3299_s22   ;;  %s2664_s1 = sphi %s2802_s1, %s3298_s1  }
   0xe   : > { %3270 = sst [smem:[#allocation6_spill]] %s2672_s23  ;;  %s2148_s28 = sadd.s32 4294967294, %s2692_s26  }
   0xf   : > { %3271 = sst [smem:[#allocation7_spill]] %s2684_s25  ;;  %s42_s4 = sadd.s32 1, %s2684_s25 }
  0x10   : > { %3272 = sst [smem:[#allocation8_spill]] %s2688_s3  ;;  %p43_p0 = scmp.ge.s32.totalorder %s42_s4, 2 }
  0x11   : > { %3273 = sst [smem:[#allocation9_spill]] %s2692_s26  ;;  %s45_s29 = sadd.s32 1, %s2688_s3 }
  0x12   : > { %p501_p1 = scmp.ne.s32.totalorder %s2672_s23, %s2668_s22  ;;  %p502_p2 = scmp.eq.s32.totalorder %s2147_s27, 3 }
  0x13   : > { %s3301_s4 = smov (%p43_p0, %s42_s4), 0  ;;  %s3303_s29 = smov (!%p43_p0, %s45_s29), %s2688_s3 }
  0x14   : > { %3274 = sst [smem:[#allocation10_spill]] %s3301_s4  ;;  %s487_s30 = ssub.s32 %s2684_s25, %s3301_s4 }
  0x15   : > { %p2853_p3 = por %p502_p2, %p501_p1  ;;  %p47_p4 = scmp.ge.s32.totalorder %s3303_s29, 2 }
  0x16   : > { %p507_p5 = scmp.ne.s32.totalorder %s2668_s22, %s2664_s1  ;;  %p508_p6 = scmp.eq.s32.totalorder %s2148_s28, 3 }
  0x17   : > { %s3275_s0 = scalar_select %p2853_p3, 1, 0 }
  0x18   : > { %p2151_p7 = scmp.ge.s32.totalorder %s2692_s26, 1  ;;  %s3305_s29 = smov (%p47_p4, %s3303_s29), 0 }
  0x19   : > { %3276 = sst [smem:[#allocation11_spill]] %s3275_s0  ;;  %p2862_p8 = por %p508_p6, %p507_p5 }
  0x1a   : > { %3277 = sst [smem:[#allocation12_spill]] %s3305_s29  ;;  %p604_p9 = scmp.lt.s32.totalorder %s2692_s26, 5 }
  0x1b   : > { %s3278_s21 = scalar_select %p2862_p8, 1, 0 }
  0x1c   : > { %s486_s27 = ssub.s32 %s2688_s3, %s3305_s29  ;;  %s491_s20 = sadd.s32 1, %s2672_s23 }
  0x1d   : > { %3279 = sst [smem:[#allocation13_spill]] %s3278_s21  ;;  %s488_s19 = sor.u32 %s487_s30, %s486_s27 }
  0x1e   : > { %p605_p10 = pnand %p2151_p7, %p604_p9  ;;  %p489_p11 = scmp.eq.s32.totalorder %s488_s19, 0 }
  0x1f   : > { %p675_p12 = scmp.lt.s32.totalorder (!%p605_p10), %s2680_s2, 1  ;;  %p677_p13 = scmp.lt.s32.totalorder (!%p605_p10), %s2676_s24, 1  ;;  %vm697_vm0 = vcmask (!%p605_p10), 261120   ;;  %v2544_v7 = vld [vmem:[%s3234_s5] sm:$0xff] (!%p605_p10)   ;;  %v2694_v8 = vmov (!%p605_p10), 0.0   ;;  %vm2695_vm1 = vmmov (!%p605_p10), 0  }
  0x20   : > { %s2871_s4 = scalar_select %p489_p11, %s2672_s23, %s491_s20  }
  0x21   : > { %608 = sbr.rel (%p605_p10) target bundleno = 4572 (0x11dc), region = 100  ;;  %s3281_s19 = sld [smem:[#allocation17_spill]] (!%p605_p10)  ;;  %2311 = vmatprep.subr.bf16.mxu0 (!%p605_p10), %v2694_v8  ;;  %2315 = vmatprep.mubr.msk.bf16.mxu0 (!%p605_p10), %vm2695_vm1, %v2694_v8  ;;  %v2545_v9 = vld [vmem:[%s3234_s5 + $0x8] sm:$0xff] (!%p605_p10)   ;;  %vm792_vm2 = vcmask (!%p605_p10), 1043456   ;;  %vm788_vm3 = vcmask (!%p605_p10), 64512   ;;  %v2546_v23 = vld [vmem:[%s3234_s5 + $0x10] sm:$0xff] (!%p605_p10)  }
  0x22   : > { %3280 = sst [smem:[#allocation14_spill]] %s2871_s4  ;;  %s3282_s26 = sld [smem:[#allocation15_spill]] (!%p605_p10)  ;;  %2312 = vmatpush3.bf16.msra.mxu0 (!%p605_p10), %v2544_v7  ;;  %2325 = vmatprep.subr.bf16.mxu1 (!%p605_p10), %v2694_v8  ;;  %v2547_v28 = vld [vmem:[%s3234_s5 + $0x18] sm:$0xff] (!%p605_p10)   ;;  %vm836_vm4 = vcmask (!%p605_p10), 130048   ;;  %v901_v7 = vld [vmem:[%s3235_s6] sm:$0xf] (!%p605_p10) }
  0x23   : > { %2313 = vmatprep.subr.bf16.mxu0 (!%p605_p10), %v2694_v8  ;;  %2327 = vmatprep.mubr.msk.bf16.mxu1 (!%p605_p10), %vm2695_vm1, %v2694_v8  ;;  %s3284_s27 = sld [smem:[#allocation16_spill]] (!%p605_p10)  ;;  %s3285_s1 = sld [smem:[#allocation19_spill]] (!%p605_p10) }
  0x26   : > { %2314 = vmatpush3.bf16.msra.mxu0 (!%p605_p10), %v2545_v9 }
  0x27   : > { %2319 = vmatprep.subr.bf16.mxu0 (!%p605_p10), %v2694_v8 }
  0x28   : > { %s2876_s28 = scalar_select %p675_p12, %s2680_s2, 1 }
  0x29   : > { %s678_s25 = scalar_select %p677_p13, %s2676_s24, 1  ;;  %v2160_v16 = vld [vmem:[%s3285_s1] ss:$0 sm:$0xff] }
  0x2a   : > { %s2153_s21 = sshll.u32 %s2876_s28, 1  ;;  %s2250_s29 = sshll.u32 %s2876_s28, 5 }
  0x2b   : > { %s680_s3 = sadd.s32 %s2153_s21, %s678_s25  ;;  %s2884_s20 = scalar_lea.vmem %s3281_s19, %s2250_s29 }
  0x2c   : > { %s2154_s4 = sshll.u32 %s680_s3, 3  ;;  %v2548_v43 = vld [vmem:[%s2884_s20] sm:$0xff]  }
  0x2d   : > { %s682_s0 = scalar_lea.vmem %s3282_s26, %s2154_s4  ;;  %s2249_s26 = sshll.u32 %s2876_s28, 4  ;;  %2326 = vmatpush3.bf16.msra.mxu1 %v2548_v43 }
  0x2e   : > { %v2889_v0 = vld [vmem:[%s682_s0] sm:$0xff]  ;;  %s3283_s0 = sld [smem:[#allocation18_spill]]  ;;  %s2916_s19 = scalar_lea.vmem %s3284_s27, %s2249_s26  ;;  %2339 = vmatprep.subr.bf16.mxu1 %v2694_v8 }
  0x2f   : > { %v698_v1 = vsel %vm697_vm0, %v2889_v0, 0.0  ;;  %v787_v18 = vld [vmem:[%s2916_s19] sm:$0xf]  ;;  %v2174_v46 = vld [vmem:[%s2916_s19 + $0x4] sm:$0xf]  ;;  %s2245_s27 = sshll.u32 %s2680_s2, 1 }
  0x30   : > { %699 = vadd.xlane.f32.xlu0 %v698_v1  ;;  %v794_v21 = vsel %vm792_vm2, %v787_v18, 0  ;;  %v966_v49 = vsel %vm792_vm2, %v2174_v46, 0  ;;  %s2041_s25 = sadd.s32 %s2676_s24, %s2245_s27  ;;  %s3286_s28 = sld [smem:[#allocation20_spill]] }
  0x31   : > { %s2246_s26 = sshll.u32 %s2041_s25, 7  ;;  %s2696_s27 = smov [#allocation2]  }
  0x32   : > { %s2602_s25 = sshll.u32 %s2696_s27, 4  ;;  %s2603_s25 = int_to_ptr.vmem [resolvable:$false] %s2602_s25 }
  0x33   : > { %s2604_s3 = scalar_lea.vmem %s2603_s25, 256 }
  0x34   : > { %v2159_v14 = vld [vmem:[%s3283_s0] ss:$0 sm:$0xff] }
  0xbd   : > { %v700_v2 = vpop.xlane.xlu0 %699 }
  0xbe   : > { %v702_v3 = vmul.f32 0.03125, %v700_v2  ;;  %v2549_v2 = vld [vmem:[%s2884_s20 + $0x8] sm:$0xff]  }
  0xc0   : > { %v703_v4 = vsub.f32 %v2889_v0, %v702_v3  ;;  %v2180_v3 = vld [vmem:[%s3235_s6 + $0x4] sm:$0xf] }
  0xc2   : > { %v704_v5 = vmul.f32 %v703_v4, %v703_v4 }
  0xc4   : > { %v705_v6 = vsel %vm697_vm0, %v704_v5, 0.0 }
  0xc5   : > { %706 = vadd.xlane.f32.xlu0 %v705_v6 }
 0x152   : > { %v707_v10 = vpop.xlane.xlu0 %706 }
 0x153   : > { %v708_v11 = vmul.f32 0.03125, %v707_v10 }
 0x155   : > { %v709_v12 = vadd.f32 1e-05, %v708_v11  ;;  %v1125_v11 = vsel %vm792_vm2, %v901_v7, 0 }
 0x157   : > { %2576 = vrsqrt.f32 %v709_v12 }
 0x161   : > { %v2577_v13 = vpop.eup %2576 }
 0x162   : > { %v711_v15 = vmul.f32 %v2577_v13, %v703_v4  ;;  %v1079_v4 = vsel %vm792_vm2, %v2180_v3, 0 }
 0x164   : > { %v718_v17 = vmul.f32 %v2159_v14, %v711_v15  ;;  %v2550_v14 = vld [vmem:[%s3234_s5 + $0x20] sm:$0xff]  }
 0x166   : > { %v725_v19 = vadd.f32 %v2160_v16, %v718_v17 }
 0x168   : > { %v2922_v20 = vpack.c.bf16 %v725_v19, %v725_v19  ;;  %v2551_v19 = vld [vmem:[%s3234_s5 + $0x28] sm:$0xff]  }
 0x16a   : > { %2316 = vmatmul.mubr.msk.bf16.vlgmr.msra.gmra.mrb[0].mxu0 %vm697_vm0, %v2922_v20 }
 0x16b   : > { %2320 = vmatpush3.bf16.msra.mxu0 %v794_v21  ;;  %2321 = vmatprep.mubr.msk.bf16.mxu0 %vm2695_vm1, %v2694_v8 }
 0x16c   : > { %2331 = vmatprep.subr.bf16.mxu0 %v2694_v8 }
 0x23d   : > { %v780_v22 = vpop.f32.mrb[0].mxu0 }
 0x23e   : > { %v786_v24 = vpack.c.bf16 %v780_v22, %v780_v22  ;;  %v2317_v25 = vpop.f32.mrb[1].mxu0 }
 0x23f   : > { %v783_v26 = vpop.f32.mrb[2].mxu0  ;;  %v2190_v25 = vld [vmem:[%s2916_s19 + $0x8] sm:$0xf] }
 0x240   : > { %v2318_v27 = vpop.f32.mrb[3].mxu0  ;;  %2322 = vmatmul.mubr.msk.bf16.vlgmr.msra.gmra.mrb[4].mxu0 %vm788_vm3, %v786_v24  ;;  %v1231_v26 = vsel %vm792_vm2, %v2190_v25, 0 }
 0x241   : > { %2332 = vmatpush3.bf16.msra.mxu0 %v2546_v23  ;;  %2335 = vmatprep.mubr.msk.bf16.mxu0 %vm2695_vm1, %v2694_v8 }
 0x242   : > { %2333 = vmatprep.subr.bf16.mxu0 %v2694_v8 }
 0x245   : > { %2334 = vmatpush3.bf16.msra.mxu0 %v2547_v28 }
 0x246   : > { %2345 = vmatprep.subr.bf16.mxu0 %v2694_v8 }
 0x248   : > { %2336 = vmatmul.mubr.msk.bf16.vlgmr.msra.gmra.mrb[8].mxu0 %vm697_vm0, %v2922_v20 }
 0x249   : > { %2347 = vmatprep.mubr.msk.bf16.mxu0 %vm2695_vm1, %v2694_v8  ;;  %2346 = vmatpush3.bf16.msra.mxu0 %v2549_v2 }
 0x24a   : > { %2357 = vmatprep.subr.bf16.mxu0 %v2694_v8 }
 0x313   : > { %v830_v29 = vpop.f32.mrb[4].mxu0 }
 0x314   : > { %v2323_v30 = vpop.f32.mrb[5].mxu0  ;;  %v837_v31 = vsel %vm836_vm4, %v830_v29, -inf }
 0x315   : > { %838 = vmax.xlane.f32.xlu1 %v837_v31  ;;  %v833_v32 = vpop.f32.mrb[6].mxu0 }
 0x316   : > { %v2324_v33 = vpop.f32.mrb[7].mxu0 }
 0x31b   : > { %v953_v34 = vpop.f32.mrb[8].mxu0 }
 0x31c   : > { %v2337_v35 = vpop.f32.mrb[9].mxu0  ;;  %v959_v50 = vpack.c.bf16 %v953_v34, %v953_v34 }
 0x31d   : > { %v956_v36 = vpop.f32.mrb[10].mxu0 }
 0x31e   : > { %v2338_v37 = vpop.f32.mrb[11].mxu0 }
 0x3a2   : > { %v839_v38 = vpop.xlane.xlu1 %838 }
 0x3a3   : > { %v840_v39 = vsub.f32 %v830_v29, %v839_v38 }
 0x3a5   : > { %v841_v40 = vmul.f32 1.442695, %v840_v39 }
 0x3a7   : > { %2578 = vpow2.f32 %v841_v40 }
 0x3b1   : > { %v2579_v41 = vpop.eup %2578 }
 0x3b2   : > { %v843_v42 = vsel %vm836_vm4, %v2579_v41, 0.0 }
 0x3b3   : > { %844 = vadd.xlane.f32.xlu1 %v843_v42 }
 0x440   : > { %v845_v44 = vpop.xlane.xlu1 %844 }
 0x441   : > { %2580 = vrcp.f32 %v845_v44 }
 0x44b   : > { %v2581_v45 = vpop.eup %2580 }
 0x44c   : > { %v847_v47 = vmul.f32 %v2581_v45, %v2579_v41 }
 0x44e   : > { %v848_v48 = vpack.c.bf16 %v847_v47, %v847_v47  ;;  %v2552_v47 = vld [vmem:[%s2884_s20 + $0x10] sm:$0xff]  }
 0x450   : > { %2328 = vmatmul.mubr.msk.bf16.vlgmr.msra.gmra.mrb[0].mxu1 %vm836_vm4, %v848_v48  ;;  %v2196_v48 = vld [vmem:[%s3235_s6 + $0x8] sm:$0xf] }
 0x451   : > { %2340 = vmatpush3.bf16.msra.mxu1 %v966_v49  ;;  %2341 = vmatprep.mubr.msk.bf16.mxu1 %vm2695_vm1, %v2694_v8  ;;  %v1344_v49 = vsel %vm792_vm2, %v2196_v48, 0  ;;  %v2560_v48 = vld [vmem:[%s3241_s12] sm:$0xff]  }
 0x452   : > { %2351 = vmatprep.subr.bf16.mxu1 %v2694_v8 }
 0x458   : > { %2342 = vmatmul.mubr.msk.bf16.vlgmr.msra.gmra.mrb[4].mxu1 %vm788_vm3, %v959_v50 }
 0x459   : > { %2353 = vmatprep.mubr.msk.bf16.mxu1 %vm2695_vm1, %v2694_v8  ;;  %2352 = vmatpush3.bf16.msra.mxu1 %v1079_v4 }
 0x45a   : > { %2363 = vmatprep.subr.bf16.mxu1 %v2694_v8 }
 0x523   : > { %v894_v51 = vpop.f32.mrb[0].mxu1 }
 0x524   : > { %v2329_v52 = vpop.f32.mrb[1].mxu1  ;;  %v900_v12 = vpack.c.bf16 %v894_v51, %v894_v51 }
 0x525   : > { %v897_v53 = vpop.f32.mrb[2].mxu1 }
 0x526   : > { %v2330_v54 = vpop.f32.mrb[3].mxu1  ;;  %v2553_v53 = vld [vmem:[%s3234_s5 + $0x30] sm:$0xff]  }
 0x52b   : > { %v1002_v55 = vpop.f32.mrb[4].mxu1 }
 0x52c   : > { %v2343_v56 = vpop.f32.mrb[5].mxu1  ;;  %v1008_v57 = vsel %vm836_vm4, %v1002_v55, -inf }
 0x52d   : > { %1009 = vmax.xlane.f32.xlu0 %v1008_v57  ;;  %v1005_v58 = vpop.f32.mrb[6].mxu1  ;;  %v2205_v56 = vld [vmem:[%s2916_s19 + $0xc] sm:$0xf]  ;;  %s3288_s19 = sld [smem:[#allocation21_spill]] }
 0x52e   : > { %v2344_v59 = vpop.f32.mrb[7].mxu1 }
 0x533   : > { %s3175_s24 = scalar_lea.hbm %s3288_s19, %s2246_s26 }
 0x5ba   : > { %v1010_v60 = vpop.xlane.xlu0 %1009 }
 0x5bb   : > { %v1011_v61 = vsub.f32 %v1002_v55, %v1010_v60  ;;  %v2554_v55 = vld [vmem:[%s3234_s5 + $0x38] sm:$0xff]   ;;  %v1451_v60 = vsel %vm792_vm2, %v2205_v56, 0 }
 0x5bd   : > { %v1012_v62 = vmul.f32 1.442695, %v1011_v61 }
 0x5bf   : > { %2582 = vpow2.f32 %v1012_v62 }
 0x5c9   : > { %v2583_v63 = vpop.eup %2582 }
 0x5ca   : > { %v1014_v1 = vsel %vm836_vm4, %v2583_v63, 0.0 }
 0x5cb   : > { %1015 = vadd.xlane.f32.xlu1 %v1014_v1 }
 0x658   : > { %v1016_v5 = vpop.xlane.xlu1 %1015 }
 0x659   : > { %2584 = vrcp.f32 %v1016_v5 }
 0x663   : > { %v2585_v6 = vpop.eup %2584 }
 0x664   : > { %v1018_v9 = vmul.f32 %v2585_v6, %v2583_v63 }
 0x666   : > { %v1019_v10 = vpack.c.bf16 %v1018_v9, %v1018_v9 }
 0x668   : > { %2348 = vmatmul.mubr.msk.bf16.vlgmr.msra.gmra.mrb[12].mxu0 %vm836_vm4, %v1019_v10 }
 0x669   : > { %2358 = vmatpush3.bf16.msra.mxu0 %v1125_v11  ;;  %2359 = vmatprep.mubr.msk.bf16.mxu0 %vm2695_vm1, %v2694_v8 }
 0x66a   : > { %2371 = vmatprep.subr.bf16.mxu0 %v2694_v8 }
 0x670   : > { %2360 = vmatmul.mubr.msk.bf16.vlgmr.msra.gmra.mrb[16].mxu0 %vm788_vm3, %v900_v12 }
 0x671   : > { %2373 = vmatprep.mubr.msk.bf16.mxu0 %vm2695_vm1, %v2694_v8  ;;  %2372 = vmatpush3.bf16.msra.mxu0 %v1231_v26 }
 0x672   : > { %2383 = vmatprep.subr.bf16.mxu0 %v2694_v8 }
 0x73b   : > { %v1066_v13 = vpop.f32.mrb[12].mxu0 }
 0x73c   : > { %v1072_v15 = vpack.c.bf16 %v1066_v13, %v1066_v13  ;;  %v2349_v16 = vpop.f32.mrb[13].mxu0 }
 0x73d   : > { %v1069_v17 = vpop.f32.mrb[14].mxu0 }
 0x73e   : > { %v2350_v18 = vpop.f32.mrb[15].mxu0  ;;  %2354 = vmatmul.mubr.msk.bf16.vlgmr.msra.gmra.mrb[8].mxu1 %vm788_vm3, %v1072_v15 }
 0x73f   : > { %2364 = vmatpush3.bf16.msra.mxu1 %v2550_v14  ;;  %2367 = vmatprep.mubr.msk.bf16.mxu1 %vm2695_vm1, %v2694_v8 }
 0x740   : > { %2365 = vmatprep.subr.bf16.mxu1 %v2694_v8 }
 0x743   : > { %2366 = vmatpush3.bf16.msra.mxu1 %v2551_v19  ;;  %v1161_v21 = vpop.f32.mrb[16].mxu0 }
 0x744   : > { %v2361_v22 = vpop.f32.mrb[17].mxu0  ;;  %2377 = vmatprep.subr.bf16.mxu1 %v2694_v8 }
 0x745   : > { %v1164_v23 = vpop.f32.mrb[18].mxu0  ;;  %v2211_v22 = vld [vmem:[%s3235_s6 + $0xc] sm:$0xf] }
 0x746   : > { %v2362_v24 = vpop.f32.mrb[19].mxu0  ;;  %2368 = vmatmul.mubr.msk.bf16.vlgmr.msra.gmra.mrb[12].mxu1 %vm697_vm0, %v2922_v20  ;;  %v1564_v23 = vsel %vm792_vm2, %v2211_v22, 0 }
 0x747   : > { %2379 = vmatprep.mubr.msk.bf16.mxu1 %vm2695_vm1, %v2694_v8  ;;  %2378 = vmatpush3.bf16.msra.mxu1 %v2552_v47  ;;  %v2556_v47 = vld [vmem:[%s3239_s10] sm:$0xff]  }
 0x748   : > { %2389 = vmatprep.subr.bf16.mxu1 %v2694_v8 }
 0x811   : > { %v1115_v27 = vpop.f32.mrb[8].mxu1 }
 0x812   : > { %v2996_v28 = vadd.f32 %v1161_v21, %v1115_v27  ;;  %v2355_v29 = vpop.f32.mrb[9].mxu1  ;;  %v2555_v21 = vld [vmem:[%s2884_s20 + $0x18] sm:$0xff]   ;;  %s672_s20 = sand.u32 1, %s2668_s22  }
 0x813   : > { %v1118_v30 = vpop.f32.mrb[10].mxu1  ;;  %s2152_s30 = sshll.u32 %s672_s20, 3  ;;  %s2030_s21 = scalar_lea.sflag [#allocation3], %s672_s20 }
 0x814   : > { %v2356_v31 = vpop.f32.mrb[11].mxu1  ;;  %s674_s4 = scalar_lea.vmem [#allocation2], %s2152_s30 }
 0x815   : > { %s2045_s29 = sshll.u32 %s674_s4, 4  ;;  %s3177_s29 = int_to_ptr.vmem [resolvable:$true] %s2045_s29 }
 0x816   : > { %s2598_s30 = scalar_lea.vmem %s3177_s29, 128  ;;  %p2605_p4 = scmp.lt.s32.totalorder %s3177_s29, %s2603_s25 }
 0x817   : > { %p2599_p0 = scmp.ne.s32.totalorder %s3177_s29, %s2598_s30  ;;  %p2606_p5 = scmp.lt.s32.totalorder %s2604_s3, %s2598_s30 }
 0x819   : > { %v1218_v32 = vpop.f32.mrb[12].mxu1  ;;  %p2600_p1 = pnand %p2599_p0, %p2853_p3  ;;  %p2607_p6 = por %p2606_p5, %p2605_p4 }
 0x81a   : > { %v1224_v33 = vpack.c.bf16 %v1218_v32, %v1218_v32  ;;  %v2369_v34 = vpop.f32.mrb[13].mxu1 }
 0x81b   : > { %v1221_v35 = vpop.f32.mrb[14].mxu1  ;;  %p2601_p2 = pneg %p2600_p1 }
 0x81c   : > { %v2370_v36 = vpop.f32.mrb[15].mxu1  ;;  %2374 = vmatmul.mubr.msk.bf16.vlgmr.msra.gmra.mrb[20].mxu0 %vm788_vm3, %v1224_v33 }
 0x81d   : > { %2385 = vmatprep.mubr.msk.bf16.mxu0 %vm2695_vm1, %v2694_v8  ;;  %2384 = vmatpush3.bf16.msra.mxu0 %v1344_v49  ;;  %v2213_v36 = vld [vmem:[%s3236_s7] ss:$0 sm:$0xff]  ;;  %v2561_v49 = vld [vmem:[%s3241_s12 + $0x8] sm:$0xff]   ;;  %p2608_p7 = pnand %p2607_p6, %p2601_p2 }
 0x81e   : > { %2397 = vmatprep.subr.bf16.mxu0 %v2694_v8 }
 0x8ef   : > { %v1267_v37 = vpop.f32.mrb[20].mxu0 }
 0x8f0   : > { %v2375_v38 = vpop.f32.mrb[21].mxu0  ;;  %v1273_v39 = vsel %vm836_vm4, %v1267_v37, -inf }
 0x8f1   : > { %1274 = vmax.xlane.f32.xlu0 %v1273_v39  ;;  %v1270_v40 = vpop.f32.mrb[22].mxu0 }
 0x8f2   : > { %v2376_v41 = vpop.f32.mrb[23].mxu0 }
 0x97e   : > { %v1275_v42 = vpop.xlane.xlu0 %1274 }
 0x97f   : > { %v1276_v43 = vsub.f32 %v1267_v37, %v1275_v42 }
 0x981   : > { %v1277_v44 = vmul.f32 1.442695, %v1276_v43 }
 0x983   : > { %2586 = vpow2.f32 %v1277_v44 }
 0x98d   : > { %v2587_v45 = vpop.eup %2586 }
 0x98e   : > { %v1279_v46 = vsel %vm836_vm4, %v2587_v45, 0.0 }
 0x98f   : > { %1280 = vadd.xlane.f32.xlu1 %v1279_v46 }
 0xa1c   : > { %v1281_v50 = vpop.xlane.xlu1 %1280 }
 0xa1d   : > { %2588 = vrcp.f32 %v1281_v50  ;;  %v2562_v50 = vld [vmem:[%s3241_s12 + $0x10] sm:$0xff]  }
 0xa27   : > { %v2589_v51 = vpop.eup %2588 }
 0xa28   : > { %v1283_v52 = vmul.f32 %v2589_v51, %v2587_v45  ;;  %v2563_v51 = vld [vmem:[%s3241_s12 + $0x18] sm:$0xff]  }
 0xa2a   : > { %v1284_v54 = vpack.c.bf16 %v1283_v52, %v1283_v52  ;;  %v2564_v52 = vld [vmem:[%s3241_s12 + $0x20] sm:$0xff]  }
 0xa2c   : > { %2380 = vmatmul.mubr.msk.bf16.vlgmr.msra.gmra.mrb[16].mxu1 %vm836_vm4, %v1284_v54 }
 0xa2d   : > { %2390 = vmatpush3.bf16.msra.mxu1 %v2553_v53  ;;  %2393 = vmatprep.mubr.msk.bf16.mxu1 %vm2695_vm1, %v2694_v8  ;;  %v2565_v53 = vld [vmem:[%s3241_s12 + $0x28] sm:$0xff]  }
 0xa2e   : > { %2391 = vmatprep.subr.bf16.mxu1 %v2694_v8 }
 0xa31   : > { %2392 = vmatpush3.bf16.msra.mxu1 %v2554_v55 }
 0xa32   : > { %2403 = vmatprep.subr.bf16.mxu1 %v2694_v8 }
 0xa34   : > { %2394 = vmatmul.mubr.msk.bf16.vlgmr.msra.gmra.mrb[20].mxu1 %vm697_vm0, %v2922_v20 }
 0xa35   : > { %2405 = vmatprep.mubr.msk.bf16.mxu1 %vm2695_vm1, %v2694_v8  ;;  %2404 = vmatpush3.bf16.msra.mxu1 %v2555_v21 }
 0xa36   : > { %2415 = vmatprep.subr.bf16.mxu1 %v2694_v8 }
 0xaff   : > { %v1331_v57 = vpop.f32.mrb[16].mxu1 }
 0xb00   : > { %v1337_v58 = vpack.c.bf16 %v1331_v57, %v1331_v57  ;;  %v2381_v59 = vpop.f32.mrb[17].mxu1 }
 0xb01   : > { %v1334_v61 = vpop.f32.mrb[18].mxu1 }
 0xb02   : > { %v2382_v62 = vpop.f32.mrb[19].mxu1  ;;  %2386 = vmatmul.mubr.msk.bf16.vlgmr.msra.gmra.mrb[24].mxu0 %vm788_vm3, %v1337_v58  ;;  %v2214_v58 = vld [vmem:[%s3237_s8] ss:$0 sm:$0xff] }
 0xb03   : > { %2398 = vmatpush3.bf16.msra.mxu0 %v1451_v60  ;;  %2399 = vmatprep.mubr.msk.bf16.mxu0 %vm2695_vm1, %v2694_v8  ;;  %v2215_v60 = vld [vmem:[%s3238_s9] ss:$0 sm:$0xff] }
 0xb04   : > { %2409 = vmatprep.subr.bf16.mxu0 %v2694_v8  ;;  %v2229_v62 = vld [vmem:[%s3243_s14] ss:$0 sm:$0xff] }
 0xb07   : > { %v1438_v20 = vpop.f32.mrb[20].mxu1 }
 0xb08   : > { %v1444_v63 = vpack.c.bf16 %v1438_v20, %v1438_v20  ;;  %v2395_v1 = vpop.f32.mrb[21].mxu1 }
 0xb09   : > { %v1441_v2 = vpop.f32.mrb[22].mxu1 }
 0xb0a   : > { %v2396_v3 = vpop.f32.mrb[23].mxu1  ;;  %2400 = vmatmul.mubr.msk.bf16.vlgmr.msra.gmra.mrb[28].mxu0 %vm788_vm3, %v1444_v63  ;;  %v2558_v63 = vld [vmem:[%s3245_s16] sm:$0xff]  }
 0xb0b   : > { %2411 = vmatprep.mubr.msk.bf16.mxu0 %vm2695_vm1, %v2694_v8  ;;  %2410 = vmatpush3.bf16.msra.mxu0 %v1564_v23  ;;  %v2230_v3 = vld [vmem:[%s3244_s15] ss:$0 sm:$0xff] }
 0xb0c   : > { %2423 = vmatprep.subr.bf16.mxu0 %v2694_v8 }
 0xbd5   : > { %v1380_v4 = vpop.f32.mrb[24].mxu0 }
 0xbd6   : > { %v1386_v5 = vadd.f32 %v1380_v4, %v2996_v28  ;;  %v2387_v6 = vpop.f32.mrb[25].mxu0  ;;  %v2559_v4 = vld [vmem:[%s3245_s16 + $0x8] sm:$0xff]  }
 0xbd7   : > { %v1383_v7 = vpop.f32.mrb[26].mxu0  ;;  %v2566_v6 = vld [vmem:[%s3247_s18] sm:$0xff]  }
 0xbd8   : > { %v2388_v9 = vpop.f32.mrb[27].mxu0 }
 0xbd9   : > { %v2567_v9 = vld [vmem:[%s3241_s12 + $0x30] sm:$0xff]  }
 0xbdd   : > { %v1487_v10 = vpop.f32.mrb[28].mxu0 }
 0xbde   : > { %v2401_v11 = vpop.f32.mrb[29].mxu0  ;;  %v1493_v12 = vsel %vm836_vm4, %v1487_v10, -inf }
 0xbdf   : > { %1494 = vmax.xlane.f32.xlu0 %v1493_v12  ;;  %v1490_v13 = vpop.f32.mrb[30].mxu0  ;;  %v2569_v11 = vld [vmem:[%s3241_s12 + $0x38] sm:$0xff]   ;;  %v2570_v12 = vld [vmem:[%s3247_s18 + $0x10] sm:$0xff]  }
 0xbe0   : > { %v2402_v14 = vpop.f32.mrb[31].mxu0  ;;  %v2571_v13 = vld [vmem:[%s3247_s18 + $0x18] sm:$0xff]  }
 0xbe1   : > { %v2572_v14 = vld [vmem:[%s3247_s18 + $0x20] sm:$0xff]  }
 0xc6c   : > { %v1495_v15 = vpop.xlane.xlu0 %1494 }
 0xc6d   : > { %v1496_v16 = vsub.f32 %v1487_v10, %v1495_v15  ;;  %v2568_v10 = vld [vmem:[%s3247_s18 + $0x8] sm:$0xff]  }
 0xc6e   : > { %v2573_v15 = vld [vmem:[%s3247_s18 + $0x28] sm:$0xff]  }
 0xc6f   : > { %v1497_v17 = vmul.f32 1.442695, %v1496_v16  ;;  %v2574_v16 = vld [vmem:[%s3247_s18 + $0x30] sm:$0xff]  }
 0xc71   : > { %2590 = vpow2.f32 %v1497_v17  ;;  %v2575_v17 = vld [vmem:[%s3247_s18 + $0x38] sm:$0xff]  }
 0xc7b   : > { %v2591_v18 = vpop.eup %2590 }
 0xc7c   : > { %v1499_v19 = vsel %vm836_vm4, %v2591_v18, 0.0 }
 0xc7d   : > { %1500 = vadd.xlane.f32.xlu1 %v1499_v19 }
 0xd0a   : > { %v1501_v24 = vpop.xlane.xlu1 %1500 }
 0xd0b   : > { %2592 = vrcp.f32 %v1501_v24 }
 0xd15   : > { %v2593_v25 = vpop.eup %2592 }
 0xd16   : > { %v1503_v26 = vmul.f32 %v2593_v25, %v2591_v18  ;;  %v2216_v18 = vld [vmem:[%s3240_s11] ss:$0 sm:$0xff] }
 0xd18   : > { %v1504_v27 = vpack.c.bf16 %v1503_v26, %v1503_v26 }
 0xd1a   : > { %2406 = vmatmul.mubr.msk.bf16.vlgmr.msra.gmra.mrb[24].mxu1 %vm836_vm4, %v1504_v27 }
 0xd1b   : > { %2419 = vmatprep.mubr.msk.bf16.mxu1 %vm2695_vm1, %v2694_v8  ;;  %2416 = vmatpush3.bf16.msra.mxu1 %v2556_v47 }
 0xd1c   : > { %2417 = vmatprep.subr.bf16.mxu1 %v2694_v8 }
 0xded   : > { %v1551_v28 = vpop.f32.mrb[24].mxu1 }
 0xdee   : > { %v1557_v29 = vpack.c.bf16 %v1551_v28, %v1551_v28  ;;  %v2407_v30 = vpop.f32.mrb[25].mxu1 }
 0xdef   : > { %v1554_v31 = vpop.f32.mrb[26].mxu1 }
 0xdf0   : > { %v2408_v32 = vpop.f32.mrb[27].mxu1  ;;  %2412 = vmatmul.mubr.msk.bf16.vlgmr.msra.gmra.mrb[32].mxu0 %vm788_vm3, %v1557_v29 }
 0xdf1   : > { %2439 = vmatprep.mubr.msk.bf16.mxu0 %vm2695_vm1, %v2694_v8  ;;  %2424 = vmatpush3.bf16.msra.mxu0 %v2560_v48 }
 0xdf2   : > { %2425 = vmatprep.subr.bf16.mxu0 %v2694_v8 }
 0xdf5   : > { %2426 = vmatpush3.bf16.msra.mxu0 %v2561_v49 }
 0xdf6   : > { %2427 = vmatprep.subr.bf16.mxu0 %v2694_v8 }
 0xdf9   : > { %2428 = vmatpush3.bf16.msra.mxu0 %v2562_v50 }
 0xdfa   : > { %2429 = vmatprep.subr.bf16.mxu0 %v2694_v8 }
 0xdfd   : > { %2430 = vmatpush3.bf16.msra.mxu0 %v2563_v51 }
 0xdfe   : > { %2431 = vmatprep.subr.bf16.mxu0 %v2694_v8 }
 0xe01   : > { %2432 = vmatpush3.bf16.msra.mxu0 %v2564_v52 }
 0xe02   : > { %2433 = vmatprep.subr.bf16.mxu0 %v2694_v8 }
 0xe05   : > { %2434 = vmatpush3.bf16.msra.mxu0 %v2565_v53 }
 0xe06   : > { %2435 = vmatprep.subr.bf16.mxu0 %v2694_v8 }
 0xe09   : > { %2436 = vmatpush3.bf16.msra.mxu0 %v2567_v9 }
 0xe0a   : > { %2437 = vmatprep.subr.bf16.mxu0 %v2694_v8 }
 0xe0d   : > { %2438 = vmatpush3.bf16.msra.mxu0 %v2569_v11 }
 0xec3   : > { %v1600_v33 = vpop.f32.mrb[32].mxu0 }
 0xec4   : > { %v1606_v34 = vadd.f32 %v1600_v33, %v1386_v5  ;;  %v2413_v35 = vpop.f32.mrb[33].mxu0 }
 0xec5   : > { %v1603_v37 = vpop.f32.mrb[34].mxu0 }
 0xec6   : > { %v1607_v38 = vadd.f32 %v1606_v34, %v2889_v0  ;;  %v2414_v39 = vpop.f32.mrb[35].mxu0  ;;  %v2557_v0 = vld [vmem:[%s3239_s10 + $0x8] sm:$0xff]  }
 0xec7   : > { %2418 = vmatpush3.bf16.msra.mxu1 %v2557_v0 }
 0xec8   : > { %v3054_v40 = vadd.f32 %v2213_v36, %v1607_v38  ;;  %2443 = vmatprep.subr.bf16.mxu1 %v2694_v8 }
 0xeca   : > { %v1618_v41 = vsel %vm697_vm0, %v3054_v40, 0.0 }
 0xecb   : > { %1619 = vadd.xlane.f32.xlu0 %v1618_v41 }
 0xf58   : > { %v1620_v42 = vpop.xlane.xlu0 %1619 }
 0xf59   : > { %v1621_v43 = vmul.f32 0.03125, %v1620_v42 }
 0xf5b   : > { %v1622_v44 = vsub.f32 %v3054_v40, %v1621_v43  ;;  %v2220_v43 = vld [vmem:[%s3242_s13] ss:$0 sm:$0xff] }
 0xf5d   : > { %v1623_v45 = vmul.f32 %v1622_v44, %v1622_v44 }
 0xf5f   : > { %v1624_v46 = vsel %vm697_vm0, %v1623_v45, 0.0 }
 0xf60   : > { %1625 = vadd.xlane.f32.xlu1 %v1624_v46  ;;  %v2235_v46 = vld [vmem:[%s3286_s28] ss:$0 sm:$0xff] }
 0xfed   : > { %v1626_v54 = vpop.xlane.xlu1 %1625 }
 0xfee   : > { %v1627_v55 = vmul.f32 0.03125, %v1626_v54 }
 0xff0   : > { %v1628_v56 = vadd.f32 1e-05, %v1627_v55 }
 0xff2   : > { %2594 = vrsqrt.f32 %v1628_v56 }
 0xffc   : > { %v2595_v57 = vpop.eup %2594 }
 0xffd   : > { %v1630_v59 = vmul.f32 %v2595_v57, %v1622_v44 }
 0xfff   : > { %v1637_v61 = vmul.f32 %v2214_v58, %v1630_v59  ;;  %v1833_v1 = vmul.f32 %v2229_v62, %v1630_v59 }
0x1001   : > { %v1644_v20 = vadd.f32 %v2215_v60, %v1637_v61  ;;  %v1840_v5 = vadd.f32 %v2230_v3, %v1833_v1 }
0x1003   : > { %v1645_v2 = vpack.c.bf16 %v1644_v20, %v1644_v20  ;;  %v1841_v7 = vpack.c.bf16 %v1840_v5, %v1840_v5 }
0x1005   : > { %2420 = vmatmul.mubr.msk.bf16.vlgmr.msra.gmra.mrb[28].mxu1 %vm697_vm0, %v1645_v2 }
0x1006   : > { %2444 = vmatpush3.bf16.msra.mxu1 %v2558_v63  ;;  %2447 = vmatprep.mubr.msk.bf16.mxu1 %vm2695_vm1, %v2694_v8 }
0x1007   : > { %2445 = vmatprep.subr.bf16.mxu1 %v2694_v8 }
0x100a   : > { %2446 = vmatpush3.bf16.msra.mxu1 %v2559_v4 }
0x100b   : > { %2451 = vmatprep.subr.bf16.mxu1 %v2694_v8 }
0x100d   : > { %2448 = vmatmul.mubr.msk.bf16.vlgmr.msra.gmra.mrb[32].mxu1 %vm697_vm0, %v1841_v7 }
0x100e   : > { %2452 = vmatpush3.bf16.msra.mxu1 %v2566_v6  ;;  %2467 = vmatprep.mubr.msk.bf16.mxu1 %vm2695_vm1, %v2694_v8 }
0x100f   : > { %2453 = vmatprep.subr.bf16.mxu1 %v2694_v8 }
0x1012   : > { %2454 = vmatpush3.bf16.msra.mxu1 %v2568_v10 }
0x1013   : > { %2455 = vmatprep.subr.bf16.mxu1 %v2694_v8 }
0x1016   : > { %2456 = vmatpush3.bf16.msra.mxu1 %v2570_v12 }
0x1017   : > { %2457 = vmatprep.subr.bf16.mxu1 %v2694_v8 }
0x101a   : > { %2458 = vmatpush3.bf16.msra.mxu1 %v2571_v13 }
0x101b   : > { %2459 = vmatprep.subr.bf16.mxu1 %v2694_v8 }
0x101e   : > { %2460 = vmatpush3.bf16.msra.mxu1 %v2572_v14 }
0x101f   : > { %2461 = vmatprep.subr.bf16.mxu1 %v2694_v8 }
0x1022   : > { %2462 = vmatpush3.bf16.msra.mxu1 %v2573_v15 }
0x1023   : > { %2463 = vmatprep.subr.bf16.mxu1 %v2694_v8 }
0x1026   : > { %2464 = vmatpush3.bf16.msra.mxu1 %v2574_v16 }
0x1027   : > { %2465 = vmatprep.subr.bf16.mxu1 %v2694_v8  ;;  %v2231_v8 = vld [vmem:[%s3246_s17] ss:$0 sm:$0xff] }
0x102a   : > { %2466 = vmatpush3.bf16.msra.mxu1 %v2575_v17 }
0x10d8   : > { %v1706_v19 = vpop.f32.mrb[28].mxu1 }
0x10d9   : > { %v1707_v21 = vadd.f32 %v2216_v18, %v1706_v19  ;;  %v2421_v22 = vpop.f32.mrb[29].mxu1 }
0x10da   : > { %v1709_v23 = vpop.f32.mrb[30].mxu1 }
0x10db   : > { %v1712_v24 = vmax.f32 %v1707_v21, 0.0  ;;  %v2422_v25 = vpop.f32.mrb[31].mxu1 }
0x10dd   : > { %v1713_v26 = vpack.c.bf16 %v1712_v24, %v1712_v24 }
0x10df   : > { %2440 = vmatmul.mubr.bf16.vlgmr.msra.gmra.mrb[36].mxu0 %v1713_v26 }
0x10e0   : > { %v1902_v27 = vpop.f32.mrb[32].mxu1 }
0x10e1   : > { %v1903_v28 = vadd.f32 %v2231_v8, %v1902_v27  ;;  %v2449_v29 = vpop.f32.mrb[33].mxu1 }
0x10e2   : > { %v1905_v30 = vpop.f32.mrb[34].mxu1 }
0x10e3   : > { %v1909_v31 = vmul.f32 0.70710677, %v1903_v28  ;;  %v2450_v32 = vpop.f32.mrb[35].mxu1  ;;  %v1908_v34 = vmul.f32 0.5, %v1903_v28 }
0x10e5   : > { %2596 = verf.f32 %v1909_v31 }
0x10ef   : > { %v2597_v33 = vpop.eup %2596 }
0x10f0   : > { %v1911_v35 = vadd.f32 1.0, %v2597_v33 }
0x10f2   : > { %v1912_v36 = vmul.f32 %v1911_v35, %v1908_v34 }
0x10f4   : > { %v1913_v37 = vpack.c.bf16 %v1912_v36, %v1912_v36 }
0x10f6   : > { %2468 = vmatmul.mubr.bf16.vlgmr.msra.gmra.mrb[36].mxu1 %v1913_v37 }
0x11b2   : > { %v1819_v38 = vpop.f32.mrb[36].mxu0 }
0x11b3   : > { %v2441_v39 = vpop.f32.mrb[37].mxu0  ;;  %v1820_v44 = vadd.f32 %v2220_v43, %v1819_v38 }
0x11b4   : > { %v1822_v41 = vpop.f32.mrb[38].mxu0 }
0x11b5   : > { %v2442_v42 = vpop.f32.mrb[39].mxu0  ;;  %v2025_v45 = vmul.f32 0.5, %v1820_v44 }
0x11b7   : > { %v2026_v0 = vadd.f32 %v2025_v45, %v3054_v40 }
0x11c9   : > { %v2019_v47 = vpop.f32.mrb[36].mxu1 }
0x11ca   : > { %v2020_v48 = vadd.f32 %v2235_v46, %v2019_v47  ;;  %v2469_v49 = vpop.f32.mrb[37].mxu1 }
0x11cb   : > { %v2022_v50 = vpop.f32.mrb[38].mxu1 }
0x11cc   : > { %v2027_v51 = vadd.f32 %v2026_v0, %v2020_v48  ;;  %v2470_v52 = vpop.f32.mrb[39].mxu1 }
0x11ce   : > { %2028 = vst.msk [vmem:[%s674_s4] sm:$0xff] %vm697_vm0, %v2027_v51 }
0x11cf   : > { %2611 = shalt.err (!%p2608_p7)
}
0x11d0   : > { %s2612_s20 = scalar_lea.hbm %s3175_s24, 128  ;;  %s2616_s26 = scalar_lea.hbm %s3288_s19, 512 }
0x11d1   : > { %p2613_p9 = scmp.ne.s32.totalorder %s3175_s24, %s2612_s20  ;;  %p2617_p12 = scmp.lt.u32.totalorder %s3175_s24, %s3288_s19 }
0x11d2   : > { %p2618_p13 = scmp.lt.u32.totalorder %s2616_s26, %s2612_s20  ;;  %p2620_p1 = scmp.lt.u32.totalorder %s2612_s20, %s3175_s24 }
0x11d3   : > { %p2614_p10 = pnand %p2613_p9, %p2853_p3 }
0x11d4   : > { %p2619_p0 = por %p2618_p13, %p2617_p12 }
0x11d5   : > { %p2615_p11 = pneg %p2614_p10 }
0x11d6   : > { %p2621_p2 = por %p2620_p1, %p2619_p0 }
0x11d8   : > { %p2622_p4 = pnand %p2621_p2, %p2615_p11 }
0x11da   : > { %2625 = shalt.err (!%p2622_p4)
}
0x11db   : > { %2471 = dma.vmem_to_hbm [thread:$0]  (%p2853_p3), %s3177_s29, 128, %s3175_s24, %s2030_s21  }
0x11dc PF: > { %s3289_s2 = sld [smem:[#allocation9_spill]]  ;;  %s3290_s30 = sld [smem:[#allocation5_spill]] }
0x11e2   : > { %p2477_p5 = scmp.ge.s32.totalorder %s3289_s2, 2  ;;  %s2057_s25 = sand.u32 1, %s3290_s30  }
0x11e3   : > { %s2058_s3 = scalar_lea.sflag [#allocation3], %s2057_s25 }
0x11e4   : > { %p2474_p6 = pnand %p2477_p5, %p2862_p8 }
0x11e6   : > { %2659 = dma.done.wait (!%p2474_p6), %s2058_s3, 128  }
0x11e7   : > { %2661 = vsyncadd (!%p2474_p6), %s2058_s3, 4294967168  ;;  %s33_s26 = sadd.s32 1, %s3289_s2   ;;  %s3292_s20 = sld [smem:[#allocation6_spill]] }
0x11e8   : > { %p30_p7 = scmp.ge.s32.totalorder %s33_s26, 6   ;;  %s3293_s23 = sld [smem:[#allocation14_spill]] }
0x11e9   : > { %s3294_s24 = sld [smem:[#allocation7_spill]]  ;;  %s3295_s2 = sld [smem:[#allocation8_spill]] }
0x11ea   : > { %s3296_s25 = sld [smem:[#allocation10_spill]]  ;;  %s3297_s3 = sld [smem:[#allocation12_spill]] }
0x11eb   : > { %s3298_s1 = smov %s2668_s22  ;;  %32 = sbr.rel (!%p30_p7) target bundleno = 13 (0xd), region = 153 }
0x11ed   : > { %s3299_s22 = smov %s3292_s20 }
0x11f2   :  { %2063 = vsyncpa [#allocation3], 1 }
0x11f3   :  { %2065 = vsyncpa [#allocation3 + $0x1], 1 }

// kernel: tpu_custom_call.1
= control target key start
LH: loop header
LB: loop body
LE: loop exit
PB: predicated region body
PF: predicated region fallthrough
CT: control target
= control target key end

     0   :  { %s3229_s0 = inlined_call_operand.vmem [shape: f32[2,16,32], index: 0, kind: input, shape index: {}]   ;;  %s3230_s1 = inlined_call_operand.vmem [shape: bf16[2,4,8,16], index: 1, kind: input, shape index: {}]   ;;  %s3231_s2 = inlined_call_operand.vmem [shape: bf16[2,4,16,8], index: 2, kind: input, shape index: {}]   ;;  %s3232_s3 = inlined_call_operand.vmem [shape: f32[1,32], index: 3, kind: input, shape index: {}]   ;;  %s3233_s4 = inlined_call_operand.vmem [shape: f32[1,32], index: 4, kind: input, shape index: {}]   ;;  %s3234_s5 = inlined_call_operand.vmem [shape: bf16[4,32,8], index: 5, kind: input, shape index: {}]   ;;  %s3235_s6 = inlined_call_operand.vmem [shape: bf16[4,8,32], index: 6, kind: input, shape index: {}]   ;;  %s3236_s7 = inlined_call_operand.vmem [shape: f32[1,32], index: 7, kind: input, shape index: {}]   ;;  %s3237_s8 = inlined_call_operand.vmem [shape: f32[1,32], index: 8, kind: input, shape index: {}]   ;;  %s3238_s9 = inlined_call_operand.vmem [shape: f32[1,32], index: 9, kind: input, shape index: {}]   ;;  %s3239_s10 = inlined_call_operand.vmem [shape: bf16[32,128], index: 10, kind: input, shape index: {}]   ;;  %s3240_s11 = inlined_call_operand.vmem [shape: f32[1,128], index: 11, kind: input, shape index: {}]   ;;  %s3241_s12 = inlined_call_operand.vmem [shape: bf16[128,32], index: 12, kind: input, shape index: {}]   ;;  %s3242_s13 = inlined_call_operand.vmem [shape: f32[1,32], index: 13, kind: input, shape index: {}]   ;;  %s3243_s14 = inlined_call_operand.vmem [shape: f32[1,32], index: 14, kind: input, shape index: {}]   ;;  %s3244_s15 = inlined_call_operand.vmem [shape: f32[1,32], index: 15, kind: input, shape index: {}]   ;;  %s3245_s16 = inlined_call_operand.vmem [shape: bf16[32,128], index: 16, kind: input, shape index: {}]   ;;  %s3246_s17 = inlined_call_operand.vmem [shape: f32[1,128], index: 17, kind: input, shape index: {}]   ;;  %s3247_s18 = inlined_call_operand.vmem [shape: bf16[128,32], index: 18, kind: input, shape index: {}]   ;;  %s3248_s19 = inlined_call_operand.vmem [shape: f32[1,32], index: 19, kind: input, shape index: {}]   ;;  %s3249_s20 = inlined_call_operand.hbm [shape: f32[2,16,32], index: 20, kind: output, shape index: {}]  }
   0x1   :  { %3262 = sst [smem:[#allocation15_spill]] %s3229_s0 }
   0x2   :  { %3263 = sst [smem:[#allocation16_spill]] %s3230_s1 }
   0x3   :  { %3264 = sst [smem:[#allocation17_spill]] %s3231_s2 }
   0x4   :  { %3265 = sst [smem:[#allocation18_spill]] %s3232_s3 }
   0x5   :  { %3266 = sst [smem:[#allocation19_spill]] %s3233_s4 }
   0x6   :  { %3267 = sst [smem:[#allocation20_spill]] %s3248_s19 }
   0x7   :  { %3268 = sst [smem:[#allocation21_spill]] %s3249_s20 }
   0x8   :  { %25 = vsyncpa [#allocation3], 0 }
   0x9   :  { %27 = vsyncpa [#allocation3 + $0x1], 0  ;;  %s2802_s1 = smov 0   ;;  %s2804_s22 = smov 0  }
   0xa   :  { %s2806_s23 = smov 0   ;;  %s2808_s24 = smov 0  }
   0xb   :  { %s2810_s2 = smov 0   ;;  %s2812_s25 = smov 0  }
   0xc   :  { %s2814_s3 = smov 0   ;;  %s2816_s26 = smov 0  }
   0xd LB: > { %3269 = sst [smem:[#allocation5_spill]] %s2664_s1  ;;  %s2147_s27 = sadd.s32 4294967295, %s2692_s26   ;;  %s2692_s26 = sphi %s2816_s26, %s33_s26   ;;  %s2688_s3 = sphi %s2814_s3, %s3297_s3   ;;  %s2684_s25 = sphi %s2812_s25, %s3296_s25   ;;  %s2680_s2 = sphi %s2810_s2, %s3295_s2   ;;  %s2676_s24 = sphi %s2808_s24, %s3294_s24   ;;  %s2672_s23 = sphi %s2806_s23, %s3293_s23   ;;  %s2668_s22 = sphi %s2804_s22, %s3299_s22   ;;  %s2664_s1 = sphi %s2802_s1, %s3298_s1  }
   0xe   : > { %3270 = sst [smem:[#allocation6_spill]] %s2672_s23  ;;  %s2148_s28 = sadd.s32 4294967294, %s2692_s26  }
   0xf   : > { %3271 = sst [smem:[#allocation7_spill]] %s2684_s25  ;;  %s42_s4 = sadd.s32 1, %s2684_s25 }
  0x10   : > { %3272 = sst [smem:[#allocation8_spill]] %s2688_s3  ;;  %p43_p0 = scmp.ge.s32.totalorder %s42_s4, 2 }
  0x11   : > { %3273 = sst [smem:[#allocation9_spill]] %s2692_s26  ;;  %s45_s29 = sadd.s32 1, %s2688_s3 }
  0x12   : > { %p501_p1 = scmp.ne.s32.totalorder %s2672_s23, %s2668_s22  ;;  %p502_p2 = scmp.eq.s32.totalorder %s2147_s27, 3 }
  0x13   : > { %s3301_s4 = smov (%p43_p0, %s42_s4), 0  ;;  %s3303_s29 = smov (!%p43_p0, %s45_s29), %s2688_s3 }
  0x14   : > { %3274 = sst [smem:[#allocation10_spill]] %s3301_s4  ;;  %s487_s30 = ssub.s32 %s2684_s25, %s3301_s4 }
  0x15   : > { %p2853_p3 = por %p502_p2, %p501_p1  ;;  %p47_p4 = scmp.ge.s32.totalorder %s3303_s29, 2 }
  0x16   : > { %p507_p5 = scmp.ne.s32.totalorder %s2668_s22, %s2664_s1  ;;  %p508_p6 = scmp.eq.s32.totalorder %s2148_s28, 3 }
  0x17   : > { %s3275_s0 = scalar_select %p2853_p3, 1, 0 }
  0x18   : > { %p2151_p7 = scmp.ge.s32.totalorder %s2692_s26, 1  ;;  %s3305_s29 = smov (%p47_p4, %s3303_s29), 0 }
  0x19   : > { %3276 = sst [smem:[#allocation11_spill]] %s3275_s0  ;;  %p2862_p8 = por %p508_p6, %p507_p5 }
  0x1a   : > { %3277 = sst [smem:[#allocation12_spill]] %s3305_s29  ;;  %p604_p9 = scmp.lt.s32.totalorder %s2692_s26, 5 }
  0x1b   : > { %s3278_s21 = scalar_select %p2862_p8, 1, 0 }
  0x1c   : > { %s486_s27 = ssub.s32 %s2688_s3, %s3305_s29  ;;  %s491_s20 = sadd.s32 1, %s2672_s23 }
  0x1d   : > { %3279 = sst [smem:[#allocation13_spill]] %s3278_s21  ;;  %s488_s19 = sor.u32 %s487_s30, %s486_s27 }
  0x1e   : > { %p605_p10 = pnand %p2151_p7, %p604_p9  ;;  %p489_p11 = scmp.eq.s32.totalorder %s488_s19, 0 }
  0x1f   : > { %p675_p12 = scmp.lt.s32.totalorder (!%p605_p10), %s2680_s2, 1  ;;  %p677_p13 = scmp.lt.s32.totalorder (!%p605_p10), %s2676_s24, 1  ;;  %vm697_vm0 = vcmask (!%p605_p10), 261120   ;;  %v2544_v7 = vld [vmem:[%s3234_s5] sm:$0xff] (!%p605_p10)   ;;  %v2694_v8 = vmov (!%p605_p10), 0.0   ;;  %vm2695_vm1 = vmmov (!%p605_p10), 0  }
  0x20   : > { %s2871_s4 = scalar_select %p489_p11, %s2672_s23, %s491_s20  }
  0x21   : > { %608 = sbr.rel (%p605_p10) target bundleno = 4572 (0x11dc), region = 100  ;;  %s3281_s19 = sld [smem:[#allocation17_spill]] (!%p605_p10)  ;;  %2311 = vmatprep.subr.bf16.mxu0 (!%p605_p10), %v2694_v8  ;;  %2315 = vmatprep.mubr.msk.bf16.mxu0 (!%p605_p10), %vm2695_vm1, %v2694_v8  ;;  %v2545_v9 = vld [vmem:[%s3234_s5 + $0x8] sm:$0xff] (!%p605_p10)   ;;  %vm792_vm2 = vcmask (!%p605_p10), 1043456   ;;  %vm788_vm3 = vcmask (!%p605_p10), 64512   ;;  %v2546_v23 = vld [vmem:[%s3234_s5 + $0x10] sm:$0xff] (!%p605_p10)  }
  0x22   : > { %3280 = sst [smem:[#allocation14_spill]] %s2871_s4  ;;  %s3282_s26 = sld [smem:[#allocation15_spill]] (!%p605_p10)  ;;  %2312 = vmatpush3.bf16.msra.mxu0 (!%p605_p10), %v2544_v7  ;;  %2325 = vmatprep.subr.bf16.mxu1 (!%p605_p10), %v2694_v8  ;;  %v2547_v28 = vld [vmem:[%s3234_s5 + $0x18] sm:$0xff] (!%p605_p10)   ;;  %vm836_vm4 = vcmask (!%p605_p10), 130048   ;;  %v901_v7 = vld [vmem:[%s3235_s6] sm:$0xf] (!%p605_p10) }
  0x23   : > { %2313 = vmatprep.subr.bf16.mxu0 (!%p605_p10), %v2694_v8  ;;  %2327 = vmatprep.mubr.msk.bf16.mxu1 (!%p605_p10), %vm2695_vm1, %v2694_v8  ;;  %s3284_s27 = sld [smem:[#allocation16_spill]] (!%p605_p10)  ;;  %s3285_s1 = sld [smem:[#allocation19_spill]] (!%p605_p10) }
  0x26   : > { %2314 = vmatpush3.bf16.msra.mxu0 (!%p605_p10), %v2545_v9 }
  0x27   : > { %2319 = vmatprep.subr.bf16.mxu0 (!%p605_p10), %v2694_v8 }
  0x28   : > { %s2876_s28 = scalar_select %p675_p12, %s2680_s2, 1 }
  0x29   : > { %s678_s25 = scalar_select %p677_p13, %s2676_s24, 1  ;;  %v2160_v16 = vld [vmem:[%s3285_s1] ss:$0 sm:$0xff] }
  0x2a   : > { %s2153_s21 = sshll.u32 %s2876_s28, 1  ;;  %s2250_s29 = sshll.u32 %s2876_s28, 5 }
  0x2b   : > { %s680_s3 = sadd.s32 %s2153_s21, %s678_s25  ;;  %s2884_s20 = scalar_lea.vmem %s3281_s19, %s2250_s29 }
  0x2c   : > { %s2154_s4 = sshll.u32 %s680_s3, 3  ;;  %v2548_v43 = vld [vmem:[%s2884_s20] sm:$0xff]  }
  0x2d   : > { %s682_s0 = scalar_lea.vmem %s3282_s26, %s2154_s4  ;;  %s2249_s26 = sshll.u32 %s2876_s28, 4  ;;  %2326 = vmatpush3.bf16.msra.mxu1 %v2548_v43 }
  0x2e   : > { %v2889_v0 = vld [vmem:[%s682_s0] sm:$0xff]  ;;  %s3283_s0 = sld [smem:[#allocation18_spill]]  ;;  %s2916_s19 = scalar_lea.vmem %s3284_s27, %s2249_s26  ;;  %2339 = vmatprep.subr.bf16.mxu1 %v2694_v8 }
  0x2f   : > { %v698_v1 = vsel %vm697_vm0, %v2889_v0, 0.0  ;;  %v787_v18 = vld [vmem:[%s2916_s19] sm:$0xf]  ;;  %v2174_v46 = vld [vmem:[%s2916_s19 + $0x4] sm:$0xf]  ;;  %s2245_s27 = sshll.u32 %s2680_s2, 1 }
  0x30   : > { %699 = vadd.xlane.f32.xlu0 %v698_v1  ;;  %v794_v21 = vsel %vm792_vm2, %v787_v18, 0  ;;  %v966_v49 = vsel %vm792_vm2, %v2174_v46, 0  ;;  %s2041_s25 = sadd.s32 %s2676_s24, %s2245_s27  ;;  %s3286_s28 = sld [smem:[#allocation20_spill]] }
  0x31   : > { %s2246_s26 = sshll.u32 %s2041_s25, 7  ;;  %s2696_s27 = smov [#allocation2]  }
  0x32   : > { %s2602_s25 = sshll.u32 %s2696_s27, 4  ;;  %s2603_s25 = int_to_ptr.vmem [resolvable:$false] %s2602_s25 }
  0x33   : > { %s2604_s3 = scalar_lea.vmem %s2603_s25, 256 }
  0x34   : > { %v2159_v14 = vld [vmem:[%s3283_s0] ss:$0 sm:$0xff] }
  0xbd   : > { %v700_v2 = vpop.xlane.xlu0 %699 }
  0xbe   : > { %v702_v3 = vmul.f32 0.03125, %v700_v2  ;;  %v2549_v2 = vld [vmem:[%s2884_s20 + $0x8] sm:$0xff]  }
  0xc0   : > { %v703_v4 = vsub.f32 %v2889_v0, %v702_v3  ;;  %v2180_v3 = vld [vmem:[%s3235_s6 + $0x4] sm:$0xf] }
  0xc2   : > { %v704_v5 = vmul.f32 %v703_v4, %v703_v4 }
  0xc4   : > { %v705_v6 = vsel %vm697_vm0, %v704_v5, 0.0 }
  0xc5   : > { %706 = vadd.xlane.f32.xlu0 %v705_v6 }
 0x152   : > { %v707_v10 = vpop.xlane.xlu0 %706 }
 0x153   : > { %v708_v11 = vmul.f32 0.03125, %v707_v10 }
 0x155   : > { %v709_v12 = vadd.f32 1e-05, %v708_v11  ;;  %v1125_v11 = vsel %vm792_vm2, %v901_v7, 0 }
 0x157   : > { %2576 = vrsqrt.f32 %v709_v12 }
 0x161   : > { %v2577_v13 = vpop.eup %2576 }
 0x162   : > { %v711_v15 = vmul.f32 %v2577_v13, %v703_v4  ;;  %v1079_v4 = vsel %vm792_vm2, %v2180_v3, 0 }
 0x164   : > { %v718_v17 = vmul.f32 %v2159_v14, %v711_v15  ;;  %v2550_v14 = vld [vmem:[%s3234_s5 + $0x20] sm:$0xff]  }
 0x166   : > { %v725_v19 = vadd.f32 %v2160_v16, %v718_v17 }
 0x168   : > { %v2922_v20 = vpack.c.bf16 %v725_v19, %v725_v19  ;;  %v2551_v19 = vld [vmem:[%s3234_s5 + $0x28] sm:$0xff]  }
 0x16a   : > { %2316 = vmatmul.mubr.msk.bf16.vlgmr.msra.gmra.mrb[0].mxu0 %vm697_vm0, %v2922_v20 }
 0x16b   : > { %2320 = vmatpush3.bf16.msra.mxu0 %v794_v21  ;;  %2321 = vmatprep.mubr.msk.bf16.mxu0 %vm2695_vm1, %v2694_v8 }
 0x16c   : > { %2331 = vmatprep.subr.bf16.mxu0 %v2694_v8 }
 0x23d   : > { %v780_v22 = vpop.f32.mrb[0].mxu0 }
 0x23e   : > { %v786_v24 = vpack.c.bf16 %v780_v22, %v780_v22  ;;  %v2317_v25 = vpop.f32.mrb[1].mxu0 }
 0x23f   : > { %v783_v26 = vpop.f32.mrb[2].mxu0  ;;  %v2190_v25 = vld [vmem:[%s2916_s19 + $0x8] sm:$0xf] }
 0x240   : > { %v2318_v27 = vpop.f32.mrb[3].mxu0  ;;  %2322 = vmatmul.mubr.msk.bf16.vlgmr.msra.gmra.mrb[4].mxu0 %vm788_vm3, %v786_v24  ;;  %v1231_v26 = vsel %vm792_vm2, %v2190_v25, 0 }
 0x241   : > { %2332 = vmatpush3.bf16.msra.mxu0 %v2546_v23  ;;  %2335 = vmatprep.mubr.msk.bf16.mxu0 %vm2695_vm1, %v2694_v8 }
 0x242   : > { %2333 = vmatprep.subr.bf16.mxu0 %v2694_v8 }
 0x245   : > { %2334 = vmatpush3.bf16.msra.mxu0 %v2547_v28 }
 0x246   : > { %2345 = vmatprep.subr.bf16.mxu0 %v2694_v8 }
 0x248   : > { %2336 = vmatmul.mubr.msk.bf16.vlgmr.msra.gmra.mrb[8].mxu0 %vm697_vm0, %v2922_v20 }
 0x249   : > { %2347 = vmatprep.mubr.msk.bf16.mxu0 %vm2695_vm1, %v2694_v8  ;;  %2346 = vmatpush3.bf16.msra.mxu0 %v2549_v2 }
 0x24a   : > { %2357 = vmatprep.subr.bf16.mxu0 %v2694_v8 }
 0x313   : > { %v830_v29 = vpop.f32.mrb[4].mxu0 }
 0x314   : > { %v2323_v30 = vpop.f32.mrb[5].mxu0  ;;  %v837_v31 = vsel %vm836_vm4, %v830_v29, -inf }
 0x315   : > { %838 = vmax.xlane.f32.xlu1 %v837_v31  ;;  %v833_v32 = vpop.f32.mrb[6].mxu0 }
 0x316   : > { %v2324_v33 = vpop.f32.mrb[7].mxu0 }
 0x31b   : > { %v953_v34 = vpop.f32.mrb[8].mxu0 }
 0x31c   : > { %v2337_v35 = vpop.f32.mrb[9].mxu0  ;;  %v959_v50 = vpack.c.bf16 %v953_v34, %v953_v34 }
 0x31d   : > { %v956_v36 = vpop.f32.mrb[10].mxu0 }
 0x31e   : > { %v2338_v37 = vpop.f32.mrb[11].mxu0 }
 0x3a2   : > { %v839_v38 = vpop.xlane.xlu1 %838 }
 0x3a3   : > { %v840_v39 = vsub.f32 %v830_v29, %v839_v38 }
 0x3a5   : > { %v841_v40 = vmul.f32 1.442695, %v840_v39 }
 0x3a7   : > { %2578 = vpow2.f32 %v841_v40 }
 0x3b1   : > { %v2579_v41 = vpop.eup %2578 }
 0x3b2   : > { %v843_v42 = vsel %vm836_vm4, %v2579_v41, 0.0 }
 0x3b3   : > { %844 = vadd.xlane.f32.xlu1 %v843_v42 }
 0x440   : > { %v845_v44 = vpop.xlane.xlu1 %844 }
 0x441   : > { %2580 = vrcp.f32 %v845_v44 }
 0x44b   : > { %v2581_v45 = vpop.eup %2580 }
 0x44c   : > { %v847_v47 = vmul.f32 %v2581_v45, %v2579_v41 }
 0x44e   : > { %v848_v48 = vpack.c.bf16 %v847_v47, %v847_v47  ;;  %v2552_v47 = vld [vmem:[%s2884_s20 + $0x10] sm:$0xff]  }
 0x450   : > { %2328 = vmatmul.mubr.msk.bf16.vlgmr.msra.gmra.mrb[0].mxu1 %vm836_vm4, %v848_v48  ;;  %v2196_v48 = vld [vmem:[%s3235_s6 + $0x8] sm:$0xf] }
 0x451   : > { %2340 = vmatpush3.bf16.msra.mxu1 %v966_v49  ;;  %2341 = vmatprep.mubr.msk.bf16.mxu1 %vm2695_vm1, %v2694_v8  ;;  %v1344_v49 = vsel %vm792_vm2, %v2196_v48, 0  ;;  %v2560_v48 = vld [vmem:[%s3241_s12] sm:$0xff]  }
 0x452   : > { %2351 = vmatprep.subr.bf16.mxu1 %v2694_v8 }
 0x458   : > { %2342 = vmatmul.mubr.msk.bf16.vlgmr.msra.gmra.mrb[4].mxu1 %vm788_vm3, %v959_v50 }
 0x459   : > { %2353 = vmatprep.mubr.msk.bf16.mxu1 %vm2695_vm1, %v2694_v8  ;;  %2352 = vmatpush3.bf16.msra.mxu1 %v1079_v4 }
 0x45a   : > { %2363 = vmatprep.subr.bf16.mxu1 %v2694_v8 }
 0x523   : > { %v894_v51 = vpop.f32.mrb[0].mxu1 }
 0x524   : > { %v2329_v52 = vpop.f32.mrb[1].mxu1  ;;  %v900_v12 = vpack.c.bf16 %v894_v51, %v894_v51 }
 0x525   : > { %v897_v53 = vpop.f32.mrb[2].mxu1 }
 0x526   : > { %v2330_v54 = vpop.f32.mrb[3].mxu1  ;;  %v2553_v53 = vld [vmem:[%s3234_s5 + $0x30] sm:$0xff]  }
 0x52b   : > { %v1002_v55 = vpop.f32.mrb[4].mxu1 }
 0x52c   : > { %v2343_v56 = vpop.f32.mrb[5].mxu1  ;;  %v1008_v57 = vsel %vm836_vm4, %v1002_v55, -inf }
 0x52d   : > { %1009 = vmax.xlane.f32.xlu0 %v1008_v57  ;;  %v1005_v58 = vpop.f32.mrb[6].mxu1  ;;  %v2205_v56 = vld [vmem:[%s2916_s19 + $0xc] sm:$0xf]  ;;  %s3288_s19 = sld [smem:[#allocation21_spill]] }
 0x52e   : > { %v2344_v59 = vpop.f32.mrb[7].mxu1 }
 0x533   : > { %s3175_s24 = scalar_lea.hbm %s3288_s19, %s2246_s26 }
 0x5ba   : > { %v1010_v60 = vpop.xlane.xlu0 %1009 }
 0x5bb   : > { %v1011_v61 = vsub.f32 %v1002_v55, %v1010_v60  ;;  %v2554_v55 = vld [vmem:[%s3234_s5 + $0x38] sm:$0xff]   ;;  %v1451_v60 = vsel %vm792_vm2, %v2205_v56, 0 }
 0x5bd   : > { %v1012_v62 = vmul.f32 1.442695, %v1011_v61 }
 0x5bf   : > { %2582 = vpow2.f32 %v1012_v62 }
 0x5c9   : > { %v2583_v63 = vpop.eup %2582 }
 0x5ca   : > { %v1014_v1 = vsel %vm836_vm4, %v2583_v63, 0.0 }
 0x5cb   : > { %1015 = vadd.xlane.f32.xlu1 %v1014_v1 }
 0x658   : > { %v1016_v5 = vpop.xlane.xlu1 %1015 }
 0x659   : > { %2584 = vrcp.f32 %v1016_v5 }
 0x663   : > { %v2585_v6 = vpop.eup %2584 }
 0x664   : > { %v1018_v9 = vmul.f32 %v2585_v6, %v2583_v63 }
 0x666   : > { %v1019_v10 = vpack.c.bf16 %v1018_v9, %v1018_v9 }
 0x668   : > { %2348 = vmatmul.mubr.msk.bf16.vlgmr.msra.gmra.mrb[12].mxu0 %vm836_vm4, %v1019_v10 }
 0x669   : > { %2358 = vmatpush3.bf16.msra.mxu0 %v1125_v11  ;;  %2359 = vmatprep.mubr.msk.bf16.mxu0 %vm2695_vm1, %v2694_v8 }
 0x66a   : > { %2371 = vmatprep.subr.bf16.mxu0 %v2694_v8 }
 0x670   : > { %2360 = vmatmul.mubr.msk.bf16.vlgmr.msra.gmra.mrb[16].mxu0 %vm788_vm3, %v900_v12 }
 0x671   : > { %2373 = vmatprep.mubr.msk.bf16.mxu0 %vm2695_vm1, %v2694_v8  ;;  %2372 = vmatpush3.bf16.msra.mxu0 %v1231_v26 }
 0x672   : > { %2383 = vmatprep.subr.bf16.mxu0 %v2694_v8 }
 0x73b   : > { %v1066_v13 = vpop.f32.mrb[12].mxu0 }
 0x73c   : > { %v1072_v15 = vpack.c.bf16 %v1066_v13, %v1066_v13  ;;  %v2349_v16 = vpop.f32.mrb[13].mxu0 }
 0x73d   : > { %v1069_v17 = vpop.f32.mrb[14].mxu0 }
 0x73e   : > { %v2350_v18 = vpop.f32.mrb[15].mxu0  ;;  %2354 = vmatmul.mubr.msk.bf16.vlgmr.msra.gmra.mrb[8].mxu1 %vm788_vm3, %v1072_v15 }
 0x73f   : > { %2364 = vmatpush3.bf16.msra.mxu1 %v2550_v14  ;;  %2367 = vmatprep.mubr.msk.bf16.mxu1 %vm2695_vm1, %v2694_v8 }
 0x740   : > { %2365 = vmatprep.subr.bf16.mxu1 %v2694_v8 }
 0x743   : > { %2366 = vmatpush3.bf16.msra.mxu1 %v2551_v19  ;;  %v1161_v21 = vpop.f32.mrb[16].mxu0 }
 0x744   : > { %v2361_v22 = vpop.f32.mrb[17].mxu0  ;;  %2377 = vmatprep.subr.bf16.mxu1 %v2694_v8 }
 0x745   : > { %v1164_v23 = vpop.f32.mrb[18].mxu0  ;;  %v2211_v22 = vld [vmem:[%s3235_s6 + $0xc] sm:$0xf] }
 0x746   : > { %v2362_v24 = vpop.f32.mrb[19].mxu0  ;;  %2368 = vmatmul.mubr.msk.bf16.vlgmr.msra.gmra.mrb[12].mxu1 %vm697_vm0, %v2922_v20  ;;  %v1564_v23 = vsel %vm792_vm2, %v2211_v22, 0 }
 0x747   : > { %2379 = vmatprep.mubr.msk.bf16.mxu1 %vm2695_vm1, %v2694_v8  ;;  %2378 = vmatpush3.bf16.msra.mxu1 %v2552_v47  ;;  %v2556_v47 = vld [vmem:[%s3239_s10] sm:$0xff]  }
 0x748   : > { %2389 = vmatprep.subr.bf16.mxu1 %v2694_v8 }
 0x811   : > { %v1115_v27 = vpop.f32.mrb[8].mxu1 }
 0x812   : > { %v2996_v28 = vadd.f32 %v1161_v21, %v1115_v27  ;;  %v2355_v29 = vpop.f32.mrb[9].mxu1  ;;  %v2555_v21 = vld [vmem:[%s2884_s20 + $0x18] sm:$0xff]   ;;  %s672_s20 = sand.u32 1, %s2668_s22  }
 0x813   : > { %v1118_v30 = vpop.f32.mrb[10].mxu1  ;;  %s2152_s30 = sshll.u32 %s672_s20, 3  ;;  %s2030_s21 = scalar_lea.sflag [#allocation3], %s672_s20 }
 0x814   : > { %v2356_v31 = vpop.f32.mrb[11].mxu1  ;;  %s674_s4 = scalar_lea.vmem [#allocation2], %s2152_s30 }
 0x815   : > { %s2045_s29 = sshll.u32 %s674_s4, 4  ;;  %s3177_s29 = int_to_ptr.vmem [resolvable:$true] %s2045_s29 }
 0x816   : > { %s2598_s30 = scalar_lea.vmem %s3177_s29, 128  ;;  %p2605_p4 = scmp.lt.s32.totalorder %s3177_s29, %s2603_s25 }
 0x817   : > { %p2599_p0 = scmp.ne.s32.totalorder %s3177_s29, %s2598_s30  ;;  %p2606_p5 = scmp.lt.s32.totalorder %s2604_s3, %s2598_s30 }
 0x819   : > { %v1218_v32 = vpop.f32.mrb[12].mxu1  ;;  %p2600_p1 = pnand %p2599_p0, %p2853_p3  ;;  %p2607_p6 = por %p2606_p5, %p2605_p4 }
 0x81a   : > { %v1224_v33 = vpack.c.bf16 %v1218_v32, %v1218_v32  ;;  %v2369_v34 = vpop.f32.mrb[13].mxu1 }
 0x81b   : > { %v1221_v35 = vpop.f32.mrb[14].mxu1  ;;  %p2601_p2 = pneg %p2600_p1 }
 0x81c   : > { %v2370_v36 = vpop.f32.mrb[15].mxu1  ;;  %2374 = vmatmul.mubr.msk.bf16.vlgmr.msra.gmra.mrb[20].mxu0 %vm788_vm3, %v1224_v33 }
 0x81d   : > { %2385 = vmatprep.mubr.msk.bf16.mxu0 %vm2695_vm1, %v2694_v8  ;;  %2384 = vmatpush3.bf16.msra.mxu0 %v1344_v49  ;;  %v2213_v36 = vld [vmem:[%s3236_s7] ss:$0 sm:$0xff]  ;;  %v2561_v49 = vld [vmem:[%s3241_s12 + $0x8] sm:$0xff]   ;;  %p2608_p7 = pnand %p2607_p6, %p2601_p2 }
 0x81e   : > { %2397 = vmatprep.subr.bf16.mxu0 %v2694_v8 }
 0x8ef   : > { %v1267_v37 = vpop.f32.mrb[20].mxu0 }
 0x8f0   : > { %v2375_v38 = vpop.f32.mrb[21].mxu0  ;;  %v1273_v39 = vsel %vm836_vm4, %v1267_v37, -inf }
 0x8f1   : > { %1274 = vmax.xlane.f32.xlu0 %v1273_v39  ;;  %v1270_v40 = vpop.f32.mrb[22].mxu0 }
 0x8f2   : > { %v2376_v41 = vpop.f32.mrb[23].mxu0 }
 0x97e   : > { %v1275_v42 = vpop.xlane.xlu0 %1274 }
 0x97f   : > { %v1276_v43 = vsub.f32 %v1267_v37, %v1275_v42 }
 0x981   : > { %v1277_v44 = vmul.f32 1.442695, %v1276_v43 }
 0x983   : > { %2586 = vpow2.f32 %v1277_v44 }
 0x98d   : > { %v2587_v45 = vpop.eup %2586 }
 0x98e   : > { %v1279_v46 = vsel %vm836_vm4, %v2587_v45, 0.0 }
 0x98f   : > { %1280 = vadd.xlane.f32.xlu1 %v1279_v46 }
 0xa1c   : > { %v1281_v50 = vpop.xlane.xlu1 %1280 }
 0xa1d   : > { %2588 = vrcp.f32 %v1281_v50  ;;  %v2562_v50 = vld [vmem:[%s3241_s12 + $0x10] sm:$0xff]  }
 0xa27   : > { %v2589_v51 = vpop.eup %2588 }
 0xa28   : > { %v1283_v52 = vmul.f32 %v2589_v51, %v2587_v45  ;;  %v2563_v51 = vld [vmem:[%s3241_s12 + $0x18] sm:$0xff]  }
 0xa2a   : > { %v1284_v54 = vpack.c.bf16 %v1283_v52, %v1283_v52  ;;  %v2564_v52 = vld [vmem:[%s3241_s12 + $0x20] sm:$0xff]  }
 0xa2c   : > { %2380 = vmatmul.mubr.msk.bf16.vlgmr.msra.gmra.mrb[16].mxu1 %vm836_vm4, %v1284_v54 }
 0xa2d   : > { %2390 = vmatpush3.bf16.msra.mxu1 %v2553_v53  ;;  %2393 = vmatprep.mubr.msk.bf16.mxu1 %vm2695_vm1, %v2694_v8  ;;  %v2565_v53 = vld [vmem:[%s3241_s12 + $0x28] sm:$0xff]  }
 0xa2e   : > { %2391 = vmatprep.subr.bf16.mxu1 %v2694_v8 }
 0xa31   : > { %2392 = vmatpush3.bf16.msra.mxu1 %v2554_v55 }
 0xa32   : > { %2403 = vmatprep.subr.bf16.mxu1 %v2694_v8 }
 0xa34   : > { %2394 = vmatmul.mubr.msk.bf16.vlgmr.msra.gmra.mrb[20].mxu1 %vm697_vm0, %v2922_v20 }
 0xa35   : > { %2405 = vmatprep.mubr.msk.bf16.mxu1 %vm2695_vm1, %v2694_v8  ;;  %2404 = vmatpush3.bf16.msra.mxu1 %v2555_v21 }
 0xa36   : > { %2415 = vmatprep.subr.bf16.mxu1 %v2694_v8 }
 0xaff   : > { %v1331_v57 = vpop.f32.mrb[16].mxu1 }
 0xb00   : > { %v1337_v58 = vpack.c.bf16 %v1331_v57, %v1331_v57  ;;  %v2381_v59 = vpop.f32.mrb[17].mxu1 }
 0xb01   : > { %v1334_v61 = vpop.f32.mrb[18].mxu1 }
 0xb02   : > { %v2382_v62 = vpop.f32.mrb[19].mxu1  ;;  %2386 = vmatmul.mubr.msk.bf16.vlgmr.msra.gmra.mrb[24].mxu0 %vm788_vm3, %v1337_v58  ;;  %v2214_v58 = vld [vmem:[%s3237_s8] ss:$0 sm:$0xff] }
 0xb03   : > { %2398 = vmatpush3.bf16.msra.mxu0 %v1451_v60  ;;  %2399 = vmatprep.mubr.msk.bf16.mxu0 %vm2695_vm1, %v2694_v8  ;;  %v2215_v60 = vld [vmem:[%s3238_s9] ss:$0 sm:$0xff] }
 0xb04   : > { %2409 = vmatprep.subr.bf16.mxu0 %v2694_v8  ;;  %v2229_v62 = vld [vmem:[%s3243_s14] ss:$0 sm:$0xff] }
 0xb07   : > { %v1438_v20 = vpop.f32.mrb[20].mxu1 }
 0xb08   : > { %v1444_v63 = vpack.c.bf16 %v1438_v20, %v1438_v20  ;;  %v2395_v1 = vpop.f32.mrb[21].mxu1 }
 0xb09   : > { %v1441_v2 = vpop.f32.mrb[22].mxu1 }
 0xb0a   : > { %v2396_v3 = vpop.f32.mrb[23].mxu1  ;;  %2400 = vmatmul.mubr.msk.bf16.vlgmr.msra.gmra.mrb[28].mxu0 %vm788_vm3, %v1444_v63  ;;  %v2558_v63 = vld [vmem:[%s3245_s16] sm:$0xff]  }
 0xb0b   : > { %2411 = vmatprep.mubr.msk.bf16.mxu0 %vm2695_vm1, %v2694_v8  ;;  %2410 = vmatpush3.bf16.msra.mxu0 %v1564_v23  ;;  %v2230_v3 = vld [vmem:[%s3244_s15] ss:$0 sm:$0xff] }
 0xb0c   : > { %2423 = vmatprep.subr.bf16.mxu0 %v2694_v8 }
 0xbd5   : > { %v1380_v4 = vpop.f32.mrb[24].mxu0 }
 0xbd6   : > { %v1386_v5 = vadd.f32 %v1380_v4, %v2996_v28  ;;  %v2387_v6 = vpop.f32.mrb[25].mxu0  ;;  %v2559_v4 = vld [vmem:[%s3245_s16 + $0x8] sm:$0xff]  }
 0xbd7   : > { %v1383_v7 = vpop.f32.mrb[26].mxu0  ;;  %v2566_v6 = vld [vmem:[%s3247_s18] sm:$0xff]  }
 0xbd8   : > { %v2388_v9 = vpop.f32.mrb[27].mxu0 }
 0xbd9   : > { %v2567_v9 = vld [vmem:[%s3241_s12 + $0x30] sm:$0xff]  }
 0xbdd   : > { %v1487_v10 = vpop.f32.mrb[28].mxu0 }
 0xbde   : > { %v2401_v11 = vpop.f32.mrb[29].mxu0  ;;  %v1493_v12 = vsel %vm836_vm4, %v1487_v10, -inf }
 0xbdf   : > { %1494 = vmax.xlane.f32.xlu0 %v1493_v12  ;;  %v1490_v13 = vpop.f32.mrb[30].mxu0  ;;  %v2569_v11 = vld [vmem:[%s3241_s12 + $0x38] sm:$0xff]   ;;  %v2570_v12 = vld [vmem:[%s3247_s18 + $0x10] sm:$0xff]  }
 0xbe0   : > { %v2402_v14 = vpop.f32.mrb[31].mxu0  ;;  %v2571_v13 = vld [vmem:[%s3247_s18 + $0x18] sm:$0xff]  }
 0xbe1   : > { %v2572_v14 = vld [vmem:[%s3247_s18 + $0x20] sm:$0xff]  }
 0xc6c   : > { %v1495_v15 = vpop.xlane.xlu0 %1494 }
 0xc6d   : > { %v1496_v16 = vsub.f32 %v1487_v10, %v1495_v15  ;;  %v2568_v10 = vld [vmem:[%s3247_s18 + $0x8] sm:$0xff]  }
 0xc6e   : > { %v2573_v15 = vld [vmem:[%s3247_s18 + $0x28] sm:$0xff]  }
 0xc6f   : > { %v1497_v17 = vmul.f32 1.442695, %v1496_v16  ;;  %v2574_v16 = vld [vmem:[%s3247_s18 + $0x30] sm:$0xff]  }
 0xc71   : > { %2590 = vpow2.f32 %v1497_v17  ;;  %v2575_v17 = vld [vmem:[%s3247_s18 + $0x38] sm:$0xff]  }
 0xc7b   : > { %v2591_v18 = vpop.eup %2590 }
 0xc7c   : > { %v1499_v19 = vsel %vm836_vm4, %v2591_v18, 0.0 }
 0xc7d   : > { %1500 = vadd.xlane.f32.xlu1 %v1499_v19 }
 0xd0a   : > { %v1501_v24 = vpop.xlane.xlu1 %1500 }
 0xd0b   : > { %2592 = vrcp.f32 %v1501_v24 }
 0xd15   : > { %v2593_v25 = vpop.eup %2592 }
 0xd16   : > { %v1503_v26 = vmul.f32 %v2593_v25, %v2591_v18  ;;  %v2216_v18 = vld [vmem:[%s3240_s11] ss:$0 sm:$0xff] }
 0xd18   : > { %v1504_v27 = vpack.c.bf16 %v1503_v26, %v1503_v26 }
 0xd1a   : > { %2406 = vmatmul.mubr.msk.bf16.vlgmr.msra.gmra.mrb[24].mxu1 %vm836_vm4, %v1504_v27 }
 0xd1b   : > { %2419 = vmatprep.mubr.msk.bf16.mxu1 %vm2695_vm1, %v2694_v8  ;;  %2416 = vmatpush3.bf16.msra.mxu1 %v2556_v47 }
 0xd1c   : > { %2417 = vmatprep.subr.bf16.mxu1 %v2694_v8 }
 0xded   : > { %v1551_v28 = vpop.f32.mrb[24].mxu1 }
 0xdee   : > { %v1557_v29 = vpack.c.bf16 %v1551_v28, %v1551_v28  ;;  %v2407_v30 = vpop.f32.mrb[25].mxu1 }
 0xdef   : > { %v1554_v31 = vpop.f32.mrb[26].mxu1 }
 0xdf0   : > { %v2408_v32 = vpop.f32.mrb[27].mxu1  ;;  %2412 = vmatmul.mubr.msk.bf16.vlgmr.msra.gmra.mrb[32].mxu0 %vm788_vm3, %v1557_v29 }
 0xdf1   : > { %2439 = vmatprep.mubr.msk.bf16.mxu0 %vm2695_vm1, %v2694_v8  ;;  %2424 = vmatpush3.bf16.msra.mxu0 %v2560_v48 }
 0xdf2   : > { %2425 = vmatprep.subr.bf16.mxu0 %v2694_v8 }
 0xdf5   : > { %2426 = vmatpush3.bf16.msra.mxu0 %v2561_v49 }
 0xdf6   : > { %2427 = vmatprep.subr.bf16.mxu0 %v2694_v8 }
 0xdf9   : > { %2428 = vmatpush3.bf16.msra.mxu0 %v2562_v50 }
 0xdfa   : > { %2429 = vmatprep.subr.bf16.mxu0 %v2694_v8 }
 0xdfd   : > { %2430 = vmatpush3.bf16.msra.mxu0 %v2563_v51 }
 0xdfe   : > { %2431 = vmatprep.subr.bf16.mxu0 %v2694_v8 }
 0xe01   : > { %2432 = vmatpush3.bf16.msra.mxu0 %v2564_v52 }
 0xe02   : > { %2433 = vmatprep.subr.bf16.mxu0 %v2694_v8 }
 0xe05   : > { %2434 = vmatpush3.bf16.msra.mxu0 %v2565_v53 }
 0xe06   : > { %2435 = vmatprep.subr.bf16.mxu0 %v2694_v8 }
 0xe09   : > { %2436 = vmatpush3.bf16.msra.mxu0 %v2567_v9 }
 0xe0a   : > { %2437 = vmatprep.subr.bf16.mxu0 %v2694_v8 }
 0xe0d   : > { %2438 = vmatpush3.bf16.msra.mxu0 %v2569_v11 }
 0xec3   : > { %v1600_v33 = vpop.f32.mrb[32].mxu0 }
 0xec4   : > { %v1606_v34 = vadd.f32 %v1600_v33, %v1386_v5  ;;  %v2413_v35 = vpop.f32.mrb[33].mxu0 }
 0xec5   : > { %v1603_v37 = vpop.f32.mrb[34].mxu0 }
 0xec6   : > { %v1607_v38 = vadd.f32 %v1606_v34, %v2889_v0  ;;  %v2414_v39 = vpop.f32.mrb[35].mxu0  ;;  %v2557_v0 = vld [vmem:[%s3239_s10 + $0x8] sm:$0xff]  }
 0xec7   : > { %2418 = vmatpush3.bf16.msra.mxu1 %v2557_v0 }
 0xec8   : > { %v3054_v40 = vadd.f32 %v2213_v36, %v1607_v38  ;;  %2443 = vmatprep.subr.bf16.mxu1 %v2694_v8 }
 0xeca   : > { %v1618_v41 = vsel %vm697_vm0, %v3054_v40, 0.0 }
 0xecb   : > { %1619 = vadd.xlane.f32.xlu0 %v1618_v41 }
 0xf58   : > { %v1620_v42 = vpop.xlane.xlu0 %1619 }
 0xf59   : > { %v1621_v43 = vmul.f32 0.03125, %v1620_v42 }
 0xf5b   : > { %v1622_v44 = vsub.f32 %v3054_v40, %v1621_v43  ;;  %v2220_v43 = vld [vmem:[%s3242_s13] ss:$0 sm:$0xff] }
 0xf5d   : > { %v1623_v45 = vmul.f32 %v1622_v44, %v1622_v44 }
 0xf5f   : > { %v1624_v46 = vsel %vm697_vm0, %v1623_v45, 0.0 }
 0xf60   : > { %1625 = vadd.xlane.f32.xlu1 %v1624_v46  ;;  %v2235_v46 = vld [vmem:[%s3286_s28] ss:$0 sm:$0xff] }
 0xfed   : > { %v1626_v54 = vpop.xlane.xlu1 %1625 }
 0xfee   : > { %v1627_v55 = vmul.f32 0.03125, %v1626_v54 }
 0xff0   : > { %v1628_v56 = vadd.f32 1e-05, %v1627_v55 }
 0xff2   : > { %2594 = vrsqrt.f32 %v1628_v56 }
 0xffc   : > { %v2595_v57 = vpop.eup %2594 }
 0xffd   : > { %v1630_v59 = vmul.f32 %v2595_v57, %v1622_v44 }
 0xfff   : > { %v1637_v61 = vmul.f32 %v2214_v58, %v1630_v59  ;;  %v1833_v1 = vmul.f32 %v2229_v62, %v1630_v59 }
0x1001   : > { %v1644_v20 = vadd.f32 %v2215_v60, %v1637_v61  ;;  %v1840_v5 = vadd.f32 %v2230_v3, %v1833_v1 }
0x1003   : > { %v1645_v2 = vpack.c.bf16 %v1644_v20, %v1644_v20  ;;  %v1841_v7 = vpack.c.bf16 %v1840_v5, %v1840_v5 }
0x1005   : > { %2420 = vmatmul.mubr.msk.bf16.vlgmr.msra.gmra.mrb[28].mxu1 %vm697_vm0, %v1645_v2 }
0x1006   : > { %2444 = vmatpush3.bf16.msra.mxu1 %v2558_v63  ;;  %2447 = vmatprep.mubr.msk.bf16.mxu1 %vm2695_vm1, %v2694_v8 }
0x1007   : > { %2445 = vmatprep.subr.bf16.mxu1 %v2694_v8 }
0x100a   : > { %2446 = vmatpush3.bf16.msra.mxu1 %v2559_v4 }
0x100b   : > { %2451 = vmatprep.subr.bf16.mxu1 %v2694_v8 }
0x100d   : > { %2448 = vmatmul.mubr.msk.bf16.vlgmr.msra.gmra.mrb[32].mxu1 %vm697_vm0, %v1841_v7 }
0x100e   : > { %2452 = vmatpush3.bf16.msra.mxu1 %v2566_v6  ;;  %2467 = vmatprep.mubr.msk.bf16.mxu1 %vm2695_vm1, %v2694_v8 }
0x100f   : > { %2453 = vmatprep.subr.bf16.mxu1 %v2694_v8 }
0x1012   : > { %2454 = vmatpush3.bf16.msra.mxu1 %v2568_v10 }
0x1013   : > { %2455 = vmatprep.subr.bf16.mxu1 %v2694_v8 }
0x1016   : > { %2456 = vmatpush3.bf16.msra.mxu1 %v2570_v12 }
0x1017   : > { %2457 = vmatprep.subr.bf16.mxu1 %v2694_v8 }
0x101a   : > { %2458 = vmatpush3.bf16.msra.mxu1 %v2571_v13 }
0x101b   : > { %2459 = vmatprep.subr.bf16.mxu1 %v2694_v8 }
0x101e   : > { %2460 = vmatpush3.bf16.msra.mxu1 %v2572_v14 }
0x101f   : > { %2461 = vmatprep.subr.bf16.mxu1 %v2694_v8 }
0x1022   : > { %2462 = vmatpush3.bf16.msra.mxu1 %v2573_v15 }
0x1023   : > { %2463 = vmatprep.subr.bf16.mxu1 %v2694_v8 }
0x1026   : > { %2464 = vmatpush3.bf16.msra.mxu1 %v2574_v16 }
0x1027   : > { %2465 = vmatprep.subr.bf16.mxu1 %v2694_v8  ;;  %v2231_v8 = vld [vmem:[%s3246_s17] ss:$0 sm:$0xff] }
0x102a   : > { %2466 = vmatpush3.bf16.msra.mxu1 %v2575_v17 }
0x10d8   : > { %v1706_v19 = vpop.f32.mrb[28].mxu1 }
0x10d9   : > { %v1707_v21 = vadd.f32 %v2216_v18, %v1706_v19  ;;  %v2421_v22 = vpop.f32.mrb[29].mxu1 }
0x10da   : > { %v1709_v23 = vpop.f32.mrb[30].mxu1 }
0x10db   : > { %v1712_v24 = vmax.f32 %v1707_v21, 0.0  ;;  %v2422_v25 = vpop.f32.mrb[31].mxu1 }
0x10dd   : > { %v1713_v26 = vpack.c.bf16 %v1712_v24, %v1712_v24 }
0x10df   : > { %2440 = vmatmul.mubr.bf16.vlgmr.msra.gmra.mrb[36].mxu0 %v1713_v26 }
0x10e0   : > { %v1902_v27 = vpop.f32.mrb[32].mxu1 }
0x10e1   : > { %v1903_v28 = vadd.f32 %v2231_v8, %v1902_v27  ;;  %v2449_v29 = vpop.f32.mrb[33].mxu1 }
0x10e2   : > { %v1905_v30 = vpop.f32.mrb[34].mxu1 }
0x10e3   : > { %v1909_v31 = vmul.f32 0.70710677, %v1903_v28  ;;  %v2450_v32 = vpop.f32.mrb[35].mxu1  ;;  %v1908_v34 = vmul.f32 0.5, %v1903_v28 }
0x10e5   : > { %2596 = verf.f32 %v1909_v31 }
0x10ef   : > { %v2597_v33 = vpop.eup %2596 }
0x10f0   : > { %v1911_v35 = vadd.f32 1.0, %v2597_v33 }
0x10f2   : > { %v1912_v36 = vmul.f32 %v1911_v35, %v1908_v34 }
0x10f4   : > { %v1913_v37 = vpack.c.bf16 %v1912_v36, %v1912_v36 }
0x10f6   : > { %2468 = vmatmul.mubr.bf16.vlgmr.msra.gmra.mrb[36].mxu1 %v1913_v37 }
0x11b2   : > { %v1819_v38 = vpop.f32.mrb[36].mxu0 }
0x11b3   : > { %v2441_v39 = vpop.f32.mrb[37].mxu0  ;;  %v1820_v44 = vadd.f32 %v2220_v43, %v1819_v38 }
0x11b4   : > { %v1822_v41 = vpop.f32.mrb[38].mxu0 }
0x11b5   : > { %v2442_v42 = vpop.f32.mrb[39].mxu0  ;;  %v2025_v45 = vmul.f32 0.5, %v1820_v44 }
0x11b7   : > { %v2026_v0 = vadd.f32 %v2025_v45, %v3054_v40 }
0x11c9   : > { %v2019_v47 = vpop.f32.mrb[36].mxu1 }
0x11ca   : > { %v2020_v48 = vadd.f32 %v2235_v46, %v2019_v47  ;;  %v2469_v49 = vpop.f32.mrb[37].mxu1 }
0x11cb   : > { %v2022_v50 = vpop.f32.mrb[38].mxu1 }
0x11cc   : > { %v2027_v51 = vadd.f32 %v2026_v0, %v2020_v48  ;;  %v2470_v52 = vpop.f32.mrb[39].mxu1 }
0x11ce   : > { %2028 = vst.msk [vmem:[%s674_s4] sm:$0xff] %vm697_vm0, %v2027_v51 }
0x11cf   : > { %2611 = shalt.err (!%p2608_p7)
}
0x11d0   : > { %s2612_s20 = scalar_lea.hbm %s3175_s24, 128  ;;  %s2616_s26 = scalar_lea.hbm %s3288_s19, 512 }
0x11d1   : > { %p2613_p9 = scmp.ne.s32.totalorder %s3175_s24, %s2612_s20  ;;  %p2617_p12 = scmp.lt.u32.totalorder %s3175_s24, %s3288_s19 }
0x11d2   : > { %p2618_p13 = scmp.lt.u32.totalorder %s2616_s26, %s2612_s20  ;;  %p2620_p1 = scmp.lt.u32.totalorder %s2612_s20, %s3175_s24 }
0x11d3   : > { %p2614_p10 = pnand %p2613_p9, %p2853_p3 }
0x11d4   : > { %p2619_p0 = por %p2618_p13, %p2617_p12 }
0x11d5   : > { %p2615_p11 = pneg %p2614_p10 }
0x11d6   : > { %p2621_p2 = por %p2620_p1, %p2619_p0 }
0x11d8   : > { %p2622_p4 = pnand %p2621_p2, %p2615_p11 }
0x11da   : > { %2625 = shalt.err (!%p2622_p4)
}
0x11db   : > { %2471 = dma.vmem_to_hbm [thread:$0]  (%p2853_p3), %s3177_s29, 128, %s3175_s24, %s2030_s21  }
0x11dc PF: > { %s3289_s2 = sld [smem:[#allocation9_spill]]  ;;  %s3290_s30 = sld [smem:[#allocation5_spill]] }
0x11e2   : > { %p2477_p5 = scmp.ge.s32.totalorder %s3289_s2, 2  ;;  %s2057_s25 = sand.u32 1, %s3290_s30  }
0x11e3   : > { %s2058_s3 = scalar_lea.sflag [#allocation3], %s2057_s25 }
0x11e4   : > { %p2474_p6 = pnand %p2477_p5, %p2862_p8 }
0x11e6   : > { %2659 = dma.done.wait (!%p2474_p6), %s2058_s3, 128  }
0x11e7   : > { %2661 = vsyncadd (!%p2474_p6), %s2058_s3, 4294967168  ;;  %s33_s26 = sadd.s32 1, %s3289_s2   ;;  %s3292_s20 = sld [smem:[#allocation6_spill]] }
0x11e8   : > { %p30_p7 = scmp.ge.s32.totalorder %s33_s26, 6   ;;  %s3293_s23 = sld [smem:[#allocation14_spill]] }
0x11e9   : > { %s3294_s24 = sld [smem:[#allocation7_spill]]  ;;  %s3295_s2 = sld [smem:[#allocation8_spill]] }
0x11ea   : > { %s3296_s25 = sld [smem:[#allocation10_spill]]  ;;  %s3297_s3 = sld [smem:[#allocation12_spill]] }
0x11eb   : > { %s3298_s1 = smov %s2668_s22  ;;  %32 = sbr.rel (!%p30_p7) target bundleno = 13 (0xd), region = 153 }
0x11ed   : > { %s3299_s22 = smov %s3292_s20 }
0x11f2   :  { %2063 = vsyncpa [#allocation3], 1 }
0x11f3   :  { %2065 = vsyncpa [#allocation3 + $0x1], 1 }

</bundles_post_ra>
